<compile_context>
chip_gen: v7x
topology: tpu7x:2x2x1
jax: 0.10.0
libtpu: 0.0.40
codegen_flags: <defaults>
</compile_context>

<pallas_src>
import math
import jax
import jax.numpy as jnp
from jax.experimental import pallas as pl
from jax.experimental.pallas import tpu as pltpu


_VMEM_LIMIT = 32 * 1024 * 1024   # safe scoped-VMEM cap on v5e/v6e/v7x
_LN_EPS = 1e-5                   # torch nn.LayerNorm default


# ----------------------------- helpers -----------------------------

def _round_up(x, m):
    return (x + m - 1) // m * m


def _r128(x):
    return _round_up(x, 128)


def _pad_axis(a, axis, size):
    pad = size - a.shape[axis]
    if pad == 0:
        return a
    widths = [(0, 0)] * a.ndim
    widths[axis] = (0, pad)
    return jnp.pad(a, widths)


# ----------------------------- activation (in-kernel only) -----------------------------

_SQRT1_2 = 0.7071067811865476


def _erf_approx(x):
    # Abramowitz & Stegun 7.1.26 (|err| <= 1.5e-7): near-exact torch.nn.GELU(erf)
    # parity. Divide routed through pl.reciprocal -> EUP slot.
    a1, a2, a3, a4, a5 = 0.254829592, -0.284496736, 1.421413741, -1.453152027, 1.061405429
    p = 0.3275911
    sgn = jnp.where(x >= 0.0, 1.0, -1.0)
    ax = jnp.abs(x)
    t = pl.reciprocal(1.0 + p * ax)          # exact reciprocal, EUP-assisted
    poly = ((((a5 * t + a4) * t + a3) * t + a2) * t + a1) * t
    return sgn * (1.0 - poly * jnp.exp(-ax * ax))


def _gelu_exact(x):
    return 0.5 * x * (1.0 + _erf_approx(x * _SQRT1_2))


# ----------------------------- fused transformer block kernel -----------------------------

def _make_block_kernel(d_true, num_heads, eps=_LN_EPS):
    """One pre-norm ViT block in a single kernel. All feature dims are padded to
    128-lane multiples; padded columns of x/weights/LN params are zero, so the
    math equals the unpadded reference."""
    dh = d_true // num_heads
    scale = 1.0 / math.sqrt(dh)
    inv_d = 1.0 / d_true

    def kernel(x_ref, ln1g_ref, ln1b_ref, wq_ref, bq_ref, wk_ref, bk_ref,
               wv_ref, bv_ref, wo_ref, bo_ref, ln2g_ref, ln2b_ref,
               w1_ref, b1_ref, w2_ref, b2_ref, o_ref):
        xf = x_ref[0].astype(jnp.float32)                      # (T, Dp), padded cols zero
        dp = xf.shape[-1]
        lane = jax.lax.broadcasted_iota(jnp.int32, (1, dp), 1)
        colmask = (lane < d_true).astype(jnp.float32)

        def layer_norm(z, g, b):
            # Stats over the TRUE feature width only (padded zeros masked out).
            mu = jnp.sum(z, axis=-1, keepdims=True) * inv_d
            zc = (z - mu) * colmask
            var = jnp.sum(zc * zc, axis=-1, keepdims=True) * inv_d
            return zc * jax.lax.rsqrt(var + eps) * g + b

        # ---- attention branch ----
        xn = layer_norm(xf, ln1g_ref[...], ln1b_ref[...]).astype(jnp.bfloat16)
        q = jnp.dot(xn, wq_ref[...], preferred_element_type=jnp.float32) + bq_ref[...]
        k = jnp.dot(xn, wk_ref[...], preferred_element_type=jnp.float32) + bk_ref[...]
        v = jnp.dot(xn, wv_ref[...], preferred_element_type=jnp.float32) + bv_ref[...]
        kb = k.astype(jnp.bfloat16)

        attn = None
        for h in range(num_heads):                             # static unroll
            m = ((lane >= h * dh) & (lane < (h + 1) * dh)).astype(jnp.float32)
            qh = (q * m).astype(jnp.bfloat16)                  # zero out other heads' lanes
            s = jax.lax.dot_general(qh, kb, (((1,), (1,)), ((), ())),
                                    preferred_element_type=jnp.float32) * scale
            s = s - jnp.max(s, axis=-1, keepdims=True)
            p = jnp.exp(s)
            p = p * pl.reciprocal(jnp.sum(p, axis=-1, keepdims=True), approx=True)
            vh = (v * m).astype(jnp.bfloat16)                  # head h's value columns only
            oh = jnp.dot(p.astype(jnp.bfloat16), vh, preferred_element_type=jnp.float32)
            attn = oh if attn is None else attn + oh           # disjoint columns per head

        x1 = xf + jnp.dot(attn.astype(jnp.bfloat16), wo_ref[...],
                          preferred_element_type=jnp.float32) + bo_ref[...]

        # ---- MLP branch ----
        xn2 = layer_norm(x1, ln2g_ref[...], ln2b_ref[...]).astype(jnp.bfloat16)
        hbuf = jnp.dot(xn2, w1_ref[...], preferred_element_type=jnp.float32) + b1_ref[...]
        hbuf = _gelu_exact(hbuf).astype(jnp.bfloat16)
        x2 = x1 + jnp.dot(hbuf, w2_ref[...], preferred_element_type=jnp.float32) + b2_ref[...]

        o_ref[0] = x2.astype(o_ref.dtype)

    return kernel


def fused_transformer_block(x, p, d_true, num_heads):
    """x: (B, T, Dp) bf16, Dp a multiple of 128. One pallas_call per block."""
    B, T, Dp = x.shape
    kernel = _make_block_kernel(d_true, num_heads)
    weights = [p["ln1_g"], p["ln1_b"], p["wq"], p["bq"], p["wk"], p["bk"],
               p["wv"], p["bv"], p["wo"], p["bo"], p["ln2_g"], p["ln2_b"],
               p["fc1_w"], p["fc1_b"], p["fc2_w"], p["fc2_b"]]
    in_specs = [pl.BlockSpec((1, T, Dp), lambda b: (b, 0, 0))]
    in_specs += [pl.BlockSpec(w.shape, lambda b: (0, 0)) for w in weights]
    return pl.pallas_call(
        kernel,
        out_shape=jax.ShapeDtypeStruct((B, T, Dp), x.dtype),
        grid=(B,),
        in_specs=in_specs,
        out_specs=pl.BlockSpec((1, T, Dp), lambda b: (b, 0, 0)),
        compiler_params=pltpu.CompilerParams(
            dimension_semantics=("parallel",),       # >=2 steps: v7x megacore split
            vmem_limit_bytes=_VMEM_LIMIT),
    )(x, *weights)


# ----------------------------- small linear kernel (nk == 1 fast path) -----------------------------

def pallas_linear(x, w, b, out_dtype=jnp.bfloat16):
    """y = x @ w + b. w (K, N) / b (1, N) are already zero-padded to 128-lane
    multiples at init. K fits in one tile here, so dot+bias writes straight to
    o_ref (no accumulator scratch).
    # TODO(synk): add a K-tiled accumulator path for full ViT-scale K."""
    x = x.astype(jnp.bfloat16)
    M, K = x.shape
    N = w.shape[1]
    tm = M if M <= 512 else 512
    Mp = _round_up(M, tm)
    xp = _pad_axis(x, 0, Mp)

    def kernel(x_ref, w_ref, b_ref, o_ref):
        y = jnp.dot(x_ref[...], w_ref[...], preferred_element_type=jnp.float32) + b_ref[...]
        o_ref[...] = y.astype(o_ref.dtype)

    out = pl.pallas_call(
        kernel,
        out_shape=jax.ShapeDtypeStruct((Mp, N), out_dtype),
        grid=(Mp // tm,),
        in_specs=[pl.BlockSpec((tm, K), lambda i: (i, 0)),
                  pl.BlockSpec((K, N), lambda i: (0, 0)),
                  pl.BlockSpec((1, N), lambda i: (0, 0))],
        out_specs=pl.BlockSpec((tm, N), lambda i: (i, 0)),
        compiler_params=pltpu.CompilerParams(
            dimension_semantics=("arbitrary",),
            vmem_limit_bytes=_VMEM_LIMIT),
    )(xp, w.astype(jnp.bfloat16), b)
    return out if Mp == M else out[:M]


# ----------------------------- fused x_hat projection + masked MSE loss -----------------------------

def pallas_masked_mse(pred, patches, proj_w, proj_b, mask, p_true):
    """loss = sum(mean((pred - patches@proj_w - proj_b)^2 over true dims) * mask) / sum(mask).
    pred: (M, Pp) f32, patches: (M, Kp) bf16, mask: (M, 1) f32. Scalar -> SMEM."""
    M, Pp = pred.shape
    Kp = patches.shape[1]
    inv_p = 1.0 / p_true

    def kernel(pred_ref, pat_ref, w_ref, b_ref, m_ref, o_ref):
        xhat = jnp.dot(pat_ref[...], w_ref[...],
                       preferred_element_type=jnp.float32) + b_ref[...]
        d = pred_ref[...] - xhat                       # padded cols are 0 - 0
        per_tok = jnp.sum(d * d, axis=-1, keepdims=True) * inv_p   # (M, 1)
        num = jnp.sum(per_tok * m_ref[...])
        den = jnp.sum(m_ref[...])
        o_ref[0, 0] = num / den

    out = pl.pallas_call(
        kernel,
        out_shape=jax.ShapeDtypeStruct((1, 1), jnp.float32),
        grid=(1,),
        in_specs=[
            pl.BlockSpec((M, Pp), lambda i: (0, 0)),
            pl.BlockSpec((M, Kp), lambda i: (0, 0)),
            pl.BlockSpec((Kp, Pp), lambda i: (0, 0)),
            pl.BlockSpec((1, Pp), lambda i: (0, 0)),
            pl.BlockSpec((M, 1), lambda i: (0, 0)),
        ],
        out_specs=pl.BlockSpec(memory_space=pltpu.MemorySpace.SMEM),
        compiler_params=pltpu.CompilerParams(
            dimension_semantics=("arbitrary",),
            vmem_limit_bytes=_VMEM_LIMIT),
    )(pred, patches, proj_w.astype(jnp.bfloat16), proj_b, mask)
    return out[0, 0]


# ----------------------------- JAX glue -----------------------------

def extract_patches(img, P):
    """NCHW image -> (B, T, C*P*P), patch flattened in (C, kh, kw) order (Conv2d layout)."""
    B, C, H, W = img.shape
    x = img.reshape(B, C, H // P, P, W // P, P)
    x = x.transpose(0, 2, 4, 1, 3, 5)
    return x.reshape(B, (H // P) * (W // P), C * P * P)


def random_masking(x, key, mask_ratio=0.75):
    # TODO(synk): argsort-based shuffling + data-dependent gather kept in plain JAX.
    B, T, D = x.shape
    id_len = int(T * (1 - mask_ratio))
    noise = jax.random.normal(key, (B, T), dtype=jnp.float32)
    id_shuffle = jnp.argsort(noise, axis=1)
    id_restore = jnp.argsort(id_shuffle, axis=1)
    id_keep = id_restore[:, :id_len]
    idx = jnp.broadcast_to(id_keep[:, :, None], (B, id_len, D))
    x_kept = jnp.take_along_axis(x, idx, axis=1)
    mask = jnp.ones((B, T), dtype=jnp.float32)
    mask = mask.at[:, :id_len].set(0.0)
    mask = jnp.take_along_axis(mask, id_restore, axis=1)
    return x_kept, mask, id_restore


def mae_forward(img, params, key, cfg):
    P = cfg["patch_size"]
    H = cfg["num_head"]
    E = cfg["embed_dim"]
    Dd = cfg["decoder_embed_dim"]
    C = cfg["in_channels"]
    patch_dim = C * P * P

    # ---- patches (padded once to 128 lanes; reused for embed and loss) ----
    patches = extract_patches(img, P)                              # (B, T, 48) f32
    B, T, _ = patches.shape
    patches_p = _pad_axis(patches, 2, _r128(patch_dim)).astype(jnp.bfloat16)

    # ---- encoder ----
    x = pallas_linear(patches_p.reshape(B * T, -1),
                      params["patch_w"], params["patch_b"]).reshape(B, T, -1)
    x, mask, id_restore = random_masking(x, key, mask_ratio=0.75)
    for blk in params["enc_blocks"]:
        x = fused_transformer_block(x, blk, d_true=E, num_heads=H)

    # ---- decoder ----
    Bx, n_keep, Ep = x.shape
    x = pallas_linear(x.reshape(Bx * n_keep, Ep),
                      params["dec_embed_w"], params["dec_embed_b"])
    Ddp = x.shape[-1]
    x = x.reshape(Bx, n_keep, Ddp)
    mask_tokens = jnp.broadcast_to(params["mask_token"].astype(x.dtype),
                                   (B, T - n_keep, Ddp))
    x_ = jnp.concatenate([x, mask_tokens], axis=1)
    idx = jnp.broadcast_to(id_restore[:, :, None], (B, T, Ddp))
    x = jnp.take_along_axis(x_, idx, axis=1)
    x = x + params["pos_embed"].astype(x.dtype)
    for blk in params["dec_blocks"]:
        x = fused_transformer_block(x, blk, d_true=Dd, num_heads=H)
    pred_pad = pallas_linear(x.reshape(B * T, Ddp), params["pred_w"], params["pred_b"],
                             out_dtype=jnp.float32)                # (B*T, 128) lane-dense

    # ---- loss (x_hat projection fused into the loss kernel) ----
    loss = pallas_masked_mse(pred_pad, patches_p.reshape(B * T, -1),
                             params["proj_w"], params["proj_b"],
                             mask.reshape(B * T, 1), p_true=patch_dim)
    pred = pred_pad.reshape(B, T, -1)[:, :, :patch_dim]
    return loss, pred, mask


# ----------------------------- Deterministic init (weights pre-padded to 128 lanes) -----------------------------

def init_params(key, cfg):
    E = cfg["embed_dim"]
    Dd = cfg["decoder_embed_dim"]
    P = cfg["patch_size"]
    C = cfg["in_channels"]
    S = cfg["img_size"]
    T = (S // P) ** 2
    patch_dim = C * P * P
    Ep, Ddp, Cp, Pp = _r128(E), _r128(Dd), _r128(patch_dim), _r128(patch_dim)
    keys = iter(jax.random.split(key, 512))

    def w(k_in, k_out, pad_in, pad_out, scale=0.02):
        m = jax.random.normal(next(keys), (k_in, k_out), dtype=jnp.float32) * scale
        m = jnp.pad(m, ((0, pad_in - k_in), (0, pad_out - k_out)))
        return m.astype(jnp.bfloat16)

    def bias(pad_n):
        return jnp.zeros((1, pad_n), jnp.float32)

    def ln_gamma(d, pad_d):
        return jnp.pad(jnp.ones((1, d), jnp.float32), ((0, 0), (0, pad_d - d)))

    def block_params(dim, pad_dim):
        hid = 4 * dim
        pad_hid = _r128(hid)
        return dict(
            ln1_g=ln_gamma(dim, pad_dim), ln1_b=bias(pad_dim),
            wq=w(dim, dim, pad_dim, pad_dim), bq=bias(pad_dim),
            wk=w(dim, dim, pad_dim, pad_dim), bk=bias(pad_dim),
            wv=w(dim, dim, pad_dim, pad_dim), bv=bias(pad_dim),
            wo=w(dim, dim, pad_dim, pad_dim), bo=bias(pad_dim),
            ln2_g=ln_gamma(dim, pad_dim), ln2_b=bias(pad_dim),
            fc1_w=w(dim, hid, pad_dim, pad_hid), fc1_b=bias(pad_hid),
            fc2_w=w(hid, dim, pad_hid, pad_dim), fc2_b=bias(pad_dim),
        )

    return dict(
        # conv weights stored pre-flattened & pre-padded as matmul weights
        patch_w=w(patch_dim, E, Cp, Ep), patch_b=bias(Ep),
        proj_w=w(patch_dim, patch_dim, Cp, Pp), proj_b=bias(Pp),
        dec_embed_w=w(E, Dd, Ep, Ddp), dec_embed_b=bias(Ddp),
        pred_w=w(Dd, patch_dim, Ddp, Pp), pred_b=bias(Pp),
        mask_token=jnp.zeros((1, 1, Ddp), jnp.float32),   # nn.Parameter(torch.zeros)
        pos_embed=jnp.zeros((1, T, Ddp), jnp.float32),    # zeros, requires_grad=False
        enc_blocks=[block_params(E, Ep) for _ in range(cfg["encoder_num_layers"])],
        dec_blocks=[block_params(Dd, Ddp) for _ in range(cfg["decoder_num_layers"])],
    )


# ----------------------------- Main -----------------------------

if __name__ == "__main__":
    cfg = dict(
        embed_dim=64,
        decoder_embed_dim=32,
        patch_size=4,
        num_head=4,
        encoder_num_layers=2,
        decoder_num_layers=2,
        in_channels=3,
        img_size=16,
    )

    key = jax.random.PRNGKey(0)
    k_params, k_img, k_mask = jax.random.split(key, 3)

    params = init_params(k_params, cfg)
    img = jax.random.normal(
        k_img, (2, cfg["in_channels"], cfg["img_size"], cfg["img_size"]),
        dtype=jnp.float32)

    fwd = jax.jit(lambda im, pr, k: mae_forward(im, pr, k, cfg))
    loss, pred, mask = fwd(img, params, k_mask)
    jax.block_until_ready((loss, pred, mask))

    T = (cfg["img_size"] // cfg["patch_size"]) ** 2
    assert pred.shape == (2, T, cfg["in_channels"] * cfg["patch_size"] ** 2)
    assert mask.shape == (2, T)
    assert loss.shape == ()
    assert bool(jnp.isfinite(loss))

    print("KERNEL_OK")
</pallas_src>

<mosaic_0001>
module attributes {stable_mosaic.version = 11 : i64} {
  func.func private @main(%arg0: i32) attributes {dimension_semantics = [#tpu.dimension_semantics<core_parallel>], iteration_bounds = array<i64: 2>, tpu.core_type = #tpu.core_type<sc_scalar_subcore>, window_params = []} {
    return
  }
}

module attributes {stable_mosaic.version = 11 : i64} {
  func.func private @main(%arg0: i32) attributes {dimension_semantics = [#tpu.dimension_semantics<core_parallel>], iteration_bounds = array<i64: 2>, tpu.core_type = #tpu.core_type<sc_scalar_subcore>, window_params = []} {
    return
  }
}

module attributes {stable_mosaic.version = 11 : i64} {
  func.func @kernel(%arg0: i32, %arg1: memref<1x4x128xbf16, #tpu.memory_space<vmem>>, %arg2: memref<1x128xf32, #tpu.memory_space<vmem>>, %arg3: memref<1x128xf32, #tpu.memory_space<vmem>>, %arg4: memref<128x128xbf16, #tpu.memory_space<vmem>>, %arg5: memref<1x128xf32, #tpu.memory_space<vmem>>, %arg6: memref<128x128xbf16, #tpu.memory_space<vmem>>, %arg7: memref<1x128xf32, #tpu.memory_space<vmem>>, %arg8: memref<128x128xbf16, #tpu.memory_space<vmem>>, %arg9: memref<1x128xf32, #tpu.memory_space<vmem>>, %arg10: memref<128x128xbf16, #tpu.memory_space<vmem>>, %arg11: memref<1x128xf32, #tpu.memory_space<vmem>>, %arg12: memref<1x128xf32, #tpu.memory_space<vmem>>, %arg13: memref<1x128xf32, #tpu.memory_space<vmem>>, %arg14: memref<128x256xbf16, #tpu.memory_space<vmem>>, %arg15: memref<1x256xf32, #tpu.memory_space<vmem>>, %arg16: memref<256x128xbf16, #tpu.memory_space<vmem>>, %arg17: memref<1x128xf32, #tpu.memory_space<vmem>>, %arg18: memref<1x4x128xbf16, #tpu.memory_space<vmem>>) attributes {dimension_semantics = [#tpu.dimension_semantics<parallel>], iteration_bounds = array<i64: 2>, scalar_prefetch = 0 : i64, scratch_operands = 0 : i64, tpu.core_type = #tpu.core_type<tc>, window_params = [{transform_indices = @transform_0, window_bounds = array<i64: 1, 4, 128>}, {pipeline_mode = #tpu.pipeline_mode<synchronous>, transform_indices = @transform_1, window_bounds = array<i64: 1, 128>}, {pipeline_mode = #tpu.pipeline_mode<synchronous>, transform_indices = @transform_2, window_bounds = array<i64: 1, 128>}, {pipeline_mode = #tpu.pipeline_mode<synchronous>, transform_indices = @transform_3, window_bounds = array<i64: 128, 128>}, {pipeline_mode = #tpu.pipeline_mode<synchronous>, transform_indices = @transform_4, window_bounds = array<i64: 1, 128>}, {pipeline_mode = #tpu.pipeline_mode<synchronous>, transform_indices = @transform_5, window_bounds = array<i64: 128, 128>}, {pipeline_mode = #tpu.pipeline_mode<synchronous>, transform_indices = @transform_6, window_bounds = array<i64: 1, 128>}, {pipeline_mode = #tpu.pipeline_mode<synchronous>, transform_indices = @transform_7, window_bounds = array<i64: 128, 128>}, {pipeline_mode = #tpu.pipeline_mode<synchronous>, transform_indices = @transform_8, window_bounds = array<i64: 1, 128>}, {pipeline_mode = #tpu.pipeline_mode<synchronous>, transform_indices = @transform_9, window_bounds = array<i64: 128, 128>}, {pipeline_mode = #tpu.pipeline_mode<synchronous>, transform_indices = @transform_10, window_bounds = array<i64: 1, 128>}, {pipeline_mode = #tpu.pipeline_mode<synchronous>, transform_indices = @transform_11, window_bounds = array<i64: 1, 128>}, {pipeline_mode = #tpu.pipeline_mode<synchronous>, transform_indices = @transform_12, window_bounds = array<i64: 1, 128>}, {pipeline_mode = #tpu.pipeline_mode<synchronous>, transform_indices = @transform_13, window_bounds = array<i64: 128, 256>}, {pipeline_mode = #tpu.pipeline_mode<synchronous>, transform_indices = @transform_14, window_bounds = array<i64: 1, 256>}, {pipeline_mode = #tpu.pipeline_mode<synchronous>, transform_indices = @transform_15, window_bounds = array<i64: 256, 128>}, {pipeline_mode = #tpu.pipeline_mode<synchronous>, transform_indices = @transform_16, window_bounds = array<i64: 1, 128>}, {transform_indices = @transform_17, window_bounds = array<i64: 1, 4, 128>}]} {
    %c0 = arith.constant 0 : index
    %c0_0 = arith.constant 0 : index
    %c0_1 = arith.constant 0 : index
    %0 = vector.load %arg1[%c0, %c0_0, %c0_1] : memref<1x4x128xbf16, #tpu.memory_space<vmem>>, vector<1x4x128xbf16>
    %1 = vector.shape_cast %0 : vector<1x4x128xbf16> to vector<4x128xbf16>
    %2 = arith.extf %1 : vector<4x128xbf16> to vector<4x128xf32>
    %3 = tpu.iota {dimensions = array<i32: 1>} : vector<1x128xi32>
    %c64_i32 = arith.constant 64 : i32
    %4 = vector.broadcast %c64_i32 : i32 to vector<1x128xi32>
    %5 = arith.cmpi slt, %3, %4 : vector<1x128xi32>
    %6 = arith.extui %5 : vector<1x128xi1> to vector<1x128xi32>
    %7 = arith.sitofp %6 : vector<1x128xi32> to vector<1x128xf32>
    %c0_2 = arith.constant 0 : index
    %c0_3 = arith.constant 0 : index
    %8 = vector.load %arg2[%c0_2, %c0_3] : memref<1x128xf32, #tpu.memory_space<vmem>>, vector<1x128xf32>
    %c0_4 = arith.constant 0 : index
    %c0_5 = arith.constant 0 : index
    %9 = vector.load %arg3[%c0_4, %c0_5] : memref<1x128xf32, #tpu.memory_space<vmem>>, vector<1x128xf32>
    %cst = arith.constant dense<0.000000e+00> : vector<4xf32>
    %10 = vector.multi_reduction <add>, %2, %cst [1] : vector<4x128xf32> to vector<4xf32>
    %11 = vector.shape_cast %10 : vector<4xf32> to vector<4x1xf32>
    %cst_6 = arith.constant 1.562500e-02 : f32
    %12 = vector.broadcast %cst_6 : f32 to vector<4x1xf32>
    %13 = arith.mulf %11, %12 : vector<4x1xf32>
    %14 = vector.broadcast %13 : vector<4x1xf32> to vector<4x128xf32>
    %15 = arith.subf %2, %14 : vector<4x128xf32>
    %16 = vector.broadcast %7 : vector<1x128xf32> to vector<4x128xf32>
    %17 = arith.mulf %15, %16 : vector<4x128xf32>
    %18 = arith.mulf %17, %17 : vector<4x128xf32>
    %cst_7 = arith.constant dense<0.000000e+00> : vector<4xf32>
    %19 = vector.multi_reduction <add>, %18, %cst_7 [1] : vector<4x128xf32> to vector<4xf32>
    %20 = vector.shape_cast %19 : vector<4xf32> to vector<4x1xf32>
    %cst_8 = arith.constant 1.562500e-02 : f32
    %21 = vector.broadcast %cst_8 : f32 to vector<4x1xf32>
    %22 = arith.mulf %20, %21 : vector<4x1xf32>
    %cst_9 = arith.constant 9.99999974E-6 : f32
    %23 = vector.broadcast %cst_9 : f32 to vector<4x1xf32>
    %24 = arith.addf %22, %23 : vector<4x1xf32>
    %25 = math.rsqrt %24 : vector<4x1xf32>
    %26 = vector.broadcast %25 : vector<4x1xf32> to vector<4x128xf32>
    %27 = arith.mulf %17, %26 : vector<4x128xf32>
    %28 = vector.broadcast %8 : vector<1x128xf32> to vector<4x128xf32>
    %29 = arith.mulf %27, %28 : vector<4x128xf32>
    %30 = vector.broadcast %9 : vector<1x128xf32> to vector<4x128xf32>
    %31 = arith.addf %29, %30 : vector<4x128xf32>
    %32 = arith.truncf %31 : vector<4x128xf32> to vector<4x128xbf16>
    %c0_10 = arith.constant 0 : index
    %c0_11 = arith.constant 0 : index
    %33 = vector.load %arg4[%c0_10, %c0_11] : memref<128x128xbf16, #tpu.memory_space<vmem>>, vector<128x128xbf16>
    %cst_12 = arith.constant dense<0.000000e+00> : vector<4x128xf32>
    %34 = tpu.matmul %32, %33, %cst_12 {dimension_numbers = #tpu.dot_dimension_numbers<[1], [0], [0], [1], [0, 0, 1, 1], [], []>} : vector<4x128xbf16>, vector<128x128xbf16>, vector<4x128xf32> -> vector<4x128xf32>
    %c0_13 = arith.constant 0 : index
    %c0_14 = arith.constant 0 : index
    %35 = vector.load %arg5[%c0_13, %c0_14] : memref<1x128xf32, #tpu.memory_space<vmem>>, vector<1x128xf32>
    %36 = vector.broadcast %35 : vector<1x128xf32> to vector<4x128xf32>
    %37 = arith.addf %34, %36 : vector<4x128xf32>
    %c0_15 = arith.constant 0 : index
    %c0_16 = arith.constant 0 : index
    %38 = vector.load %arg6[%c0_15, %c0_16] : memref<128x128xbf16, #tpu.memory_space<vmem>>, vector<128x128xbf16>
    %cst_17 = arith.constant dense<0.000000e+00> : vector<4x128xf32>
    %39 = tpu.matmul %32, %38, %cst_17 {dimension_numbers = #tpu.dot_dimension_numbers<[1], [0], [0], [1], [0, 0, 1, 1], [], []>} : vector<4x128xbf16>, vector<128x128xbf16>, vector<4x128xf32> -> vector<4x128xf32>
    %c0_18 = arith.constant 0 : index
    %c0_19 = arith.constant 0 : index
    %40 = vector.load %arg7[%c0_18, %c0_19] : memref<1x128xf32, #tpu.memory_space<vmem>>, vector<1x128xf32>
    %41 = vector.broadcast %40 : vector<1x128xf32> to vector<4x128xf32>
    %42 = arith.addf %39, %41 : vector<4x128xf32>
    %c0_20 = arith.constant 0 : index
    %c0_21 = arith.constant 0 : index
    %43 = vector.load %arg8[%c0_20, %c0_21] : memref<128x128xbf16, #tpu.memory_space<vmem>>, vector<128x128xbf16>
    %cst_22 = arith.constant dense<0.000000e+00> : vector<4x128xf32>
    %44 = tpu.matmul %32, %43, %cst_22 {dimension_numbers = #tpu.dot_dimension_numbers<[1], [0], [0], [1], [0, 0, 1, 1], [], []>} : vector<4x128xbf16>, vector<128x128xbf16>, vector<4x128xf32> -> vector<4x128xf32>
    %c0_23 = arith.constant 0 : index
    %c0_24 = arith.constant 0 : index
    %45 = vector.load %arg9[%c0_23, %c0_24] : memref<1x128xf32, #tpu.memory_space<vmem>>, vector<1x128xf32>
    %46 = vector.broadcast %45 : vector<1x128xf32> to vector<4x128xf32>
    %47 = arith.addf %44, %46 : vector<4x128xf32>
    %48 = arith.truncf %42 : vector<4x128xf32> to vector<4x128xbf16>
    %c0_i32 = arith.constant 0 : i32
    %49 = vector.broadcast %c0_i32 : i32 to vector<1x128xi32>
    %50 = arith.cmpi sge, %3, %49 : vector<1x128xi32>
    %c16_i32 = arith.constant 16 : i32
    %51 = vector.broadcast %c16_i32 : i32 to vector<1x128xi32>
    %52 = arith.cmpi slt, %3, %51 : vector<1x128xi32>
    %53 = arith.andi %50, %52 : vector<1x128xi1>
    %54 = arith.extui %53 : vector<1x128xi1> to vector<1x128xi32>
    %55 = arith.sitofp %54 : vector<1x128xi32> to vector<1x128xf32>
    %56 = vector.broadcast %55 : vector<1x128xf32> to vector<4x128xf32>
    %57 = arith.mulf %37, %56 : vector<4x128xf32>
    %58 = arith.truncf %57 : vector<4x128xf32> to vector<4x128xbf16>
    %cst_25 = arith.constant dense<0.000000e+00> : vector<4x4xf32>
    %59 = tpu.matmul %58, %48, %cst_25 {dimension_numbers = #tpu.dot_dimension_numbers<[1], [1], [0], [0], [0, 0, 1, 0], [], []>} : vector<4x128xbf16>, vector<4x128xbf16>, vector<4x4xf32> -> vector<4x4xf32>
    %cst_26 = arith.constant 2.500000e-01 : f32
    %60 = vector.broadcast %cst_26 : f32 to vector<4x4xf32>
    %61 = arith.mulf %59, %60 : vector<4x4xf32>
    %cst_27 = arith.constant dense<0xFF800000> : vector<4xf32>
    %62 = vector.multi_reduction <maximumf>, %61, %cst_27 [1] : vector<4x4xf32> to vector<4xf32>
    %63 = vector.shape_cast %62 : vector<4xf32> to vector<4x1xf32>
    %64 = vector.broadcast %63 : vector<4x1xf32> to vector<4x4xf32>
    %65 = arith.subf %61, %64 : vector<4x4xf32>
    %66 = math.exp %65 : vector<4x4xf32>
    %cst_28 = arith.constant dense<0.000000e+00> : vector<4xf32>
    %67 = vector.multi_reduction <add>, %66, %cst_28 [1] : vector<4x4xf32> to vector<4xf32>
    %68 = vector.shape_cast %67 : vector<4xf32> to vector<4x1xf32>
    %69 = tpu.reciprocal %68 {approx = true} : vector<4x1xf32> -> vector<4x1xf32>
    %70 = vector.broadcast %69 : vector<4x1xf32> to vector<4x4xf32>
    %71 = arith.mulf %66, %70 : vector<4x4xf32>
    %72 = vector.broadcast %55 : vector<1x128xf32> to vector<4x128xf32>
    %73 = arith.mulf %47, %72 : vector<4x128xf32>
    %74 = arith.truncf %73 : vector<4x128xf32> to vector<4x128xbf16>
    %75 = arith.truncf %71 : vector<4x4xf32> to vector<4x4xbf16>
    %cst_29 = arith.constant dense<0.000000e+00> : vector<4x128xf32>
    %76 = tpu.matmul %75, %74, %cst_29 {dimension_numbers = #tpu.dot_dimension_numbers<[1], [0], [0], [1], [0, 0, 1, 1], [], []>} : vector<4x4xbf16>, vector<4x128xbf16>, vector<4x128xf32> -> vector<4x128xf32>
    %c16_i32_30 = arith.constant 16 : i32
    %77 = vector.broadcast %c16_i32_30 : i32 to vector<1x128xi32>
    %78 = arith.cmpi sge, %3, %77 : vector<1x128xi32>
    %c32_i32 = arith.constant 32 : i32
    %79 = vector.broadcast %c32_i32 : i32 to vector<1x128xi32>
    %80 = arith.cmpi slt, %3, %79 : vector<1x128xi32>
    %81 = arith.andi %78, %80 : vector<1x128xi1>
    %82 = arith.extui %81 : vector<1x128xi1> to vector<1x128xi32>
    %83 = arith.sitofp %82 : vector<1x128xi32> to vector<1x128xf32>
    %84 = vector.broadcast %83 : vector<1x128xf32> to vector<4x128xf32>
    %85 = arith.mulf %37, %84 : vector<4x128xf32>
    %86 = arith.truncf %85 : vector<4x128xf32> to vector<4x128xbf16>
    %cst_31 = arith.constant dense<0.000000e+00> : vector<4x4xf32>
    %87 = tpu.matmul %86, %48, %cst_31 {dimension_numbers = #tpu.dot_dimension_numbers<[1], [1], [0], [0], [0, 0, 1, 0], [], []>} : vector<4x128xbf16>, vector<4x128xbf16>, vector<4x4xf32> -> vector<4x4xf32>
    %cst_32 = arith.constant 2.500000e-01 : f32
    %88 = vector.broadcast %cst_32 : f32 to vector<4x4xf32>
    %89 = arith.mulf %87, %88 : vector<4x4xf32>
    %cst_33 = arith.constant dense<0xFF800000> : vector<4xf32>
    %90 = vector.multi_reduction <maximumf>, %89, %cst_33 [1] : vector<4x4xf32> to vector<4xf32>
    %91 = vector.shape_cast %90 : vector<4xf32> to vector<4x1xf32>
    %92 = vector.broadcast %91 : vector<4x1xf32> to vector<4x4xf32>
    %93 = arith.subf %89, %92 : vector<4x4xf32>
    %94 = math.exp %93 : vector<4x4xf32>
    %cst_34 = arith.constant dense<0.000000e+00> : vector<4xf32>
    %95 = vector.multi_reduction <add>, %94, %cst_34 [1] : vector<4x4xf32> to vector<4xf32>
    %96 = vector.shape_cast %95 : vector<4xf32> to vector<4x1xf32>
    %97 = tpu.reciprocal %96 {approx = true} : vector<4x1xf32> -> vector<4x1xf32>
    %98 = vector.broadcast %97 : vector<4x1xf32> to vector<4x4xf32>
    %99 = arith.mulf %94, %98 : vector<4x4xf32>
    %100 = vector.broadcast %83 : vector<1x128xf32> to vector<4x128xf32>
    %101 = arith.mulf %47, %100 : vector<4x128xf32>
    %102 = arith.truncf %101 : vector<4x128xf32> to vector<4x128xbf16>
    %103 = arith.truncf %99 : vector<4x4xf32> to vector<4x4xbf16>
    %cst_35 = arith.constant dense<0.000000e+00> : vector<4x128xf32>
    %104 = tpu.matmul %103, %102, %cst_35 {dimension_numbers = #tpu.dot_dimension_numbers<[1], [0], [0], [1], [0, 0, 1, 1], [], []>} : vector<4x4xbf16>, vector<4x128xbf16>, vector<4x128xf32> -> vector<4x128xf32>
    %105 = arith.addf %76, %104 : vector<4x128xf32>
    %c32_i32_36 = arith.constant 32 : i32
    %106 = vector.broadcast %c32_i32_36 : i32 to vector<1x128xi32>
    %107 = arith.cmpi sge, %3, %106 : vector<1x128xi32>
    %c48_i32 = arith.constant 48 : i32
    %108 = vector.broadcast %c48_i32 : i32 to vector<1x128xi32>
    %109 = arith.cmpi slt, %3, %108 : vector<1x128xi32>
    %110 = arith.andi %107, %109 : vector<1x128xi1>
    %111 = arith.extui %110 : vector<1x128xi1> to vector<1x128xi32>
    %112 = arith.sitofp %111 : vector<1x128xi32> to vector<1x128xf32>
    %113 = vector.broadcast %112 : vector<1x128xf32> to vector<4x128xf32>
    %114 = arith.mulf %37, %113 : vector<4x128xf32>
    %115 = arith.truncf %114 : vector<4x128xf32> to vector<4x128xbf16>
    %cst_37 = arith.constant dense<0.000000e+00> : vector<4x4xf32>
    %116 = tpu.matmul %115, %48, %cst_37 {dimension_numbers = #tpu.dot_dimension_numbers<[1], [1], [0], [0], [0, 0, 1, 0], [], []>} : vector<4x128xbf16>, vector<4x128xbf16>, vector<4x4xf32> -> vector<4x4xf32>
    %cst_38 = arith.constant 2.500000e-01 : f32
    %117 = vector.broadcast %cst_38 : f32 to vector<4x4xf32>
    %118 = arith.mulf %116, %117 : vector<4x4xf32>
    %cst_39 = arith.constant dense<0xFF800000> : vector<4xf32>
    %119 = vector.multi_reduction <maximumf>, %118, %cst_39 [1] : vector<4x4xf32> to vector<4xf32>
    %120 = vector.shape_cast %119 : vector<4xf32> to vector<4x1xf32>
    %121 = vector.broadcast %120 : vector<4x1xf32> to vector<4x4xf32>
    %122 = arith.subf %118, %121 : vector<4x4xf32>
    %123 = math.exp %122 : vector<4x4xf32>
    %cst_40 = arith.constant dense<0.000000e+00> : vector<4xf32>
    %124 = vector.multi_reduction <add>, %123, %cst_40 [1] : vector<4x4xf32> to vector<4xf32>
    %125 = vector.shape_cast %124 : vector<4xf32> to vector<4x1xf32>
    %126 = tpu.reciprocal %125 {approx = true} : vector<4x1xf32> -> vector<4x1xf32>
    %127 = vector.broadcast %126 : vector<4x1xf32> to vector<4x4xf32>
    %128 = arith.mulf %123, %127 : vector<4x4xf32>
    %129 = vector.broadcast %112 : vector<1x128xf32> to vector<4x128xf32>
    %130 = arith.mulf %47, %129 : vector<4x128xf32>
    %131 = arith.truncf %130 : vector<4x128xf32> to vector<4x128xbf16>
    %132 = arith.truncf %128 : vector<4x4xf32> to vector<4x4xbf16>
    %cst_41 = arith.constant dense<0.000000e+00> : vector<4x128xf32>
    %133 = tpu.matmul %132, %131, %cst_41 {dimension_numbers = #tpu.dot_dimension_numbers<[1], [0], [0], [1], [0, 0, 1, 1], [], []>} : vector<4x4xbf16>, vector<4x128xbf16>, vector<4x128xf32> -> vector<4x128xf32>
    %134 = arith.addf %105, %133 : vector<4x128xf32>
    %c48_i32_42 = arith.constant 48 : i32
    %135 = vector.broadcast %c48_i32_42 : i32 to vector<1x128xi32>
    %136 = arith.cmpi sge, %3, %135 : vector<1x128xi32>
    %c64_i32_43 = arith.constant 64 : i32
    %137 = vector.broadcast %c64_i32_43 : i32 to vector<1x128xi32>
    %138 = arith.cmpi slt, %3, %137 : vector<1x128xi32>
    %139 = arith.andi %136, %138 : vector<1x128xi1>
    %140 = arith.extui %139 : vector<1x128xi1> to vector<1x128xi32>
    %141 = arith.sitofp %140 : vector<1x128xi32> to vector<1x128xf32>
    %142 = vector.broadcast %141 : vector<1x128xf32> to vector<4x128xf32>
    %143 = arith.mulf %37, %142 : vector<4x128xf32>
    %144 = arith.truncf %143 : vector<4x128xf32> to vector<4x128xbf16>
    %cst_44 = arith.constant dense<0.000000e+00> : vector<4x4xf32>
    %145 = tpu.matmul %144, %48, %cst_44 {dimension_numbers = #tpu.dot_dimension_numbers<[1], [1], [0], [0], [0, 0, 1, 0], [], []>} : vector<4x128xbf16>, vector<4x128xbf16>, vector<4x4xf32> -> vector<4x4xf32>
    %cst_45 = arith.constant 2.500000e-01 : f32
    %146 = vector.broadcast %cst_45 : f32 to vector<4x4xf32>
    %147 = arith.mulf %145, %146 : vector<4x4xf32>
    %cst_46 = arith.constant dense<0xFF800000> : vector<4xf32>
    %148 = vector.multi_reduction <maximumf>, %147, %cst_46 [1] : vector<4x4xf32> to vector<4xf32>
    %149 = vector.shape_cast %148 : vector<4xf32> to vector<4x1xf32>
    %150 = vector.broadcast %149 : vector<4x1xf32> to vector<4x4xf32>
    %151 = arith.subf %147, %150 : vector<4x4xf32>
    %152 = math.exp %151 : vector<4x4xf32>
    %cst_47 = arith.constant dense<0.000000e+00> : vector<4xf32>
    %153 = vector.multi_reduction <add>, %152, %cst_47 [1] : vector<4x4xf32> to vector<4xf32>
    %154 = vector.shape_cast %153 : vector<4xf32> to vector<4x1xf32>
    %155 = tpu.reciprocal %154 {approx = true} : vector<4x1xf32> -> vector<4x1xf32>
    %156 = vector.broadcast %155 : vector<4x1xf32> to vector<4x4xf32>
    %157 = arith.mulf %152, %156 : vector<4x4xf32>
    %158 = vector.broadcast %141 : vector<1x128xf32> to vector<4x128xf32>
    %159 = arith.mulf %47, %158 : vector<4x128xf32>
    %160 = arith.truncf %159 : vector<4x128xf32> to vector<4x128xbf16>
    %161 = arith.truncf %157 : vector<4x4xf32> to vector<4x4xbf16>
    %cst_48 = arith.constant dense<0.000000e+00> : vector<4x128xf32>
    %162 = tpu.matmul %161, %160, %cst_48 {dimension_numbers = #tpu.dot_dimension_numbers<[1], [0], [0], [1], [0, 0, 1, 1], [], []>} : vector<4x4xbf16>, vector<4x128xbf16>, vector<4x128xf32> -> vector<4x128xf32>
    %163 = arith.addf %134, %162 : vector<4x128xf32>
    %164 = arith.truncf %163 : vector<4x128xf32> to vector<4x128xbf16>
    %c0_49 = arith.constant 0 : index
    %c0_50 = arith.constant 0 : index
    %165 = vector.load %arg10[%c0_49, %c0_50] : memref<128x128xbf16, #tpu.memory_space<vmem>>, vector<128x128xbf16>
    %cst_51 = arith.constant dense<0.000000e+00> : vector<4x128xf32>
    %166 = tpu.matmul %164, %165, %cst_51 {dimension_numbers = #tpu.dot_dimension_numbers<[1], [0], [0], [1], [0, 0, 1, 1], [], []>} : vector<4x128xbf16>, vector<128x128xbf16>, vector<4x128xf32> -> vector<4x128xf32>
    %167 = arith.addf %2, %166 : vector<4x128xf32>
    %c0_52 = arith.constant 0 : index
    %c0_53 = arith.constant 0 : index
    %168 = vector.load %arg11[%c0_52, %c0_53] : memref<1x128xf32, #tpu.memory_space<vmem>>, vector<1x128xf32>
    %169 = vector.broadcast %168 : vector<1x128xf32> to vector<4x128xf32>
    %170 = arith.addf %167, %169 : vector<4x128xf32>
    %c0_54 = arith.constant 0 : index
    %c0_55 = arith.constant 0 : index
    %171 = vector.load %arg12[%c0_54, %c0_55] : memref<1x128xf32, #tpu.memory_space<vmem>>, vector<1x128xf32>
    %c0_56 = arith.constant 0 : index
    %c0_57 = arith.constant 0 : index
    %172 = vector.load %arg13[%c0_56, %c0_57] : memref<1x128xf32, #tpu.memory_space<vmem>>, vector<1x128xf32>
    %cst_58 = arith.constant dense<0.000000e+00> : vector<4xf32>
    %173 = vector.multi_reduction <add>, %170, %cst_58 [1] : vector<4x128xf32> to vector<4xf32>
    %174 = vector.shape_cast %173 : vector<4xf32> to vector<4x1xf32>
    %cst_59 = arith.constant 1.562500e-02 : f32
    %175 = vector.broadcast %cst_59 : f32 to vector<4x1xf32>
    %176 = arith.mulf %174, %175 : vector<4x1xf32>
    %177 = vector.broadcast %176 : vector<4x1xf32> to vector<4x128xf32>
    %178 = arith.subf %170, %177 : vector<4x128xf32>
    %179 = vector.broadcast %7 : vector<1x128xf32> to vector<4x128xf32>
    %180 = arith.mulf %178, %179 : vector<4x128xf32>
    %181 = arith.mulf %180, %180 : vector<4x128xf32>
    %cst_60 = arith.constant dense<0.000000e+00> : vector<4xf32>
    %182 = vector.multi_reduction <add>, %181, %cst_60 [1] : vector<4x128xf32> to vector<4xf32>
    %183 = vector.shape_cast %182 : vector<4xf32> to vector<4x1xf32>
    %cst_61 = arith.constant 1.562500e-02 : f32
    %184 = vector.broadcast %cst_61 : f32 to vector<4x1xf32>
    %185 = arith.mulf %183, %184 : vector<4x1xf32>
    %cst_62 = arith.constant 9.99999974E-6 : f32
    %186 = vector.broadcast %cst_62 : f32 to vector<4x1xf32>
    %187 = arith.addf %185, %186 : vector<4x1xf32>
    %188 = math.rsqrt %187 : vector<4x1xf32>
    %189 = vector.broadcast %188 : vector<4x1xf32> to vector<4x128xf32>
    %190 = arith.mulf %180, %189 : vector<4x128xf32>
    %191 = vector.broadcast %171 : vector<1x128xf32> to vector<4x128xf32>
    %192 = arith.mulf %190, %191 : vector<4x128xf32>
    %193 = vector.broadcast %172 : vector<1x128xf32> to vector<4x128xf32>
    %194 = arith.addf %192, %193 : vector<4x128xf32>
    %195 = arith.truncf %194 : vector<4x128xf32> to vector<4x128xbf16>
    %c0_63 = arith.constant 0 : index
    %c0_64 = arith.constant 0 : index
    %196 = vector.load %arg14[%c0_63, %c0_64] : memref<128x256xbf16, #tpu.memory_space<vmem>>, vector<128x256xbf16>
    %cst_65 = arith.constant dense<0.000000e+00> : vector<4x256xf32>
    %197 = tpu.matmul %195, %196, %cst_65 {dimension_numbers = #tpu.dot_dimension_numbers<[1], [0], [0], [1], [0, 0, 1, 1], [], []>} : vector<4x128xbf16>, vector<128x256xbf16>, vector<4x256xf32> -> vector<4x256xf32>
    %c0_66 = arith.constant 0 : index
    %c0_67 = arith.constant 0 : index
    %198 = vector.load %arg15[%c0_66, %c0_67] : memref<1x256xf32, #tpu.memory_space<vmem>>, vector<1x256xf32>
    %199 = vector.broadcast %198 : vector<1x256xf32> to vector<4x256xf32>
    %200 = arith.addf %197, %199 : vector<4x256xf32>
    %cst_68 = arith.constant 5.000000e-01 : f32
    %201 = vector.broadcast %cst_68 : f32 to vector<4x256xf32>
    %202 = arith.mulf %201, %200 : vector<4x256xf32>
    %cst_69 = arith.constant 0.707106769 : f32
    %203 = vector.broadcast %cst_69 : f32 to vector<4x256xf32>
    %204 = arith.mulf %200, %203 : vector<4x256xf32>
    %cst_70 = arith.constant 0.000000e+00 : f32
    %205 = vector.broadcast %cst_70 : f32 to vector<4x256xf32>
    %206 = arith.cmpf oge, %204, %205 : vector<4x256xf32>
    %cst_71 = arith.constant 1.000000e+00 : f32
    %cst_72 = arith.constant -1.000000e+00 : f32
    %207 = vector.broadcast %cst_71 : f32 to vector<4x256xf32>
    %208 = vector.broadcast %cst_72 : f32 to vector<4x256xf32>
    %209 = arith.select %206, %207, %208 : vector<4x256xi1>, vector<4x256xf32>
    %210 = math.absf %204 : vector<4x256xf32>
    %cst_73 = arith.constant 0.327591091 : f32
    %211 = vector.broadcast %cst_73 : f32 to vector<4x256xf32>
    %212 = arith.mulf %211, %210 : vector<4x256xf32>
    %cst_74 = arith.constant 1.000000e+00 : f32
    %213 = vector.broadcast %cst_74 : f32 to vector<4x256xf32>
    %214 = arith.addf %213, %212 : vector<4x256xf32>
    %215 = tpu.reciprocal %214 : vector<4x256xf32> -> vector<4x256xf32>
    %cst_75 = arith.constant 1.06140542 : f32
    %216 = vector.broadcast %cst_75 : f32 to vector<4x256xf32>
    %217 = arith.mulf %216, %215 : vector<4x256xf32>
    %cst_76 = arith.constant -1.45315206 : f32
    %218 = vector.broadcast %cst_76 : f32 to vector<4x256xf32>
    %219 = arith.addf %217, %218 : vector<4x256xf32>
    %220 = arith.mulf %219, %215 : vector<4x256xf32>
    %cst_77 = arith.constant 1.42141378 : f32
    %221 = vector.broadcast %cst_77 : f32 to vector<4x256xf32>
    %222 = arith.addf %220, %221 : vector<4x256xf32>
    %223 = arith.mulf %222, %215 : vector<4x256xf32>
    %cst_78 = arith.constant -0.284496725 : f32
    %224 = vector.broadcast %cst_78 : f32 to vector<4x256xf32>
    %225 = arith.addf %223, %224 : vector<4x256xf32>
    %226 = arith.mulf %225, %215 : vector<4x256xf32>
    %cst_79 = arith.constant 0.254829586 : f32
    %227 = vector.broadcast %cst_79 : f32 to vector<4x256xf32>
    %228 = arith.addf %226, %227 : vector<4x256xf32>
    %229 = arith.mulf %228, %215 : vector<4x256xf32>
    %cst_80 = arith.constant 0.000000e+00 : f32
    %230 = vector.broadcast %cst_80 : f32 to vector<4x256xf32>
    %231 = arith.subf %230, %210 : vector<4x256xf32>
    %232 = arith.mulf %231, %210 : vector<4x256xf32>
    %233 = math.exp %232 : vector<4x256xf32>
    %234 = arith.mulf %229, %233 : vector<4x256xf32>
    %cst_81 = arith.constant 1.000000e+00 : f32
    %235 = vector.broadcast %cst_81 : f32 to vector<4x256xf32>
    %236 = arith.subf %235, %234 : vector<4x256xf32>
    %237 = arith.mulf %209, %236 : vector<4x256xf32>
    %cst_82 = arith.constant 1.000000e+00 : f32
    %238 = vector.broadcast %cst_82 : f32 to vector<4x256xf32>
    %239 = arith.addf %238, %237 : vector<4x256xf32>
    %240 = arith.mulf %202, %239 : vector<4x256xf32>
    %241 = arith.truncf %240 : vector<4x256xf32> to vector<4x256xbf16>
    %c0_83 = arith.constant 0 : index
    %c0_84 = arith.constant 0 : index
    %242 = vector.load %arg16[%c0_83, %c0_84] : memref<256x128xbf16, #tpu.memory_space<vmem>>, vector<256x128xbf16>
    %cst_85 = arith.constant dense<0.000000e+00> : vector<4x128xf32>
    %243 = tpu.matmul %241, %242, %cst_85 {dimension_numbers = #tpu.dot_dimension_numbers<[1], [0], [0], [1], [0, 0, 1, 1], [], []>} : vector<4x256xbf16>, vector<256x128xbf16>, vector<4x128xf32> -> vector<4x128xf32>
    %244 = arith.addf %170, %243 : vector<4x128xf32>
    %c0_86 = arith.constant 0 : index
    %c0_87 = arith.constant 0 : index
    %245 = vector.load %arg17[%c0_86, %c0_87] : memref<1x128xf32, #tpu.memory_space<vmem>>, vector<1x128xf32>
    %246 = vector.broadcast %245 : vector<1x128xf32> to vector<4x128xf32>
    %247 = arith.addf %244, %246 : vector<4x128xf32>
    %248 = arith.truncf %247 : vector<4x128xf32> to vector<4x128xbf16>
    %c0_88 = arith.constant 0 : index
    %c0_89 = arith.constant 0 : index
    %c0_90 = arith.constant 0 : index
    %249 = vector.load %arg18[%c0_88, %c0_89, %c0_90] : memref<1x4x128xbf16, #tpu.memory_space<vmem>>, vector<1x4x128xbf16>
    %250 = vector.shape_cast %249 : vector<1x4x128xbf16> to vector<4x128xbf16>
    %251 = vector.shape_cast %248 : vector<4x128xbf16> to vector<1x4x128xbf16>
    tpu.vector_store %arg18[%c0_88, %c0_89, %c0_90], %251 {strides = array<i32>} : memref<1x4x128xbf16, #tpu.memory_space<vmem>>, vector<1x4x128xbf16>,
    return
  }
  func.func @transform_0(%arg0: i32) -> (i32, i32, i32) {
    %c0_i32 = arith.constant 0 : i32
    %c0_i32_0 = arith.constant 0 : i32
    %c0_i32_1 = arith.constant 0 : i32
    return %arg0, %c0_i32, %c0_i32_0 : i32, i32, i32
  }
  func.func @transform_1(%arg0: i32) -> (i32, i32) {
    %c0_i32 = arith.constant 0 : i32
    %c0_i32_0 = arith.constant 0 : i32
    %c0_i32_1 = arith.constant 0 : i32
    return %c0_i32, %c0_i32_0 : i32, i32
  }
  func.func @transform_2(%arg0: i32) -> (i32, i32) {
    %c0_i32 = arith.constant 0 : i32
    %c0_i32_0 = arith.constant 0 : i32
    %c0_i32_1 = arith.constant 0 : i32
    return %c0_i32, %c0_i32_0 : i32, i32
  }
  func.func @transform_3(%arg0: i32) -> (i32, i32) {
    %c0_i32 = arith.constant 0 : i32
    %c0_i32_0 = arith.constant 0 : i32
    %c0_i32_1 = arith.constant 0 : i32
    return %c0_i32, %c0_i32_0 : i32, i32
  }
  func.func @transform_4(%arg0: i32) -> (i32, i32) {
    %c0_i32 = arith.constant 0 : i32
    %c0_i32_0 = arith.constant 0 : i32
    %c0_i32_1 = arith.constant 0 : i32
    return %c0_i32, %c0_i32_0 : i32, i32
  }
  func.func @transform_5(%arg0: i32) -> (i32, i32) {
    %c0_i32 = arith.constant 0 : i32
    %c0_i32_0 = arith.constant 0 : i32
    %c0_i32_1 = arith.constant 0 : i32
    return %c0_i32, %c0_i32_0 : i32, i32
  }
  func.func @transform_6(%arg0: i32) -> (i32, i32) {
    %c0_i32 = arith.constant 0 : i32
    %c0_i32_0 = arith.constant 0 : i32
    %c0_i32_1 = arith.constant 0 : i32
    return %c0_i32, %c0_i32_0 : i32, i32
  }
  func.func @transform_7(%arg0: i32) -> (i32, i32) {
    %c0_i32 = arith.constant 0 : i32
    %c0_i32_0 = arith.constant 0 : i32
    %c0_i32_1 = arith.constant 0 : i32
    return %c0_i32, %c0_i32_0 : i32, i32
  }
  func.func @transform_8(%arg0: i32) -> (i32, i32) {
    %c0_i32 = arith.constant 0 : i32
    %c0_i32_0 = arith.constant 0 : i32
    %c0_i32_1 = arith.constant 0 : i32
    return %c0_i32, %c0_i32_0 : i32, i32
  }
  func.func @transform_9(%arg0: i32) -> (i32, i32) {
    %c0_i32 = arith.constant 0 : i32
    %c0_i32_0 = arith.constant 0 : i32
    %c0_i32_1 = arith.constant 0 : i32
    return %c0_i32, %c0_i32_0 : i32, i32
  }
  func.func @transform_10(%arg0: i32) -> (i32, i32) {
    %c0_i32 = arith.constant 0 : i32
    %c0_i32_0 = arith.constant 0 : i32
    %c0_i32_1 = arith.constant 0 : i32
    return %c0_i32, %c0_i32_0 : i32, i32
  }
  func.func @transform_11(%arg0: i32) -> (i32, i32) {
    %c0_i32 = arith.constant 0 : i32
    %c0_i32_0 = arith.constant 0 : i32
    %c0_i32_1 = arith.constant 0 : i32
    return %c0_i32, %c0_i32_0 : i32, i32
  }
  func.func @transform_12(%arg0: i32) -> (i32, i32) {
    %c0_i32 = arith.constant 0 : i32
    %c0_i32_0 = arith.constant 0 : i32
    %c0_i32_1 = arith.constant 0 : i32
    return %c0_i32, %c0_i32_0 : i32, i32
  }
  func.func @transform_13(%arg0: i32) -> (i32, i32) {
    %c0_i32 = arith.constant 0 : i32
    %c0_i32_0 = arith.constant 0 : i32
    %c0_i32_1 = arith.constant 0 : i32
    return %c0_i32, %c0_i32_0 : i32, i32
  }
  func.func @transform_14(%arg0: i32) -> (i32, i32) {
    %c0_i32 = arith.constant 0 : i32
    %c0_i32_0 = arith.constant 0 : i32
    %c0_i32_1 = arith.constant 0 : i32
    return %c0_i32, %c0_i32_0 : i32, i32
  }
  func.func @transform_15(%arg0: i32) -> (i32, i32) {
    %c0_i32 = arith.constant 0 : i32
    %c0_i32_0 = arith.constant 0 : i32
    %c0_i32_1 = arith.constant 0 : i32
    return %c0_i32, %c0_i32_0 : i32, i32
  }
  func.func @transform_16(%arg0: i32) -> (i32, i32) {
    %c0_i32 = arith.constant 0 : i32
    %c0_i32_0 = arith.constant 0 : i32
    %c0_i32_1 = arith.constant 0 : i32
    return %c0_i32, %c0_i32_0 : i32, i32
  }
  func.func @transform_17(%arg0: i32) -> (i32, i32, i32) {
    %c0_i32 = arith.constant 0 : i32
    %c0_i32_0 = arith.constant 0 : i32
    %c0_i32_1 = arith.constant 0 : i32
    return %arg0, %c0_i32, %c0_i32_0 : i32, i32, i32
  }
}

module attributes {stable_mosaic.version = 11 : i64} {
  func.func @kernel(%arg0: i32, %arg1: memref<32x128xbf16, #tpu.memory_space<vmem>>, %arg2: memref<128x128xbf16, #tpu.memory_space<vmem>>, %arg3: memref<1x128xf32, #tpu.memory_space<vmem>>, %arg4: memref<32x128xbf16, #tpu.memory_space<vmem>>) attributes {dimension_semantics = [#tpu.dimension_semantics<arbitrary>], iteration_bounds = array<i64: 1>, scalar_prefetch = 0 : i64, scratch_operands = 0 : i64, tpu.core_type = #tpu.core_type<tc>, window_params = [{transform_indices = @transform_0, window_bounds = array<i64: 32, 128>}, {pipeline_mode = #tpu.pipeline_mode<synchronous>, transform_indices = @transform_1, window_bounds = array<i64: 128, 128>}, {pipeline_mode = #tpu.pipeline_mode<synchronous>, transform_indices = @transform_2, window_bounds = array<i64: 1, 128>}, {transform_indices = @transform_3, window_bounds = array<i64: 32, 128>}]} {
    %c0 = arith.constant 0 : index
    %c0_0 = arith.constant 0 : index
    %0 = vector.load %arg1[%c0, %c0_0] : memref<32x128xbf16, #tpu.memory_space<vmem>>, vector<32x128xbf16>
    %c0_1 = arith.constant 0 : index
    %c0_2 = arith.constant 0 : index
    %1 = vector.load %arg2[%c0_1, %c0_2] : memref<128x128xbf16, #tpu.memory_space<vmem>>, vector<128x128xbf16>
    %cst = arith.constant dense<0.000000e+00> : vector<32x128xf32>
    %2 = tpu.matmul %0, %1, %cst {dimension_numbers = #tpu.dot_dimension_numbers<[1], [0], [0], [1], [0, 0, 1, 1], [], []>} : vector<32x128xbf16>, vector<128x128xbf16>, vector<32x128xf32> -> vector<32x128xf32>
    %c0_3 = arith.constant 0 : index
    %c0_4 = arith.constant 0 : index
    %3 = vector.load %arg3[%c0_3, %c0_4] : memref<1x128xf32, #tpu.memory_space<vmem>>, vector<1x128xf32>
    %4 = vector.broadcast %3 : vector<1x128xf32> to vector<32x128xf32>
    %5 = arith.addf %2, %4 : vector<32x128xf32>
    %6 = arith.truncf %5 : vector<32x128xf32> to vector<32x128xbf16>
    %c0_5 = arith.constant 0 : index
    %c0_6 = arith.constant 0 : index
    %7 = vector.load %arg4[%c0_5, %c0_6] : memref<32x128xbf16, #tpu.memory_space<vmem>>, vector<32x128xbf16>
    tpu.vector_store %arg4[%c0_5, %c0_6], %6 {strides = array<i32>} : memref<32x128xbf16, #tpu.memory_space<vmem>>, vector<32x128xbf16>,
    return
  }
  func.func @transform_0(%arg0: i32) -> (i32, i32) {
    %c0_i32 = arith.constant 0 : i32
    %c0_i32_0 = arith.constant 0 : i32
    return %arg0, %c0_i32 : i32, i32
  }
  func.func @transform_1(%arg0: i32) -> (i32, i32) {
    %c0_i32 = arith.constant 0 : i32
    %c0_i32_0 = arith.constant 0 : i32
    %c0_i32_1 = arith.constant 0 : i32
    return %c0_i32, %c0_i32_0 : i32, i32
  }
  func.func @transform_2(%arg0: i32) -> (i32, i32) {
    %c0_i32 = arith.constant 0 : i32
    %c0_i32_0 = arith.constant 0 : i32
    %c0_i32_1 = arith.constant 0 : i32
    return %c0_i32, %c0_i32_0 : i32, i32
  }
  func.func @transform_3(%arg0: i32) -> (i32, i32) {
    %c0_i32 = arith.constant 0 : i32
    %c0_i32_0 = arith.constant 0 : i32
    return %arg0, %c0_i32 : i32, i32
  }
}

module attributes {stable_mosaic.version = 11 : i64} {
  func.func @kernel(%arg0: i32, %arg1: memref<8x128xbf16, #tpu.memory_space<vmem>>, %arg2: memref<128x128xbf16, #tpu.memory_space<vmem>>, %arg3: memref<1x128xf32, #tpu.memory_space<vmem>>, %arg4: memref<8x128xbf16, #tpu.memory_space<vmem>>) attributes {dimension_semantics = [#tpu.dimension_semantics<arbitrary>], iteration_bounds = array<i64: 1>, scalar_prefetch = 0 : i64, scratch_operands = 0 : i64, tpu.core_type = #tpu.core_type<tc>, window_params = [{transform_indices = @transform_0, window_bounds = array<i64: 8, 128>}, {pipeline_mode = #tpu.pipeline_mode<synchronous>, transform_indices = @transform_1, window_bounds = array<i64: 128, 128>}, {pipeline_mode = #tpu.pipeline_mode<synchronous>, transform_indices = @transform_2, window_bounds = array<i64: 1, 128>}, {transform_indices = @transform_3, window_bounds = array<i64: 8, 128>}]} {
    %c0 = arith.constant 0 : index
    %c0_0 = arith.constant 0 : index
    %0 = vector.load %arg1[%c0, %c0_0] : memref<8x128xbf16, #tpu.memory_space<vmem>>, vector<8x128xbf16>
    %c0_1 = arith.constant 0 : index
    %c0_2 = arith.constant 0 : index
    %1 = vector.load %arg2[%c0_1, %c0_2] : memref<128x128xbf16, #tpu.memory_space<vmem>>, vector<128x128xbf16>
    %cst = arith.constant dense<0.000000e+00> : vector<8x128xf32>
    %2 = tpu.matmul %0, %1, %cst {dimension_numbers = #tpu.dot_dimension_numbers<[1], [0], [0], [1], [0, 0, 1, 1], [], []>} : vector<8x128xbf16>, vector<128x128xbf16>, vector<8x128xf32> -> vector<8x128xf32>
    %c0_3 = arith.constant 0 : index
    %c0_4 = arith.constant 0 : index
    %3 = vector.load %arg3[%c0_3, %c0_4] : memref<1x128xf32, #tpu.memory_space<vmem>>, vector<1x128xf32>
    %4 = vector.broadcast %3 : vector<1x128xf32> to vector<8x128xf32>
    %5 = arith.addf %2, %4 : vector<8x128xf32>
    %6 = arith.truncf %5 : vector<8x128xf32> to vector<8x128xbf16>
    %c0_5 = arith.constant 0 : index
    %c0_6 = arith.constant 0 : index
    %7 = vector.load %arg4[%c0_5, %c0_6] : memref<8x128xbf16, #tpu.memory_space<vmem>>, vector<8x128xbf16>
    tpu.vector_store %arg4[%c0_5, %c0_6], %6 {strides = array<i32>} : memref<8x128xbf16, #tpu.memory_space<vmem>>, vector<8x128xbf16>,
    return
  }
  func.func @transform_0(%arg0: i32) -> (i32, i32) {
    %c0_i32 = arith.constant 0 : i32
    %c0_i32_0 = arith.constant 0 : i32
    return %arg0, %c0_i32 : i32, i32
  }
  func.func @transform_1(%arg0: i32) -> (i32, i32) {
    %c0_i32 = arith.constant 0 : i32
    %c0_i32_0 = arith.constant 0 : i32
    %c0_i32_1 = arith.constant 0 : i32
    return %c0_i32, %c0_i32_0 : i32, i32
  }
  func.func @transform_2(%arg0: i32) -> (i32, i32) {
    %c0_i32 = arith.constant 0 : i32
    %c0_i32_0 = arith.constant 0 : i32
    %c0_i32_1 = arith.constant 0 : i32
    return %c0_i32, %c0_i32_0 : i32, i32
  }
  func.func @transform_3(%arg0: i32) -> (i32, i32) {
    %c0_i32 = arith.constant 0 : i32
    %c0_i32_0 = arith.constant 0 : i32
    return %arg0, %c0_i32 : i32, i32
  }
}

module attributes {stable_mosaic.version = 11 : i64} {
  func.func @kernel(%arg0: i32, %arg1: memref<32x128xf32, #tpu.memory_space<vmem>>, %arg2: memref<32x128xbf16, #tpu.memory_space<vmem>>, %arg3: memref<128x128xbf16, #tpu.memory_space<vmem>>, %arg4: memref<1x128xf32, #tpu.memory_space<vmem>>, %arg5: memref<32x1xf32, #tpu.memory_space<vmem>>, %arg6: memref<1x1xf32, #tpu.memory_space<smem>>) attributes {dimension_semantics = [#tpu.dimension_semantics<arbitrary>], iteration_bounds = array<i64: 1>, scalar_prefetch = 0 : i64, scratch_operands = 0 : i64, tpu.core_type = #tpu.core_type<tc>, window_params = [{pipeline_mode = #tpu.pipeline_mode<synchronous>, transform_indices = @transform_0, window_bounds = array<i64: 32, 128>}, {pipeline_mode = #tpu.pipeline_mode<synchronous>, transform_indices = @transform_1, window_bounds = array<i64: 32, 128>}, {pipeline_mode = #tpu.pipeline_mode<synchronous>, transform_indices = @transform_2, window_bounds = array<i64: 128, 128>}, {pipeline_mode = #tpu.pipeline_mode<synchronous>, transform_indices = @transform_3, window_bounds = array<i64: 1, 128>}, {pipeline_mode = #tpu.pipeline_mode<synchronous>, transform_indices = @transform_4, window_bounds = array<i64: 32, 1>}, {transform_indices = @transform_5, window_bounds = array<i64: 1, 1>}]} {
    %c0 = arith.constant 0 : index
    %c0_0 = arith.constant 0 : index
    %0 = vector.load %arg2[%c0, %c0_0] : memref<32x128xbf16, #tpu.memory_space<vmem>>, vector<32x128xbf16>
    %c0_1 = arith.constant 0 : index
    %c0_2 = arith.constant 0 : index
    %1 = vector.load %arg3[%c0_1, %c0_2] : memref<128x128xbf16, #tpu.memory_space<vmem>>, vector<128x128xbf16>
    %cst = arith.constant dense<0.000000e+00> : vector<32x128xf32>
    %2 = tpu.matmul %0, %1, %cst {dimension_numbers = #tpu.dot_dimension_numbers<[1], [0], [0], [1], [0, 0, 1, 1], [], []>} : vector<32x128xbf16>, vector<128x128xbf16>, vector<32x128xf32> -> vector<32x128xf32>
    %c0_3 = arith.constant 0 : index
    %c0_4 = arith.constant 0 : index
    %3 = vector.load %arg4[%c0_3, %c0_4] : memref<1x128xf32, #tpu.memory_space<vmem>>, vector<1x128xf32>
    %4 = vector.broadcast %3 : vector<1x128xf32> to vector<32x128xf32>
    %5 = arith.addf %2, %4 : vector<32x128xf32>
    %c0_5 = arith.constant 0 : index
    %c0_6 = arith.constant 0 : index
    %6 = vector.load %arg1[%c0_5, %c0_6] : memref<32x128xf32, #tpu.memory_space<vmem>>, vector<32x128xf32>
    %7 = arith.subf %6, %5 : vector<32x128xf32>
    %8 = arith.mulf %7, %7 : vector<32x128xf32>
    %cst_7 = arith.constant dense<0.000000e+00> : vector<32xf32>
    %9 = vector.multi_reduction <add>, %8, %cst_7 [1] : vector<32x128xf32> to vector<32xf32>
    %10 = vector.shape_cast %9 : vector<32xf32> to vector<32x1xf32>
    %cst_8 = arith.constant 0.020833334 : f32
    %11 = vector.broadcast %cst_8 : f32 to vector<32x1xf32>
    %12 = arith.mulf %10, %11 : vector<32x1xf32>
    %c0_9 = arith.constant 0 : index
    %c0_10 = arith.constant 0 : index
    %13 = vector.load %arg5[%c0_9, %c0_10] : memref<32x1xf32, #tpu.memory_space<vmem>>, vector<32x1xf32>
    %14 = arith.mulf %12, %13 : vector<32x1xf32>
    %15 = vector.shape_cast %14 : vector<32x1xf32> to vector<1x32x1xf32>
    %cst_11 = arith.constant dense<0.000000e+00> : vector<1xf32>
    %16 = vector.multi_reduction <add>, %15, %cst_11 [1, 2] : vector<1x32x1xf32> to vector<1xf32>
    %17 = vector.shape_cast %16 : vector<1xf32> to vector<1x1x1xf32>
    %18 = vector.extract %17[0, 0, 0] : f32 from vector<1x1x1xf32>
    %c0_12 = arith.constant 0 : index
    %c0_13 = arith.constant 0 : index
    %19 = vector.load %arg5[%c0_12, %c0_13] : memref<32x1xf32, #tpu.memory_space<vmem>>, vector<32x1xf32>
    %20 = vector.shape_cast %19 : vector<32x1xf32> to vector<1x32x1xf32>
    %cst_14 = arith.constant dense<0.000000e+00> : vector<1xf32>
    %21 = vector.multi_reduction <add>, %20, %cst_14 [1, 2] : vector<1x32x1xf32> to vector<1xf32>
    %22 = vector.shape_cast %21 : vector<1xf32> to vector<1x1x1xf32>
    %23 = vector.extract %22[0, 0, 0] : f32 from vector<1x1x1xf32>
    %24 = arith.divf %18, %23 : f32
    %c0_15 = arith.constant 0 : index
    %c0_16 = arith.constant 0 : index
    %25 = memref.load %arg6[%c0_15, %c0_16] : memref<1x1xf32, #tpu.memory_space<smem>>
    memref.store %24, %arg6[%c0_15, %c0_16] : memref<1x1xf32, #tpu.memory_space<smem>>
    return
  }
  func.func @transform_0(%arg0: i32) -> (i32, i32) {
    %c0_i32 = arith.constant 0 : i32
    %c0_i32_0 = arith.constant 0 : i32
    %c0_i32_1 = arith.constant 0 : i32
    return %c0_i32, %c0_i32_0 : i32, i32
  }
  func.func @transform_1(%arg0: i32) -> (i32, i32) {
    %c0_i32 = arith.constant 0 : i32
    %c0_i32_0 = arith.constant 0 : i32
    %c0_i32_1 = arith.constant 0 : i32
    return %c0_i32, %c0_i32_0 : i32, i32
  }
  func.func @transform_2(%arg0: i32) -> (i32, i32) {
    %c0_i32 = arith.constant 0 : i32
    %c0_i32_0 = arith.constant 0 : i32
    %c0_i32_1 = arith.constant 0 : i32
    return %c0_i32, %c0_i32_0 : i32, i32
  }
  func.func @transform_3(%arg0: i32) -> (i32, i32) {
    %c0_i32 = arith.constant 0 : i32
    %c0_i32_0 = arith.constant 0 : i32
    %c0_i32_1 = arith.constant 0 : i32
    return %c0_i32, %c0_i32_0 : i32, i32
  }
  func.func @transform_4(%arg0: i32) -> (i32, i32) {
    %c0_i32 = arith.constant 0 : i32
    %c0_i32_0 = arith.constant 0 : i32
    %c0_i32_1 = arith.constant 0 : i32
    return %c0_i32, %c0_i32_0 : i32, i32
  }
  func.func @transform_5(%arg0: i32) -> (i32, i32) {
    %c0_i32 = arith.constant 0 : i32
    %c0_i32_0 = arith.constant 0 : i32
    %c0_i32_1 = arith.constant 0 : i32
    return %c0_i32, %c0_i32_0 : i32, i32
  }
}

module attributes {stable_mosaic.version = 11 : i64} {
  func.func @kernel(%arg0: i32, %arg1: memref<1x16x128xbf16, #tpu.memory_space<vmem>>, %arg2: memref<1x128xf32, #tpu.memory_space<vmem>>, %arg3: memref<1x128xf32, #tpu.memory_space<vmem>>, %arg4: memref<128x128xbf16, #tpu.memory_space<vmem>>, %arg5: memref<1x128xf32, #tpu.memory_space<vmem>>, %arg6: memref<128x128xbf16, #tpu.memory_space<vmem>>, %arg7: memref<1x128xf32, #tpu.memory_space<vmem>>, %arg8: memref<128x128xbf16, #tpu.memory_space<vmem>>, %arg9: memref<1x128xf32, #tpu.memory_space<vmem>>, %arg10: memref<128x128xbf16, #tpu.memory_space<vmem>>, %arg11: memref<1x128xf32, #tpu.memory_space<vmem>>, %arg12: memref<1x128xf32, #tpu.memory_space<vmem>>, %arg13: memref<1x128xf32, #tpu.memory_space<vmem>>, %arg14: memref<128x128xbf16, #tpu.memory_space<vmem>>, %arg15: memref<1x128xf32, #tpu.memory_space<vmem>>, %arg16: memref<128x128xbf16, #tpu.memory_space<vmem>>, %arg17: memref<1x128xf32, #tpu.memory_space<vmem>>, %arg18: memref<1x16x128xbf16, #tpu.memory_space<vmem>>) attributes {dimension_semantics = [#tpu.dimension_semantics<parallel>], iteration_bounds = array<i64: 2>, scalar_prefetch = 0 : i64, scratch_operands = 0 : i64, tpu.core_type = #tpu.core_type<tc>, window_params = [{transform_indices = @transform_0, window_bounds = array<i64: 1, 16, 128>}, {pipeline_mode = #tpu.pipeline_mode<synchronous>, transform_indices = @transform_1, window_bounds = array<i64: 1, 128>}, {pipeline_mode = #tpu.pipeline_mode<synchronous>, transform_indices = @transform_2, window_bounds = array<i64: 1, 128>}, {pipeline_mode = #tpu.pipeline_mode<synchronous>, transform_indices = @transform_3, window_bounds = array<i64: 128, 128>}, {pipeline_mode = #tpu.pipeline_mode<synchronous>, transform_indices = @transform_4, window_bounds = array<i64: 1, 128>}, {pipeline_mode = #tpu.pipeline_mode<synchronous>, transform_indices = @transform_5, window_bounds = array<i64: 128, 128>}, {pipeline_mode = #tpu.pipeline_mode<synchronous>, transform_indices = @transform_6, window_bounds = array<i64: 1, 128>}, {pipeline_mode = #tpu.pipeline_mode<synchronous>, transform_indices = @transform_7, window_bounds = array<i64: 128, 128>}, {pipeline_mode = #tpu.pipeline_mode<synchronous>, transform_indices = @transform_8, window_bounds = array<i64: 1, 128>}, {pipeline_mode = #tpu.pipeline_mode<synchronous>, transform_indices = @transform_9, window_bounds = array<i64: 128, 128>}, {pipeline_mode = #tpu.pipeline_mode<synchronous>, transform_indices = @transform_10, window_bounds = array<i64: 1, 128>}, {pipeline_mode = #tpu.pipeline_mode<synchronous>, transform_indices = @transform_11, window_bounds = array<i64: 1, 128>}, {pipeline_mode = #tpu.pipeline_mode<synchronous>, transform_indices = @transform_12, window_bounds = array<i64: 1, 128>}, {pipeline_mode = #tpu.pipeline_mode<synchronous>, transform_indices = @transform_13, window_bounds = array<i64: 128, 128>}, {pipeline_mode = #tpu.pipeline_mode<synchronous>, transform_indices = @transform_14, window_bounds = array<i64: 1, 128>}, {pipeline_mode = #tpu.pipeline_mode<synchronous>, transform_indices = @transform_15, window_bounds = array<i64: 128, 128>}, {pipeline_mode = #tpu.pipeline_mode<synchronous>, transform_indices = @transform_16, window_bounds = array<i64: 1, 128>}, {transform_indices = @transform_17, window_bounds = array<i64: 1, 16, 128>}]} {
    %c0 = arith.constant 0 : index
    %c0_0 = arith.constant 0 : index
    %c0_1 = arith.constant 0 : index
    %0 = vector.load %arg1[%c0, %c0_0, %c0_1] : memref<1x16x128xbf16, #tpu.memory_space<vmem>>, vector<1x16x128xbf16>
    %1 = vector.shape_cast %0 : vector<1x16x128xbf16> to vector<16x128xbf16>
    %2 = arith.extf %1 : vector<16x128xbf16> to vector<16x128xf32>
    %3 = tpu.iota {dimensions = array<i32: 1>} : vector<1x128xi32>
    %c32_i32 = arith.constant 32 : i32
    %4 = vector.broadcast %c32_i32 : i32 to vector<1x128xi32>
    %5 = arith.cmpi slt, %3, %4 : vector<1x128xi32>
    %6 = arith.extui %5 : vector<1x128xi1> to vector<1x128xi32>
    %7 = arith.sitofp %6 : vector<1x128xi32> to vector<1x128xf32>
    %c0_2 = arith.constant 0 : index
    %c0_3 = arith.constant 0 : index
    %8 = vector.load %arg2[%c0_2, %c0_3] : memref<1x128xf32, #tpu.memory_space<vmem>>, vector<1x128xf32>
    %c0_4 = arith.constant 0 : index
    %c0_5 = arith.constant 0 : index
    %9 = vector.load %arg3[%c0_4, %c0_5] : memref<1x128xf32, #tpu.memory_space<vmem>>, vector<1x128xf32>
    %cst = arith.constant dense<0.000000e+00> : vector<16xf32>
    %10 = vector.multi_reduction <add>, %2, %cst [1] : vector<16x128xf32> to vector<16xf32>
    %11 = vector.shape_cast %10 : vector<16xf32> to vector<16x1xf32>
    %cst_6 = arith.constant 3.125000e-02 : f32
    %12 = vector.broadcast %cst_6 : f32 to vector<16x1xf32>
    %13 = arith.mulf %11, %12 : vector<16x1xf32>
    %14 = vector.broadcast %13 : vector<16x1xf32> to vector<16x128xf32>
    %15 = arith.subf %2, %14 : vector<16x128xf32>
    %16 = vector.broadcast %7 : vector<1x128xf32> to vector<16x128xf32>
    %17 = arith.mulf %15, %16 : vector<16x128xf32>
    %18 = arith.mulf %17, %17 : vector<16x128xf32>
    %cst_7 = arith.constant dense<0.000000e+00> : vector<16xf32>
    %19 = vector.multi_reduction <add>, %18, %cst_7 [1] : vector<16x128xf32> to vector<16xf32>
    %20 = vector.shape_cast %19 : vector<16xf32> to vector<16x1xf32>
    %cst_8 = arith.constant 3.125000e-02 : f32
    %21 = vector.broadcast %cst_8 : f32 to vector<16x1xf32>
    %22 = arith.mulf %20, %21 : vector<16x1xf32>
    %cst_9 = arith.constant 9.99999974E-6 : f32
    %23 = vector.broadcast %cst_9 : f32 to vector<16x1xf32>
    %24 = arith.addf %22, %23 : vector<16x1xf32>
    %25 = math.rsqrt %24 : vector<16x1xf32>
    %26 = vector.broadcast %25 : vector<16x1xf32> to vector<16x128xf32>
    %27 = arith.mulf %17, %26 : vector<16x128xf32>
    %28 = vector.broadcast %8 : vector<1x128xf32> to vector<16x128xf32>
    %29 = arith.mulf %27, %28 : vector<16x128xf32>
    %30 = vector.broadcast %9 : vector<1x128xf32> to vector<16x128xf32>
    %31 = arith.addf %29, %30 : vector<16x128xf32>
    %32 = arith.truncf %31 : vector<16x128xf32> to vector<16x128xbf16>
    %c0_10 = arith.constant 0 : index
    %c0_11 = arith.constant 0 : index
    %33 = vector.load %arg4[%c0_10, %c0_11] : memref<128x128xbf16, #tpu.memory_space<vmem>>, vector<128x128xbf16>
    %cst_12 = arith.constant dense<0.000000e+00> : vector<16x128xf32>
    %34 = tpu.matmul %32, %33, %cst_12 {dimension_numbers = #tpu.dot_dimension_numbers<[1], [0], [0], [1], [0, 0, 1, 1], [], []>} : vector<16x128xbf16>, vector<128x128xbf16>, vector<16x128xf32> -> vector<16x128xf32>
    %c0_13 = arith.constant 0 : index
    %c0_14 = arith.constant 0 : index
    %35 = vector.load %arg5[%c0_13, %c0_14] : memref<1x128xf32, #tpu.memory_space<vmem>>, vector<1x128xf32>
    %36 = vector.broadcast %35 : vector<1x128xf32> to vector<16x128xf32>
    %37 = arith.addf %34, %36 : vector<16x128xf32>
    %c0_15 = arith.constant 0 : index
    %c0_16 = arith.constant 0 : index
    %38 = vector.load %arg6[%c0_15, %c0_16] : memref<128x128xbf16, #tpu.memory_space<vmem>>, vector<128x128xbf16>
    %cst_17 = arith.constant dense<0.000000e+00> : vector<16x128xf32>
    %39 = tpu.matmul %32, %38, %cst_17 {dimension_numbers = #tpu.dot_dimension_numbers<[1], [0], [0], [1], [0, 0, 1, 1], [], []>} : vector<16x128xbf16>, vector<128x128xbf16>, vector<16x128xf32> -> vector<16x128xf32>
    %c0_18 = arith.constant 0 : index
    %c0_19 = arith.constant 0 : index
    %40 = vector.load %arg7[%c0_18, %c0_19] : memref<1x128xf32, #tpu.memory_space<vmem>>, vector<1x128xf32>
    %41 = vector.broadcast %40 : vector<1x128xf32> to vector<16x128xf32>
    %42 = arith.addf %39, %41 : vector<16x128xf32>
    %c0_20 = arith.constant 0 : index
    %c0_21 = arith.constant 0 : index
    %43 = vector.load %arg8[%c0_20, %c0_21] : memref<128x128xbf16, #tpu.memory_space<vmem>>, vector<128x128xbf16>
    %cst_22 = arith.constant dense<0.000000e+00> : vector<16x128xf32>
    %44 = tpu.matmul %32, %43, %cst_22 {dimension_numbers = #tpu.dot_dimension_numbers<[1], [0], [0], [1], [0, 0, 1, 1], [], []>} : vector<16x128xbf16>, vector<128x128xbf16>, vector<16x128xf32> -> vector<16x128xf32>
    %c0_23 = arith.constant 0 : index
    %c0_24 = arith.constant 0 : index
    %45 = vector.load %arg9[%c0_23, %c0_24] : memref<1x128xf32, #tpu.memory_space<vmem>>, vector<1x128xf32>
    %46 = vector.broadcast %45 : vector<1x128xf32> to vector<16x128xf32>
    %47 = arith.addf %44, %46 : vector<16x128xf32>
    %48 = arith.truncf %42 : vector<16x128xf32> to vector<16x128xbf16>
    %c0_i32 = arith.constant 0 : i32
    %49 = vector.broadcast %c0_i32 : i32 to vector<1x128xi32>
    %50 = arith.cmpi sge, %3, %49 : vector<1x128xi32>
    %c8_i32 = arith.constant 8 : i32
    %51 = vector.broadcast %c8_i32 : i32 to vector<1x128xi32>
    %52 = arith.cmpi slt, %3, %51 : vector<1x128xi32>
    %53 = arith.andi %50, %52 : vector<1x128xi1>
    %54 = arith.extui %53 : vector<1x128xi1> to vector<1x128xi32>
    %55 = arith.sitofp %54 : vector<1x128xi32> to vector<1x128xf32>
    %56 = vector.broadcast %55 : vector<1x128xf32> to vector<16x128xf32>
    %57 = arith.mulf %37, %56 : vector<16x128xf32>
    %58 = arith.truncf %57 : vector<16x128xf32> to vector<16x128xbf16>
    %cst_25 = arith.constant dense<0.000000e+00> : vector<16x16xf32>
    %59 = tpu.matmul %58, %48, %cst_25 {dimension_numbers = #tpu.dot_dimension_numbers<[1], [1], [0], [0], [0, 0, 1, 0], [], []>} : vector<16x128xbf16>, vector<16x128xbf16>, vector<16x16xf32> -> vector<16x16xf32>
    %cst_26 = arith.constant 0.353553385 : f32
    %60 = vector.broadcast %cst_26 : f32 to vector<16x16xf32>
    %61 = arith.mulf %59, %60 : vector<16x16xf32>
    %cst_27 = arith.constant dense<0xFF800000> : vector<16xf32>
    %62 = vector.multi_reduction <maximumf>, %61, %cst_27 [1] : vector<16x16xf32> to vector<16xf32>
    %63 = vector.shape_cast %62 : vector<16xf32> to vector<16x1xf32>
    %64 = vector.broadcast %63 : vector<16x1xf32> to vector<16x16xf32>
    %65 = arith.subf %61, %64 : vector<16x16xf32>
    %66 = math.exp %65 : vector<16x16xf32>
    %cst_28 = arith.constant dense<0.000000e+00> : vector<16xf32>
    %67 = vector.multi_reduction <add>, %66, %cst_28 [1] : vector<16x16xf32> to vector<16xf32>
    %68 = vector.shape_cast %67 : vector<16xf32> to vector<16x1xf32>
    %69 = tpu.reciprocal %68 {approx = true} : vector<16x1xf32> -> vector<16x1xf32>
    %70 = vector.broadcast %69 : vector<16x1xf32> to vector<16x16xf32>
    %71 = arith.mulf %66, %70 : vector<16x16xf32>
    %72 = vector.broadcast %55 : vector<1x128xf32> to vector<16x128xf32>
    %73 = arith.mulf %47, %72 : vector<16x128xf32>
    %74 = arith.truncf %73 : vector<16x128xf32> to vector<16x128xbf16>
    %75 = arith.truncf %71 : vector<16x16xf32> to vector<16x16xbf16>
    %cst_29 = arith.constant dense<0.000000e+00> : vector<16x128xf32>
    %76 = tpu.matmul %75, %74, %cst_29 {dimension_numbers = #tpu.dot_dimension_numbers<[1], [0], [0], [1], [0, 0, 1, 1], [], []>} : vector<16x16xbf16>, vector<16x128xbf16>, vector<16x128xf32> -> vector<16x128xf32>
    %c8_i32_30 = arith.constant 8 : i32
    %77 = vector.broadcast %c8_i32_30 : i32 to vector<1x128xi32>
    %78 = arith.cmpi sge, %3, %77 : vector<1x128xi32>
    %c16_i32 = arith.constant 16 : i32
    %79 = vector.broadcast %c16_i32 : i32 to vector<1x128xi32>
    %80 = arith.cmpi slt, %3, %79 : vector<1x128xi32>
    %81 = arith.andi %78, %80 : vector<1x128xi1>
    %82 = arith.extui %81 : vector<1x128xi1> to vector<1x128xi32>
    %83 = arith.sitofp %82 : vector<1x128xi32> to vector<1x128xf32>
    %84 = vector.broadcast %83 : vector<1x128xf32> to vector<16x128xf32>
    %85 = arith.mulf %37, %84 : vector<16x128xf32>
    %86 = arith.truncf %85 : vector<16x128xf32> to vector<16x128xbf16>
    %cst_31 = arith.constant dense<0.000000e+00> : vector<16x16xf32>
    %87 = tpu.matmul %86, %48, %cst_31 {dimension_numbers = #tpu.dot_dimension_numbers<[1], [1], [0], [0], [0, 0, 1, 0], [], []>} : vector<16x128xbf16>, vector<16x128xbf16>, vector<16x16xf32> -> vector<16x16xf32>
    %cst_32 = arith.constant 0.353553385 : f32
    %88 = vector.broadcast %cst_32 : f32 to vector<16x16xf32>
    %89 = arith.mulf %87, %88 : vector<16x16xf32>
    %cst_33 = arith.constant dense<0xFF800000> : vector<16xf32>
    %90 = vector.multi_reduction <maximumf>, %89, %cst_33 [1] : vector<16x16xf32> to vector<16xf32>
    %91 = vector.shape_cast %90 : vector<16xf32> to vector<16x1xf32>
    %92 = vector.broadcast %91 : vector<16x1xf32> to vector<16x16xf32>
    %93 = arith.subf %89, %92 : vector<16x16xf32>
    %94 = math.exp %93 : vector<16x16xf32>
    %cst_34 = arith.constant dense<0.000000e+00> : vector<16xf32>
    %95 = vector.multi_reduction <add>, %94, %cst_34 [1] : vector<16x16xf32> to vector<16xf32>
    %96 = vector.shape_cast %95 : vector<16xf32> to vector<16x1xf32>
    %97 = tpu.reciprocal %96 {approx = true} : vector<16x1xf32> -> vector<16x1xf32>
    %98 = vector.broadcast %97 : vector<16x1xf32> to vector<16x16xf32>
    %99 = arith.mulf %94, %98 : vector<16x16xf32>
    %100 = vector.broadcast %83 : vector<1x128xf32> to vector<16x128xf32>
    %101 = arith.mulf %47, %100 : vector<16x128xf32>
    %102 = arith.truncf %101 : vector<16x128xf32> to vector<16x128xbf16>
    %103 = arith.truncf %99 : vector<16x16xf32> to vector<16x16xbf16>
    %cst_35 = arith.constant dense<0.000000e+00> : vector<16x128xf32>
    %104 = tpu.matmul %103, %102, %cst_35 {dimension_numbers = #tpu.dot_dimension_numbers<[1], [0], [0], [1], [0, 0, 1, 1], [], []>} : vector<16x16xbf16>, vector<16x128xbf16>, vector<16x128xf32> -> vector<16x128xf32>
    %105 = arith.addf %76, %104 : vector<16x128xf32>
    %c16_i32_36 = arith.constant 16 : i32
    %106 = vector.broadcast %c16_i32_36 : i32 to vector<1x128xi32>
    %107 = arith.cmpi sge, %3, %106 : vector<1x128xi32>
    %c24_i32 = arith.constant 24 : i32
    %108 = vector.broadcast %c24_i32 : i32 to vector<1x128xi32>
    %109 = arith.cmpi slt, %3, %108 : vector<1x128xi32>
    %110 = arith.andi %107, %109 : vector<1x128xi1>
    %111 = arith.extui %110 : vector<1x128xi1> to vector<1x128xi32>
    %112 = arith.sitofp %111 : vector<1x128xi32> to vector<1x128xf32>
    %113 = vector.broadcast %112 : vector<1x128xf32> to vector<16x128xf32>
    %114 = arith.mulf %37, %113 : vector<16x128xf32>
    %115 = arith.truncf %114 : vector<16x128xf32> to vector<16x128xbf16>
    %cst_37 = arith.constant dense<0.000000e+00> : vector<16x16xf32>
    %116 = tpu.matmul %115, %48, %cst_37 {dimension_numbers = #tpu.dot_dimension_numbers<[1], [1], [0], [0], [0, 0, 1, 0], [], []>} : vector<16x128xbf16>, vector<16x128xbf16>, vector<16x16xf32> -> vector<16x16xf32>
    %cst_38 = arith.constant 0.353553385 : f32
    %117 = vector.broadcast %cst_38 : f32 to vector<16x16xf32>
    %118 = arith.mulf %116, %117 : vector<16x16xf32>
    %cst_39 = arith.constant dense<0xFF800000> : vector<16xf32>
    %119 = vector.multi_reduction <maximumf>, %118, %cst_39 [1] : vector<16x16xf32> to vector<16xf32>
    %120 = vector.shape_cast %119 : vector<16xf32> to vector<16x1xf32>
    %121 = vector.broadcast %120 : vector<16x1xf32> to vector<16x16xf32>
    %122 = arith.subf %118, %121 : vector<16x16xf32>
    %123 = math.exp %122 : vector<16x16xf32>
    %cst_40 = arith.constant dense<0.000000e+00> : vector<16xf32>
    %124 = vector.multi_reduction <add>, %123, %cst_40 [1] : vector<16x16xf32> to vector<16xf32>
    %125 = vector.shape_cast %124 : vector<16xf32> to vector<16x1xf32>
    %126 = tpu.reciprocal %125 {approx = true} : vector<16x1xf32> -> vector<16x1xf32>
    %127 = vector.broadcast %126 : vector<16x1xf32> to vector<16x16xf32>
    %128 = arith.mulf %123, %127 : vector<16x16xf32>
    %129 = vector.broadcast %112 : vector<1x128xf32> to vector<16x128xf32>
    %130 = arith.mulf %47, %129 : vector<16x128xf32>
    %131 = arith.truncf %130 : vector<16x128xf32> to vector<16x128xbf16>
    %132 = arith.truncf %128 : vector<16x16xf32> to vector<16x16xbf16>
    %cst_41 = arith.constant dense<0.000000e+00> : vector<16x128xf32>
    %133 = tpu.matmul %132, %131, %cst_41 {dimension_numbers = #tpu.dot_dimension_numbers<[1], [0], [0], [1], [0, 0, 1, 1], [], []>} : vector<16x16xbf16>, vector<16x128xbf16>, vector<16x128xf32> -> vector<16x128xf32>
    %134 = arith.addf %105, %133 : vector<16x128xf32>
    %c24_i32_42 = arith.constant 24 : i32
    %135 = vector.broadcast %c24_i32_42 : i32 to vector<1x128xi32>
    %136 = arith.cmpi sge, %3, %135 : vector<1x128xi32>
    %c32_i32_43 = arith.constant 32 : i32
    %137 = vector.broadcast %c32_i32_43 : i32 to vector<1x128xi32>
    %138 = arith.cmpi slt, %3, %137 : vector<1x128xi32>
    %139 = arith.andi %136, %138 : vector<1x128xi1>
    %140 = arith.extui %139 : vector<1x128xi1> to vector<1x128xi32>
    %141 = arith.sitofp %140 : vector<1x128xi32> to vector<1x128xf32>
    %142 = vector.broadcast %141 : vector<1x128xf32> to vector<16x128xf32>
    %143 = arith.mulf %37, %142 : vector<16x128xf32>
    %144 = arith.truncf %143 : vector<16x128xf32> to vector<16x128xbf16>
    %cst_44 = arith.constant dense<0.000000e+00> : vector<16x16xf32>
    %145 = tpu.matmul %144, %48, %cst_44 {dimension_numbers = #tpu.dot_dimension_numbers<[1], [1], [0], [0], [0, 0, 1, 0], [], []>} : vector<16x128xbf16>, vector<16x128xbf16>, vector<16x16xf32> -> vector<16x16xf32>
    %cst_45 = arith.constant 0.353553385 : f32
    %146 = vector.broadcast %cst_45 : f32 to vector<16x16xf32>
    %147 = arith.mulf %145, %146 : vector<16x16xf32>
    %cst_46 = arith.constant dense<0xFF800000> : vector<16xf32>
    %148 = vector.multi_reduction <maximumf>, %147, %cst_46 [1] : vector<16x16xf32> to vector<16xf32>
    %149 = vector.shape_cast %148 : vector<16xf32> to vector<16x1xf32>
    %150 = vector.broadcast %149 : vector<16x1xf32> to vector<16x16xf32>
    %151 = arith.subf %147, %150 : vector<16x16xf32>
    %152 = math.exp %151 : vector<16x16xf32>
    %cst_47 = arith.constant dense<0.000000e+00> : vector<16xf32>
    %153 = vector.multi_reduction <add>, %152, %cst_47 [1] : vector<16x16xf32> to vector<16xf32>
    %154 = vector.shape_cast %153 : vector<16xf32> to vector<16x1xf32>
    %155 = tpu.reciprocal %154 {approx = true} : vector<16x1xf32> -> vector<16x1xf32>
    %156 = vector.broadcast %155 : vector<16x1xf32> to vector<16x16xf32>
    %157 = arith.mulf %152, %156 : vector<16x16xf32>
    %158 = vector.broadcast %141 : vector<1x128xf32> to vector<16x128xf32>
    %159 = arith.mulf %47, %158 : vector<16x128xf32>
    %160 = arith.truncf %159 : vector<16x128xf32> to vector<16x128xbf16>
    %161 = arith.truncf %157 : vector<16x16xf32> to vector<16x16xbf16>
    %cst_48 = arith.constant dense<0.000000e+00> : vector<16x128xf32>
    %162 = tpu.matmul %161, %160, %cst_48 {dimension_numbers = #tpu.dot_dimension_numbers<[1], [0], [0], [1], [0, 0, 1, 1], [], []>} : vector<16x16xbf16>, vector<16x128xbf16>, vector<16x128xf32> -> vector<16x128xf32>
    %163 = arith.addf %134, %162 : vector<16x128xf32>
    %164 = arith.truncf %163 : vector<16x128xf32> to vector<16x128xbf16>
    %c0_49 = arith.constant 0 : index
    %c0_50 = arith.constant 0 : index
    %165 = vector.load %arg10[%c0_49, %c0_50] : memref<128x128xbf16, #tpu.memory_space<vmem>>, vector<128x128xbf16>
    %cst_51 = arith.constant dense<0.000000e+00> : vector<16x128xf32>
    %166 = tpu.matmul %164, %165, %cst_51 {dimension_numbers = #tpu.dot_dimension_numbers<[1], [0], [0], [1], [0, 0, 1, 1], [], []>} : vector<16x128xbf16>, vector<128x128xbf16>, vector<16x128xf32> -> vector<16x128xf32>
    %167 = arith.addf %2, %166 : vector<16x128xf32>
    %c0_52 = arith.constant 0 : index
    %c0_53 = arith.constant 0 : index
    %168 = vector.load %arg11[%c0_52, %c0_53] : memref<1x128xf32, #tpu.memory_space<vmem>>, vector<1x128xf32>
    %169 = vector.broadcast %168 : vector<1x128xf32> to vector<16x128xf32>
    %170 = arith.addf %167, %169 : vector<16x128xf32>
    %c0_54 = arith.constant 0 : index
    %c0_55 = arith.constant 0 : index
    %171 = vector.load %arg12[%c0_54, %c0_55] : memref<1x128xf32, #tpu.memory_space<vmem>>, vector<1x128xf32>
    %c0_56 = arith.constant 0 : index
    %c0_57 = arith.constant 0 : index
    %172 = vector.load %arg13[%c0_56, %c0_57] : memref<1x128xf32, #tpu.memory_space<vmem>>, vector<1x128xf32>
    %cst_58 = arith.constant dense<0.000000e+00> : vector<16xf32>
    %173 = vector.multi_reduction <add>, %170, %cst_58 [1] : vector<16x128xf32> to vector<16xf32>
    %174 = vector.shape_cast %173 : vector<16xf32> to vector<16x1xf32>
    %cst_59 = arith.constant 3.125000e-02 : f32
    %175 = vector.broadcast %cst_59 : f32 to vector<16x1xf32>
    %176 = arith.mulf %174, %175 : vector<16x1xf32>
    %177 = vector.broadcast %176 : vector<16x1xf32> to vector<16x128xf32>
    %178 = arith.subf %170, %177 : vector<16x128xf32>
    %179 = vector.broadcast %7 : vector<1x128xf32> to vector<16x128xf32>
    %180 = arith.mulf %178, %179 : vector<16x128xf32>
    %181 = arith.mulf %180, %180 : vector<16x128xf32>
    %cst_60 = arith.constant dense<0.000000e+00> : vector<16xf32>
    %182 = vector.multi_reduction <add>, %181, %cst_60 [1] : vector<16x128xf32> to vector<16xf32>
    %183 = vector.shape_cast %182 : vector<16xf32> to vector<16x1xf32>
    %cst_61 = arith.constant 3.125000e-02 : f32
    %184 = vector.broadcast %cst_61 : f32 to vector<16x1xf32>
    %185 = arith.mulf %183, %184 : vector<16x1xf32>
    %cst_62 = arith.constant 9.99999974E-6 : f32
    %186 = vector.broadcast %cst_62 : f32 to vector<16x1xf32>
    %187 = arith.addf %185, %186 : vector<16x1xf32>
    %188 = math.rsqrt %187 : vector<16x1xf32>
    %189 = vector.broadcast %188 : vector<16x1xf32> to vector<16x128xf32>
    %190 = arith.mulf %180, %189 : vector<16x128xf32>
    %191 = vector.broadcast %171 : vector<1x128xf32> to vector<16x128xf32>
    %192 = arith.mulf %190, %191 : vector<16x128xf32>
    %193 = vector.broadcast %172 : vector<1x128xf32> to vector<16x128xf32>
    %194 = arith.addf %192, %193 : vector<16x128xf32>
    %195 = arith.truncf %194 : vector<16x128xf32> to vector<16x128xbf16>
    %c0_63 = arith.constant 0 : index
    %c0_64 = arith.constant 0 : index
    %196 = vector.load %arg14[%c0_63, %c0_64] : memref<128x128xbf16, #tpu.memory_space<vmem>>, vector<128x128xbf16>
    %cst_65 = arith.constant dense<0.000000e+00> : vector<16x128xf32>
    %197 = tpu.matmul %195, %196, %cst_65 {dimension_numbers = #tpu.dot_dimension_numbers<[1], [0], [0], [1], [0, 0, 1, 1], [], []>} : vector<16x128xbf16>, vector<128x128xbf16>, vector<16x128xf32> -> vector<16x128xf32>
    %c0_66 = arith.constant 0 : index
    %c0_67 = arith.constant 0 : index
    %198 = vector.load %arg15[%c0_66, %c0_67] : memref<1x128xf32, #tpu.memory_space<vmem>>, vector<1x128xf32>
    %199 = vector.broadcast %198 : vector<1x128xf32> to vector<16x128xf32>
    %200 = arith.addf %197, %199 : vector<16x128xf32>
    %cst_68 = arith.constant 5.000000e-01 : f32
    %201 = vector.broadcast %cst_68 : f32 to vector<16x128xf32>
    %202 = arith.mulf %201, %200 : vector<16x128xf32>
    %cst_69 = arith.constant 0.707106769 : f32
    %203 = vector.broadcast %cst_69 : f32 to vector<16x128xf32>
    %204 = arith.mulf %200, %203 : vector<16x128xf32>
    %cst_70 = arith.constant 0.000000e+00 : f32
    %205 = vector.broadcast %cst_70 : f32 to vector<16x128xf32>
    %206 = arith.cmpf oge, %204, %205 : vector<16x128xf32>
    %cst_71 = arith.constant 1.000000e+00 : f32
    %cst_72 = arith.constant -1.000000e+00 : f32
    %207 = vector.broadcast %cst_71 : f32 to vector<16x128xf32>
    %208 = vector.broadcast %cst_72 : f32 to vector<16x128xf32>
    %209 = arith.select %206, %207, %208 : vector<16x128xi1>, vector<16x128xf32>
    %210 = math.absf %204 : vector<16x128xf32>
    %cst_73 = arith.constant 0.327591091 : f32
    %211 = vector.broadcast %cst_73 : f32 to vector<16x128xf32>
    %212 = arith.mulf %211, %210 : vector<16x128xf32>
    %cst_74 = arith.constant 1.000000e+00 : f32
    %213 = vector.broadcast %cst_74 : f32 to vector<16x128xf32>
    %214 = arith.addf %213, %212 : vector<16x128xf32>
    %215 = tpu.reciprocal %214 : vector<16x128xf32> -> vector<16x128xf32>
    %cst_75 = arith.constant 1.06140542 : f32
    %216 = vector.broadcast %cst_75 : f32 to vector<16x128xf32>
    %217 = arith.mulf %216, %215 : vector<16x128xf32>
    %cst_76 = arith.constant -1.45315206 : f32
    %218 = vector.broadcast %cst_76 : f32 to vector<16x128xf32>
    %219 = arith.addf %217, %218 : vector<16x128xf32>
    %220 = arith.mulf %219, %215 : vector<16x128xf32>
    %cst_77 = arith.constant 1.42141378 : f32
    %221 = vector.broadcast %cst_77 : f32 to vector<16x128xf32>
    %222 = arith.addf %220, %221 : vector<16x128xf32>
    %223 = arith.mulf %222, %215 : vector<16x128xf32>
    %cst_78 = arith.constant -0.284496725 : f32
    %224 = vector.broadcast %cst_78 : f32 to vector<16x128xf32>
    %225 = arith.addf %223, %224 : vector<16x128xf32>
    %226 = arith.mulf %225, %215 : vector<16x128xf32>
    %cst_79 = arith.constant 0.254829586 : f32
    %227 = vector.broadcast %cst_79 : f32 to vector<16x128xf32>
    %228 = arith.addf %226, %227 : vector<16x128xf32>
    %229 = arith.mulf %228, %215 : vector<16x128xf32>
    %cst_80 = arith.constant 0.000000e+00 : f32
    %230 = vector.broadcast %cst_80 : f32 to vector<16x128xf32>
    %231 = arith.subf %230, %210 : vector<16x128xf32>
    %232 = arith.mulf %231, %210 : vector<16x128xf32>
    %233 = math.exp %232 : vector<16x128xf32>
    %234 = arith.mulf %229, %233 : vector<16x128xf32>
    %cst_81 = arith.constant 1.000000e+00 : f32
    %235 = vector.broadcast %cst_81 : f32 to vector<16x128xf32>
    %236 = arith.subf %235, %234 : vector<16x128xf32>
    %237 = arith.mulf %209, %236 : vector<16x128xf32>
    %cst_82 = arith.constant 1.000000e+00 : f32
    %238 = vector.broadcast %cst_82 : f32 to vector<16x128xf32>
    %239 = arith.addf %238, %237 : vector<16x128xf32>
    %240 = arith.mulf %202, %239 : vector<16x128xf32>
    %241 = arith.truncf %240 : vector<16x128xf32> to vector<16x128xbf16>
    %c0_83 = arith.constant 0 : index
    %c0_84 = arith.constant 0 : index
    %242 = vector.load %arg16[%c0_83, %c0_84] : memref<128x128xbf16, #tpu.memory_space<vmem>>, vector<128x128xbf16>
    %cst_85 = arith.constant dense<0.000000e+00> : vector<16x128xf32>
    %243 = tpu.matmul %241, %242, %cst_85 {dimension_numbers = #tpu.dot_dimension_numbers<[1], [0], [0], [1], [0, 0, 1, 1], [], []>} : vector<16x128xbf16>, vector<128x128xbf16>, vector<16x128xf32> -> vector<16x128xf32>
    %244 = arith.addf %170, %243 : vector<16x128xf32>
    %c0_86 = arith.constant 0 : index
    %c0_87 = arith.constant 0 : index
    %245 = vector.load %arg17[%c0_86, %c0_87] : memref<1x128xf32, #tpu.memory_space<vmem>>, vector<1x128xf32>
    %246 = vector.broadcast %245 : vector<1x128xf32> to vector<16x128xf32>
    %247 = arith.addf %244, %246 : vector<16x128xf32>
    %248 = arith.truncf %247 : vector<16x128xf32> to vector<16x128xbf16>
    %c0_88 = arith.constant 0 : index
    %c0_89 = arith.constant 0 : index
    %c0_90 = arith.constant 0 : index
    %249 = vector.load %arg18[%c0_88, %c0_89, %c0_90] : memref<1x16x128xbf16, #tpu.memory_space<vmem>>, vector<1x16x128xbf16>
    %250 = vector.shape_cast %249 : vector<1x16x128xbf16> to vector<16x128xbf16>
    %251 = vector.shape_cast %248 : vector<16x128xbf16> to vector<1x16x128xbf16>
    tpu.vector_store %arg18[%c0_88, %c0_89, %c0_90], %251 {strides = array<i32>} : memref<1x16x128xbf16, #tpu.memory_space<vmem>>, vector<1x16x128xbf16>,
    return
  }
  func.func @transform_0(%arg0: i32) -> (i32, i32, i32) {
    %c0_i32 = arith.constant 0 : i32
    %c0_i32_0 = arith.constant 0 : i32
    %c0_i32_1 = arith.constant 0 : i32
    return %arg0, %c0_i32, %c0_i32_0 : i32, i32, i32
  }
  func.func @transform_1(%arg0: i32) -> (i32, i32) {
    %c0_i32 = arith.constant 0 : i32
    %c0_i32_0 = arith.constant 0 : i32
    %c0_i32_1 = arith.constant 0 : i32
    return %c0_i32, %c0_i32_0 : i32, i32
  }
  func.func @transform_2(%arg0: i32) -> (i32, i32) {
    %c0_i32 = arith.constant 0 : i32
    %c0_i32_0 = arith.constant 0 : i32
    %c0_i32_1 = arith.constant 0 : i32
    return %c0_i32, %c0_i32_0 : i32, i32
  }
  func.func @transform_3(%arg0: i32) -> (i32, i32) {
    %c0_i32 = arith.constant 0 : i32
    %c0_i32_0 = arith.constant 0 : i32
    %c0_i32_1 = arith.constant 0 : i32
    return %c0_i32, %c0_i32_0 : i32, i32
  }
  func.func @transform_4(%arg0: i32) -> (i32, i32) {
    %c0_i32 = arith.constant 0 : i32
    %c0_i32_0 = arith.constant 0 : i32
    %c0_i32_1 = arith.constant 0 : i32
    return %c0_i32, %c0_i32_0 : i32, i32
  }
  func.func @transform_5(%arg0: i32) -> (i32, i32) {
    %c0_i32 = arith.constant 0 : i32
    %c0_i32_0 = arith.constant 0 : i32
    %c0_i32_1 = arith.constant 0 : i32
    return %c0_i32, %c0_i32_0 : i32, i32
  }
  func.func @transform_6(%arg0: i32) -> (i32, i32) {
    %c0_i32 = arith.constant 0 : i32
    %c0_i32_0 = arith.constant 0 : i32
    %c0_i32_1 = arith.constant 0 : i32
    return %c0_i32, %c0_i32_0 : i32, i32
  }
  func.func @transform_7(%arg0: i32) -> (i32, i32) {
    %c0_i32 = arith.constant 0 : i32
    %c0_i32_0 = arith.constant 0 : i32
    %c0_i32_1 = arith.constant 0 : i32
    return %c0_i32, %c0_i32_0 : i32, i32
  }
  func.func @transform_8(%arg0: i32) -> (i32, i32) {
    %c0_i32 = arith.constant 0 : i32
    %c0_i32_0 = arith.constant 0 : i32
    %c0_i32_1 = arith.constant 0 : i32
    return %c0_i32, %c0_i32_0 : i32, i32
  }
  func.func @transform_9(%arg0: i32) -> (i32, i32) {
    %c0_i32 = arith.constant 0 : i32
    %c0_i32_0 = arith.constant 0 : i32
    %c0_i32_1 = arith.constant 0 : i32
    return %c0_i32, %c0_i32_0 : i32, i32
  }
  func.func @transform_10(%arg0: i32) -> (i32, i32) {
    %c0_i32 = arith.constant 0 : i32
    %c0_i32_0 = arith.constant 0 : i32
    %c0_i32_1 = arith.constant 0 : i32
    return %c0_i32, %c0_i32_0 : i32, i32
  }
  func.func @transform_11(%arg0: i32) -> (i32, i32) {
    %c0_i32 = arith.constant 0 : i32
    %c0_i32_0 = arith.constant 0 : i32
    %c0_i32_1 = arith.constant 0 : i32
    return %c0_i32, %c0_i32_0 : i32, i32
  }
  func.func @transform_12(%arg0: i32) -> (i32, i32) {
    %c0_i32 = arith.constant 0 : i32
    %c0_i32_0 = arith.constant 0 : i32
    %c0_i32_1 = arith.constant 0 : i32
    return %c0_i32, %c0_i32_0 : i32, i32
  }
  func.func @transform_13(%arg0: i32) -> (i32, i32) {
    %c0_i32 = arith.constant 0 : i32
    %c0_i32_0 = arith.constant 0 : i32
    %c0_i32_1 = arith.constant 0 : i32
    return %c0_i32, %c0_i32_0 : i32, i32
  }
  func.func @transform_14(%arg0: i32) -> (i32, i32) {
    %c0_i32 = arith.constant 0 : i32
    %c0_i32_0 = arith.constant 0 : i32
    %c0_i32_1 = arith.constant 0 : i32
    return %c0_i32, %c0_i32_0 : i32, i32
  }
  func.func @transform_15(%arg0: i32) -> (i32, i32) {
    %c0_i32 = arith.constant 0 : i32
    %c0_i32_0 = arith.constant 0 : i32
    %c0_i32_1 = arith.constant 0 : i32
    return %c0_i32, %c0_i32_0 : i32, i32
  }
  func.func @transform_16(%arg0: i32) -> (i32, i32) {
    %c0_i32 = arith.constant 0 : i32
    %c0_i32_0 = arith.constant 0 : i32
    %c0_i32_1 = arith.constant 0 : i32
    return %c0_i32, %c0_i32_0 : i32, i32
  }
  func.func @transform_17(%arg0: i32) -> (i32, i32, i32) {
    %c0_i32 = arith.constant 0 : i32
    %c0_i32_0 = arith.constant 0 : i32
    %c0_i32_1 = arith.constant 0 : i32
    return %arg0, %c0_i32, %c0_i32_0 : i32, i32, i32
  }
}

module attributes {stable_mosaic.version = 11 : i64} {
  func.func @kernel(%arg0: i32, %arg1: memref<32x128xbf16, #tpu.memory_space<vmem>>, %arg2: memref<128x128xbf16, #tpu.memory_space<vmem>>, %arg3: memref<1x128xf32, #tpu.memory_space<vmem>>, %arg4: memref<32x128xf32, #tpu.memory_space<vmem>>) attributes {dimension_semantics = [#tpu.dimension_semantics<arbitrary>], iteration_bounds = array<i64: 1>, scalar_prefetch = 0 : i64, scratch_operands = 0 : i64, tpu.core_type = #tpu.core_type<tc>, window_params = [{transform_indices = @transform_0, window_bounds = array<i64: 32, 128>}, {pipeline_mode = #tpu.pipeline_mode<synchronous>, transform_indices = @transform_1, window_bounds = array<i64: 128, 128>}, {pipeline_mode = #tpu.pipeline_mode<synchronous>, transform_indices = @transform_2, window_bounds = array<i64: 1, 128>}, {transform_indices = @transform_3, window_bounds = array<i64: 32, 128>}]} {
    %c0 = arith.constant 0 : index
    %c0_0 = arith.constant 0 : index
    %0 = vector.load %arg1[%c0, %c0_0] : memref<32x128xbf16, #tpu.memory_space<vmem>>, vector<32x128xbf16>
    %c0_1 = arith.constant 0 : index
    %c0_2 = arith.constant 0 : index
    %1 = vector.load %arg2[%c0_1, %c0_2] : memref<128x128xbf16, #tpu.memory_space<vmem>>, vector<128x128xbf16>
    %cst = arith.constant dense<0.000000e+00> : vector<32x128xf32>
    %2 = tpu.matmul %0, %1, %cst {dimension_numbers = #tpu.dot_dimension_numbers<[1], [0], [0], [1], [0, 0, 1, 1], [], []>} : vector<32x128xbf16>, vector<128x128xbf16>, vector<32x128xf32> -> vector<32x128xf32>
    %c0_3 = arith.constant 0 : index
    %c0_4 = arith.constant 0 : index
    %3 = vector.load %arg3[%c0_3, %c0_4] : memref<1x128xf32, #tpu.memory_space<vmem>>, vector<1x128xf32>
    %4 = vector.broadcast %3 : vector<1x128xf32> to vector<32x128xf32>
    %5 = arith.addf %2, %4 : vector<32x128xf32>
    %c0_5 = arith.constant 0 : index
    %c0_6 = arith.constant 0 : index
    %6 = vector.load %arg4[%c0_5, %c0_6] : memref<32x128xf32, #tpu.memory_space<vmem>>, vector<32x128xf32>
    tpu.vector_store %arg4[%c0_5, %c0_6], %5 {strides = array<i32>} : memref<32x128xf32, #tpu.memory_space<vmem>>, vector<32x128xf32>,
    return
  }
  func.func @transform_0(%arg0: i32) -> (i32, i32) {
    %c0_i32 = arith.constant 0 : i32
    %c0_i32_0 = arith.constant 0 : i32
    return %arg0, %c0_i32 : i32, i32
  }
  func.func @transform_1(%arg0: i32) -> (i32, i32) {
    %c0_i32 = arith.constant 0 : i32
    %c0_i32_0 = arith.constant 0 : i32
    %c0_i32_1 = arith.constant 0 : i32
    return %c0_i32, %c0_i32_0 : i32, i32
  }
  func.func @transform_2(%arg0: i32) -> (i32, i32) {
    %c0_i32 = arith.constant 0 : i32
    %c0_i32_0 = arith.constant 0 : i32
    %c0_i32_1 = arith.constant 0 : i32
    return %c0_i32, %c0_i32_0 : i32, i32
  }
  func.func @transform_3(%arg0: i32) -> (i32, i32) {
    %c0_i32 = arith.constant 0 : i32
    %c0_i32_0 = arith.constant 0 : i32
    return %arg0, %c0_i32 : i32, i32
  }
}

</mosaic_0001>

<bundles_post_ra>
// kernel: _lambda_.8
= control target key start
LH: loop header
LB: loop body
LE: loop exit
PB: predicated region body
PF: predicated region fallthrough
CT: control target
= control target key end

     0   :  { %s304_s1 = inlined_call_operand.vmem [shape: bf16[128,128], index: 1, kind: input, shape index: {}]   ;;  %s305_s0 = inlined_call_operand.vmem [shape: bf16[32,128], index: 0, kind: input, shape index: {}]   ;;  %s306_s2 = inlined_call_operand.vmem [shape: f32[1,128], index: 2, kind: input, shape index: {}]   ;;  %s307_s3 = inlined_call_operand.vmem [shape: bf16[32,128], index: 3, kind: output, shape index: {}]  }
   0x1   :  { %v235_v0 = vld [vmem:[%s304_s1] sm:$0xff]   ;;  %v236_v1 = vld [vmem:[%s304_s1 + $0x8] sm:$0xff]   ;;  %v237_v2 = vld [vmem:[%s304_s1 + $0x10] sm:$0xff]  }
   0x2   :  { %215 = vmatprep.subr.bf16.mxu0 %v235_v0  ;;  %v238_v3 = vld [vmem:[%s304_s1 + $0x18] sm:$0xff]   ;;  %v243_v4 = vld [vmem:[%s305_s0] sm:$0xff]   ;;  %v240_v6 = vld [vmem:[%s304_s1 + $0x28] sm:$0xff]  }
   0x3   :  { %216 = vmatpush3.bf16.msra.mxu0 %v235_v0  ;;  %231 = vmatprep.mubr.bf16.mxu0 %v243_v4  ;;  %v239_v5 = vld [vmem:[%s304_s1 + $0x20] sm:$0xff]   ;;  %v241_v7 = vld [vmem:[%s304_s1 + $0x30] sm:$0xff]   ;;  %v242_v8 = vld [vmem:[%s304_s1 + $0x38] sm:$0xff]  }
   0x4   :  { %217 = vmatprep.subr.bf16.mxu0 %v236_v1  ;;  %v244_v9 = vld [vmem:[%s305_s0 + $0x8] sm:$0xff]   ;;  %v175_v11 = vld [vmem:[%s306_s2] ss:$0 sm:$0xff] }
   0x7   :  { %218 = vmatpush3.bf16.msra.mxu0 %v236_v1 }
   0x8   :  { %219 = vmatprep.subr.bf16.mxu0 %v237_v2 }
   0xb   :  { %220 = vmatpush3.bf16.msra.mxu0 %v237_v2 }
   0xc   :  { %221 = vmatprep.subr.bf16.mxu0 %v238_v3 }
   0xf   :  { %222 = vmatpush3.bf16.msra.mxu0 %v238_v3 }
  0x10   :  { %223 = vmatprep.subr.bf16.mxu0 %v239_v5 }
  0x13   :  { %224 = vmatpush3.bf16.msra.mxu0 %v239_v5 }
  0x14   :  { %225 = vmatprep.subr.bf16.mxu0 %v240_v6 }
  0x17   :  { %226 = vmatpush3.bf16.msra.mxu0 %v240_v6 }
  0x18   :  { %227 = vmatprep.subr.bf16.mxu0 %v241_v7 }
  0x1b   :  { %228 = vmatpush3.bf16.msra.mxu0 %v241_v7 }
  0x1c   :  { %229 = vmatprep.subr.bf16.mxu0 %v242_v8 }
  0x1f   :  { %230 = vmatpush3.bf16.msra.mxu0 %v242_v8 }
  0x22   :  { %232 = vmatmul.mubr.bf16.vlgmr.msra.gmra.mrb[0].mxu0 %v244_v9 }
  0xf5   :  { %v233_v10 = vpop.f32.mrb[0].mxu0 }
  0xf6   :  { %v136_v12 = vpop.f32.mrb[1].mxu0  ;;  %v145_v14 = vadd.f32 %v233_v10, %v175_v11 }
  0xf7   :  { %v234_v13 = vpop.f32.mrb[2].mxu0  ;;  %v137_v17 = vadd.f32 %v175_v11, %v136_v12 }
  0xf8   :  { %v148_v15 = vadd.f32 %v234_v13, %v175_v11  ;;  %v139_v16 = vpop.f32.mrb[3].mxu0 }
  0xf9   :  { %v140_v18 = vadd.f32 %v175_v11, %v139_v16 }
  0xfa   :  { %v202_v19 = vpack.c.bf16 %v148_v15, %v145_v14 }
  0xfb   :  { %v197_v20 = vpack.c.bf16 %v140_v18, %v137_v17 }
  0xfc   :  { %204 = vst [vmem:[%s307_s3 + $0x8] sm:$0xff] %v202_v19  }
  0xfd   :  { %198 = vst [vmem:[%s307_s3] sm:$0xff] %v197_v20  }

// kernel: _lambda_.11
= control target key start
LH: loop header
LB: loop body
LE: loop exit
PB: predicated region body
PF: predicated region fallthrough
CT: control target
= control target key end

     0   :  { %v181_v0 = vmov 0.0   ;;  %vm182_vm0 = vmmov 0   ;;  %s236_s1 = inlined_call_operand.vmem [shape: bf16[128,128], index: 1, kind: input, shape index: {}]   ;;  %s237_s0 = inlined_call_operand.vmem [shape: bf16[8,128], index: 0, kind: input, shape index: {}]   ;;  %s238_s2 = inlined_call_operand.vmem [shape: f32[1,128], index: 2, kind: input, shape index: {}]   ;;  %s239_s3 = inlined_call_operand.vmem [shape: bf16[8,128], index: 3, kind: output, shape index: {}]  }
   0x1   :  { %151 = vmatprep.subr.bf16.mxu0 %v181_v0  ;;  %v173_v1 = vld [vmem:[%s236_s1] sm:$0xff]   ;;  %167 = vmatprep.mubr.msk.bf16.mxu0 %vm182_vm0, %v181_v0  ;;  %v174_v2 = vld [vmem:[%s236_s1 + $0x8] sm:$0xff]   ;;  %v175_v3 = vld [vmem:[%s236_s1 + $0x10] sm:$0xff]  }
   0x2   :  { %152 = vmatpush3.bf16.msra.mxu0 %v173_v1  ;;  %v176_v4 = vld [vmem:[%s236_s1 + $0x18] sm:$0xff]   ;;  %v177_v5 = vld [vmem:[%s236_s1 + $0x20] sm:$0xff]   ;;  %v178_v6 = vld [vmem:[%s236_s1 + $0x28] sm:$0xff]  }
   0x3   :  { %153 = vmatprep.subr.bf16.mxu0 %v181_v0  ;;  %v179_v7 = vld [vmem:[%s236_s1 + $0x30] sm:$0xff]   ;;  %v180_v8 = vld [vmem:[%s236_s1 + $0x38] sm:$0xff]   ;;  %v15_v9 = vld [vmem:[%s237_s0] sm:$0xf] }
   0x4   :  { %v133_v10 = vld [vmem:[%s238_s2] ss:$0 sm:$0xff] }
   0x6   :  { %154 = vmatpush3.bf16.msra.mxu0 %v174_v2 }
   0x7   :  { %155 = vmatprep.subr.bf16.mxu0 %v181_v0 }
   0xa   :  { %156 = vmatpush3.bf16.msra.mxu0 %v175_v3 }
   0xb   :  { %157 = vmatprep.subr.bf16.mxu0 %v181_v0 }
   0xe   :  { %158 = vmatpush3.bf16.msra.mxu0 %v176_v4 }
   0xf   :  { %159 = vmatprep.subr.bf16.mxu0 %v181_v0 }
  0x12   :  { %160 = vmatpush3.bf16.msra.mxu0 %v177_v5 }
  0x13   :  { %161 = vmatprep.subr.bf16.mxu0 %v181_v0 }
  0x16   :  { %162 = vmatpush3.bf16.msra.mxu0 %v178_v6 }
  0x17   :  { %163 = vmatprep.subr.bf16.mxu0 %v181_v0 }
  0x1a   :  { %164 = vmatpush3.bf16.msra.mxu0 %v179_v7 }
  0x1b   :  { %165 = vmatprep.subr.bf16.mxu0 %v181_v0 }
  0x1e   :  { %166 = vmatpush3.bf16.msra.mxu0 %v180_v8 }
  0x21   :  { %168 = vmatmul.mubr.bf16.vlgmr.msra.gmra.mrb[0].mxu0 %v15_v9 }
  0xf4   :  { %v121_v11 = vpop.f32.mrb[0].mxu0 }
  0xf5   :  { %v122_v12 = vadd.f32 %v133_v10, %v121_v11  ;;  %v169_v13 = vpop.f32.mrb[1].mxu0 }
  0xf6   :  { %v124_v14 = vpop.f32.mrb[2].mxu0 }
  0xf7   :  { %v127_v15 = vpack.c.bf16 %v122_v12, %v122_v12  ;;  %v170_v16 = vpop.f32.mrb[3].mxu0 }
  0xf9   :  { %128 = vst [vmem:[%s239_s3] sm:$0xf] %v127_v15 }

// kernel: _lambda_.9
= control target key start
LH: loop header
LB: loop body
LE: loop exit
PB: predicated region body
PF: predicated region fallthrough
CT: control target
= control target key end

     0   :  { %s2453_s24 = smov 0   ;;  %s2836_s0 = inlined_call_operand.vmem [shape: bf16[2,4,128], index: 0, kind: input, shape index: {}]   ;;  %s2837_s1 = inlined_call_operand.vmem [shape: f32[1,128], index: 1, kind: input, shape index: {}]   ;;  %s2838_s2 = inlined_call_operand.vmem [shape: f32[1,128], index: 2, kind: input, shape index: {}]   ;;  %s2839_s3 = inlined_call_operand.vmem [shape: bf16[128,128], index: 3, kind: input, shape index: {}]   ;;  %s2840_s4 = inlined_call_operand.vmem [shape: f32[1,128], index: 4, kind: input, shape index: {}]   ;;  %s2841_s5 = inlined_call_operand.vmem [shape: bf16[128,128], index: 5, kind: input, shape index: {}]   ;;  %s2842_s6 = inlined_call_operand.vmem [shape: f32[1,128], index: 6, kind: input, shape index: {}]   ;;  %s2843_s7 = inlined_call_operand.vmem [shape: bf16[128,128], index: 7, kind: input, shape index: {}]   ;;  %s2844_s8 = inlined_call_operand.vmem [shape: f32[1,128], index: 8, kind: input, shape index: {}]   ;;  %s2845_s9 = inlined_call_operand.vmem [shape: bf16[128,128], index: 9, kind: input, shape index: {}]   ;;  %s2846_s10 = inlined_call_operand.vmem [shape: f32[1,128], index: 10, kind: input, shape index: {}]   ;;  %s2847_s11 = inlined_call_operand.vmem [shape: f32[1,128], index: 11, kind: input, shape index: {}]   ;;  %s2848_s12 = inlined_call_operand.vmem [shape: f32[1,128], index: 12, kind: input, shape index: {}]   ;;  %s2849_s13 = inlined_call_operand.vmem [shape: bf16[128,256], index: 13, kind: input, shape index: {}]   ;;  %s2850_s14 = inlined_call_operand.vmem [shape: f32[1,256], index: 14, kind: input, shape index: {}]   ;;  %s2851_s15 = inlined_call_operand.vmem [shape: bf16[256,128], index: 15, kind: input, shape index: {}]   ;;  %s2852_s16 = inlined_call_operand.vmem [shape: f32[1,128], index: 16, kind: input, shape index: {}]   ;;  %s2853_s17 = inlined_call_operand.vmem [shape: bf16[2,4,128], index: 17, kind: output, shape index: {}]  }
   0x1   :  { %2854 = sst [smem:[#allocation2_spill]] %s2836_s0 }
   0x2   :  { %2855 = sst [smem:[#allocation3_spill]] %s2837_s1 }
   0x3 LB: > { %s1934_s25 = sadd.s32 4294967295, %s2357_s24   ;;  %p1938_p0 = scmp.ge.s32.totalorder %s2357_s24, 1  ;;  %s2357_s24 = sphi %s2453_s24, %s27_s24  }
   0x4   : > { %p486_p1 = scmp.lt.s32.totalorder %s2357_s24, 3 }
   0x6   : > { %p487_p2 = pnand %p1938_p0, %p486_p1 }
   0x7   : > { %p536_p3 = scmp.lt.s32.totalorder (!%p487_p2), %s1934_s25, 1  ;;  %vm554_vm0 = vcmask (!%p487_p2), 1043456   ;;  %s2856_s29 = sld [smem:[#allocation2_spill]] (!%p487_p2)  ;;  %v2359_v3 = vmov (!%p487_p2), 0.0   ;;  %v2251_v4 = vld [vmem:[%s2839_s3] sm:$0xff] (!%p487_p2)   ;;  %v2253_v6 = vld [vmem:[%s2839_s3 + $0x8] sm:$0xff] (!%p487_p2)   ;;  %v547_v9 = vlaneseq (!%p487_p2) }
   0x8   : > { %490 = sbr.rel (%p487_p2) target bundleno = 3421 (0xd5d), region = 88  ;;  %2099 = vmatprep.subr.bf16.mxu0 (!%p487_p2), %v2359_v3  ;;  %2119 = vmatprep.subr.bf16.mxu1 (!%p487_p2), %v2359_v3  ;;  %v2252_v5 = vld [vmem:[%s2841_s5] sm:$0xff] (!%p487_p2)   ;;  %v2254_v7 = vld [vmem:[%s2841_s5 + $0x8] sm:$0xff] (!%p487_p2)   ;;  %v2255_v8 = vld [vmem:[%s2839_s3 + $0x10] sm:$0xff] (!%p487_p2)   ;;  %vm2360_vm2 = vmmov (!%p487_p2), 0   ;;  %vm1047_vm12 = vcmask (!%p487_p2), 1041408  }
   0x9   : > { %2100 = vmatpush3.bf16.msra.mxu0 (!%p487_p2), %v2251_v4  ;;  %2120 = vmatpush3.bf16.msra.mxu1 (!%p487_p2), %v2252_v5  ;;  %v2496_v10 = vand.u32 (!%p487_p2), 127, %v547_v9  ;;  %v2256_v18 = vld [vmem:[%s2841_s5 + $0x10] sm:$0xff] (!%p487_p2)   ;;  %v2257_v19 = vld [vmem:[%s2839_s3 + $0x18] sm:$0xff] (!%p487_p2)   ;;  %v2259_v21 = vld [vmem:[%s2839_s3 + $0x20] sm:$0xff] (!%p487_p2)   ;;  %vm966_vm13 = vcmask (!%p487_p2), 27648   ;;  %vm1043_vm14 = vcmask (!%p487_p2), 31744  }
   0xa   : > { %2101 = vmatprep.subr.bf16.mxu0 (!%p487_p2), %v2359_v3  ;;  %2121 = vmatprep.subr.bf16.mxu1 (!%p487_p2), %v2359_v3  ;;  %v2258_v20 = vld [vmem:[%s2841_s5 + $0x18] sm:$0xff] (!%p487_p2)   ;;  %v2260_v22 = vld [vmem:[%s2841_s5 + $0x20] sm:$0xff] (!%p487_p2)   ;;  %v2261_v23 = vld [vmem:[%s2839_s3 + $0x28] sm:$0xff] (!%p487_p2)  }
   0xb   : > { %vm549_vm1 = vcmp.lt.s32.totalorder (!%p487_p2), %v2496_v10, 64  ;;  %2115 = vmatprep.mubr.msk.bf16.mxu0 (!%p487_p2), %vm2360_vm2, %v2359_v3  ;;  %2135 = vmatprep.mubr.msk.bf16.mxu1 (!%p487_p2), %vm2360_vm2, %v2359_v3  ;;  %v2262_v24 = vld [vmem:[%s2841_s5 + $0x28] sm:$0xff] (!%p487_p2)   ;;  %v2263_v25 = vld [vmem:[%s2839_s3 + $0x30] sm:$0xff] (!%p487_p2)   ;;  %v2265_v27 = vld [vmem:[%s2839_s3 + $0x38] sm:$0xff] (!%p487_p2)   ;;  %vm1246_vm3 = vcmp.ge.s32.totalorder (!%p487_p2), %v2496_v10, 48  ;;  %vm919_vm5 = vcmp.lt.s32.totalorder (!%p487_p2), %v2496_v10, 16 }
   0xc   : > { %v2502_v13 = vsel (!%p487_p2), %vm549_vm1, 1.0, %v2359_v3  ;;  %v2264_v26 = vld [vmem:[%s2841_s5 + $0x30] sm:$0xff] (!%p487_p2)   ;;  %v2266_v28 = vld [vmem:[%s2841_s5 + $0x38] sm:$0xff] (!%p487_p2)   ;;  %v1943_v35 = vld [vmem:[%s2838_s2] ss:$0 sm:$0xff] (!%p487_p2)  ;;  %v1971_v61 = vsel (!%p487_p2), %vm919_vm5, 1.0, %v2359_v3 }
   0xd   : > { %2102 = vmatpush3.bf16.msra.mxu0 (!%p487_p2), %v2253_v6  ;;  %2122 = vmatpush3.bf16.msra.mxu1 (!%p487_p2), %v2254_v7  ;;  %v2267_v38 = vld [vmem:[%s2843_s7] sm:$0xff] (!%p487_p2)   ;;  %v2268_v40 = vld [vmem:[%s2843_s7 + $0x8] sm:$0xff] (!%p487_p2)   ;;  %v2269_v41 = vld [vmem:[%s2843_s7 + $0x10] sm:$0xff] (!%p487_p2)   ;;  %vm981_vm6 = vcmp.ge.s32.totalorder (!%p487_p2), %v2496_v10, 16  ;;  %vm982_vm7 = vcmp.lt.s32.totalorder (!%p487_p2), %v2496_v10, 32  ;;  %vm1137_vm9 = vcmp.ge.s32.totalorder (!%p487_p2), %v2496_v10, 32 }
   0xe   : > { %2103 = vmatprep.subr.bf16.mxu0 (!%p487_p2), %v2359_v3  ;;  %2123 = vmatprep.subr.bf16.mxu1 (!%p487_p2), %v2359_v3  ;;  %v2270_v42 = vld [vmem:[%s2843_s7 + $0x18] sm:$0xff] (!%p487_p2)   ;;  %v2271_v43 = vld [vmem:[%s2843_s7 + $0x20] sm:$0xff] (!%p487_p2)   ;;  %v2272_v44 = vld [vmem:[%s2843_s7 + $0x28] sm:$0xff] (!%p487_p2)   ;;  %vm1138_vm10 = vcmp.lt.s32.totalorder (!%p487_p2), %v2496_v10, 48 }
   0xf   : > { %s2859_s25 = smov (!%p536_p3, %s1934_s25), 1  ;;  %v2273_v45 = vld [vmem:[%s2843_s7 + $0x30] sm:$0xff]   ;;  %v2274_v46 = vld [vmem:[%s2843_s7 + $0x38] sm:$0xff]   ;;  %vm1247_vm4 = vmand %vm1246_vm3, %vm549_vm1 }
  0x10   : > { %s1939_s26 = sshll.u32 %s2859_s25, 1  ;;  %v1944_v47 = vld [vmem:[%s2840_s4] ss:$0 sm:$0xff]  ;;  %v1977_v51 = vsel %vm1247_vm4, 1.0, %v2359_v3  ;;  %vm983_vm8 = vmand %vm981_vm6, %vm982_vm7 }
  0x11   : > { %s539_s0 = scalar_lea.vmem %s2856_s29, %s1939_s26  ;;  %2104 = vmatpush3.bf16.msra.mxu0 %v2255_v8  ;;  %2124 = vmatpush3.bf16.msra.mxu1 %v2256_v18  ;;  %s2857_s29 = sld [smem:[#allocation3_spill]]  ;;  %v1953_v48 = vld [vmem:[%s2842_s6] ss:$0 sm:$0xff]  ;;  %vm1139_vm11 = vmand %vm1137_vm9, %vm1138_vm10 }
  0x12   : > { %v545_v0 = vld [vmem:[%s539_s0] sm:$0x3]  ;;  %2105 = vmatprep.subr.bf16.mxu0 %v2359_v3  ;;  %2125 = vmatprep.subr.bf16.mxu1 %v2359_v3  ;;  %s543_s23 = scalar_lea.vmem %s2853_s17, %s1939_s26 }
  0x13   : > { %v2469_v1 = vunpack.c.l.bf16 %v545_v0  ;;  %v1962_v6 = vld [vmem:[%s2844_s8] ss:$0 sm:$0xff] }
  0x15   : > { %v555_v2 = vsel %vm554_vm0, %v2469_v1, 0.0  ;;  %2106 = vmatpush3.bf16.msra.mxu0 %v2257_v19  ;;  %2126 = vmatpush3.bf16.msra.mxu1 %v2258_v20 }
  0x16   : > { %556 = vadd.xlane.f32.xlu0 %v555_v2  ;;  %2107 = vmatprep.subr.bf16.mxu0 %v2359_v3  ;;  %v1972_v2 = vsel %vm983_vm8, 1.0, %v2359_v3 }
  0x17   : > { %2127 = vmatprep.subr.bf16.mxu1 %v2359_v3  ;;  %v1942_v33 = vld [vmem:[%s2857_s29] ss:$0 sm:$0xff] }
  0x19   : > { %2108 = vmatpush3.bf16.msra.mxu0 %v2259_v21  ;;  %2128 = vmatpush3.bf16.msra.mxu1 %v2260_v22 }
  0x1a   : > { %2109 = vmatprep.subr.bf16.mxu0 %v2359_v3  ;;  %2129 = vmatprep.subr.bf16.mxu1 %v2359_v3 }
  0x1d   : > { %2110 = vmatpush3.bf16.msra.mxu0 %v2261_v23  ;;  %2130 = vmatpush3.bf16.msra.mxu1 %v2262_v24 }
  0x1e   : > { %2111 = vmatprep.subr.bf16.mxu0 %v2359_v3  ;;  %2131 = vmatprep.subr.bf16.mxu1 %v2359_v3 }
  0x21   : > { %2112 = vmatpush3.bf16.msra.mxu0 %v2263_v25  ;;  %2132 = vmatpush3.bf16.msra.mxu1 %v2264_v26 }
  0x22   : > { %2113 = vmatprep.subr.bf16.mxu0 %v2359_v3  ;;  %2133 = vmatprep.subr.bf16.mxu1 %v2359_v3 }
  0x25   : > { %2114 = vmatpush3.bf16.msra.mxu0 %v2265_v27  ;;  %2134 = vmatpush3.bf16.msra.mxu1 %v2266_v28 }
  0x26   : > { %2139 = vmatprep.subr.bf16.mxu0 %v2359_v3  ;;  %2159 = vmatprep.subr.bf16.mxu1 %v2359_v3 }
  0xa3   : > { %v557_v11 = vpop.xlane.xlu0 %556 }
  0xa4   : > { %v558_v12 = vmul.f32 0.015625, %v557_v11 }
  0xa6   : > { %v559_v14 = vsub.f32 %v2469_v1, %v558_v12 }
  0xa8   : > { %v560_v15 = vmul.f32 %v2502_v13, %v559_v14  ;;  %v2637_v14 = vsel %vm1139_vm11, 1.0, %v2359_v3 }
  0xaa   : > { %v561_v16 = vmul.f32 %v560_v15, %v560_v15 }
  0xac   : > { %v562_v17 = vsel %vm554_vm0, %v561_v16, 0.0 }
  0xad   : > { %563 = vadd.xlane.f32.xlu0 %v562_v17 }
 0x13a   : > { %v564_v29 = vpop.xlane.xlu0 %563 }
 0x13b   : > { %v565_v30 = vmul.f32 0.015625, %v564_v29 }
 0x13d   : > { %v566_v31 = vadd.f32 1e-05, %v565_v30 }
 0x13f   : > { %2323 = vrsqrt.f32 %v566_v31 }
 0x149   : > { %v2324_v32 = vpop.eup %2323 }
 0x14a   : > { %v568_v34 = vmul.f32 %v2324_v32, %v560_v15 }
 0x14c   : > { %v575_v36 = vmul.f32 %v1942_v33, %v568_v34 }
 0x14e   : > { %v582_v37 = vadd.f32 %v1943_v35, %v575_v36 }
 0x150   : > { %v583_v39 = vpack.c.bf16 %v582_v37, %v582_v37 }
 0x152   : > { %2116 = vmatmul.mubr.bf16.vlgmr.msra.gmra.mrb[0].mxu0 %v583_v39  ;;  %2136 = vmatmul.mubr.bf16.vlgmr.msra.gmra.mrb[0].mxu1 %v583_v39 }
 0x153   : > { %2140 = vmatpush3.bf16.msra.mxu0 %v2267_v38  ;;  %2155 = vmatprep.mubr.msk.bf16.mxu0 %vm2360_vm2, %v2359_v3 }
 0x154   : > { %2141 = vmatprep.subr.bf16.mxu0 %v2359_v3  ;;  %2161 = vmatprep.mubr.msk.bf16.mxu1 %vm2360_vm2, %v2359_v3 }
 0x157   : > { %2142 = vmatpush3.bf16.msra.mxu0 %v2268_v40 }
 0x158   : > { %2143 = vmatprep.subr.bf16.mxu0 %v2359_v3 }
 0x15b   : > { %2144 = vmatpush3.bf16.msra.mxu0 %v2269_v41 }
 0x15c   : > { %2145 = vmatprep.subr.bf16.mxu0 %v2359_v3 }
 0x15f   : > { %2146 = vmatpush3.bf16.msra.mxu0 %v2270_v42 }
 0x160   : > { %2147 = vmatprep.subr.bf16.mxu0 %v2359_v3 }
 0x163   : > { %2148 = vmatpush3.bf16.msra.mxu0 %v2271_v43 }
 0x164   : > { %2149 = vmatprep.subr.bf16.mxu0 %v2359_v3 }
 0x167   : > { %2150 = vmatpush3.bf16.msra.mxu0 %v2272_v44 }
 0x168   : > { %2151 = vmatprep.subr.bf16.mxu0 %v2359_v3 }
 0x16b   : > { %2152 = vmatpush3.bf16.msra.mxu0 %v2273_v45 }
 0x16c   : > { %2153 = vmatprep.subr.bf16.mxu0 %v2359_v3 }
 0x16f   : > { %2154 = vmatpush3.bf16.msra.mxu0 %v2274_v46 }
 0x170   : > { %2207 = vmatprep.subr.bf16.mxu0 %v2359_v3 }
 0x172   : > { %2156 = vmatmul.mubr.bf16.vlgmr.msra.gmra.mrb[4].mxu0 %v583_v39 }
 0x173   : > { %2223 = vmatprep.mubr.msk.bf16.mxu0 %vm2360_vm2, %v2359_v3 }
 0x225   : > { %v689_v49 = vpop.f32.mrb[0].mxu0  ;;  %v800_v50 = vpop.f32.mrb[0].mxu1 }
 0x226   : > { %v2610_v52 = vadd.f32 %v1944_v47, %v689_v49  ;;  %v801_v53 = vadd.f32 %v1953_v48, %v800_v50  ;;  %v2117_v54 = vpop.f32.mrb[1].mxu0  ;;  %v2137_v55 = vpop.f32.mrb[1].mxu1 }
 0x227   : > { %v692_v56 = vpop.f32.mrb[2].mxu0  ;;  %v803_v57 = vpop.f32.mrb[2].mxu1 }
 0x228   : > { %v2612_v58 = vpack.c.bf16 %v801_v53, %v801_v53  ;;  %v2118_v59 = vpop.f32.mrb[3].mxu0  ;;  %v2138_v60 = vpop.f32.mrb[3].mxu1  ;;  %v2616_v62 = vmul.f32 %v1977_v51, %v2610_v52  ;;  %v923_v63 = vmul.f32 %v1971_v61, %v2610_v52  ;;  %v986_v4 = vmul.f32 %v1972_v2, %v2610_v52 }
 0x229   : > { %v1142_v59 = vmul.f32 %v2637_v14, %v2610_v52 }
 0x22a   : > { %2160 = vmatpush3.bf16.xpose.msra.mxu1 %v2612_v58  ;;  %v924_v0 = vpack.c.bf16 %v923_v63, %v923_v63  ;;  %v987_v5 = vpack.c.bf16 %v986_v4, %v986_v4 }
 0x22b   : > { %2165 = vmatprep.subr.bf16.mxu1 %v2359_v3  ;;  %v1143_v60 = vpack.c.bf16 %v1142_v59, %v1142_v59 }
 0x231   : > { %2162 = vmatmul.mubr.bf16.vlgmr.msra.gmra.mrb[4].mxu1 %v924_v0 }
 0x232   : > { %2166 = vmatpush3.bf16.xpose.msra.mxu1 %v2612_v58  ;;  %2167 = vmatprep.mubr.msk.bf16.mxu1 %vm2360_vm2, %v2359_v3 }
 0x233   : > { %2171 = vmatprep.subr.bf16.mxu1 %v2359_v3 }
 0x239   : > { %2168 = vmatmul.mubr.bf16.vlgmr.msra.gmra.mrb[8].mxu1 %v987_v5 }
 0x23a   : > { %2173 = vmatprep.mubr.msk.bf16.mxu1 %vm2360_vm2, %v2359_v3 }
 0x245   : > { %v911_v7 = vpop.f32.mrb[4].mxu0 }
 0x246   : > { %v912_v8 = vadd.f32 %v1962_v6, %v911_v7  ;;  %v2157_v11 = vpop.f32.mrb[5].mxu0 }
 0x247   : > { %v914_v12 = vpop.f32.mrb[6].mxu0 }
 0x248   : > { %v2158_v15 = vpop.f32.mrb[7].mxu0  ;;  %v1040_v16 = vmul.f32 %v1972_v2, %v912_v8  ;;  %v978_v17 = vmul.f32 %v1971_v61, %v912_v8  ;;  %v1196_v18 = vmul.f32 %v2637_v14, %v912_v8  ;;  %v1304_v19 = vmul.f32 %v1977_v51, %v912_v8 }
 0x24a   : > { %v1041_v10 = vpack.c.bf16 %v1040_v16, %v1040_v16  ;;  %v979_v20 = vpack.c.bf16 %v978_v17, %v978_v17  ;;  %v1197_v21 = vpack.c.bf16 %v1196_v18, %v1196_v18  ;;  %v1305_v22 = vpack.c.bf16 %v1304_v19, %v1304_v19 }
 0x24b   : > { %v1251_v17 = vpack.c.bf16 %v2616_v62, %v2616_v62 }
 0x24c   : > { %v1049_v23 = vsel %vm1047_vm12, %v1041_v10, 0  ;;  %v1095_v24 = vsel %vm1047_vm12, %v979_v20, 0  ;;  %v1203_v25 = vsel %vm1047_vm12, %v1197_v21, 0  ;;  %v2640_v26 = vsel %vm1047_vm12, %v1305_v22, 0 }
 0x24d   : > { %2172 = vmatpush3.bf16.msra.mxu1 %v1049_v23 }
 0x24e   : > { %2177 = vmatprep.subr.bf16.mxu1 %v2359_v3 }
 0x304   : > { %v959_v27 = vpop.f32.mrb[4].mxu1 }
 0x305   : > { %v2163_v28 = vpop.f32.mrb[5].mxu1  ;;  %v965_v35 = vmul.f32 0.25, %v959_v27  ;;  %v2276_v27 = vld [vmem:[%s2845_s9 + $0x8] sm:$0xff]  }
 0x306   : > { %v962_v29 = vpop.f32.mrb[6].mxu1  ;;  %v2277_v28 = vld [vmem:[%s2845_s9 + $0x10] sm:$0xff]  }
 0x307   : > { %v2164_v30 = vpop.f32.mrb[7].mxu1  ;;  %v967_v38 = vsel %vm966_vm13, %v965_v35, -inf  ;;  %v2278_v29 = vld [vmem:[%s2845_s9 + $0x18] sm:$0xff]  }
 0x308   : > { %v2279_v30 = vld [vmem:[%s2845_s9 + $0x20] sm:$0xff]  }
 0x30c   : > { %v1022_v31 = vpop.f32.mrb[8].mxu1 }
 0x30d   : > { %v1028_v32 = vmul.f32 0.25, %v1022_v31  ;;  %v2169_v33 = vpop.f32.mrb[9].mxu1  ;;  %v2280_v31 = vld [vmem:[%s2845_s9 + $0x28] sm:$0xff]  }
 0x30e   : > { %v1025_v34 = vpop.f32.mrb[10].mxu1 }
 0x30f   : > { %v2170_v36 = vpop.f32.mrb[11].mxu1  ;;  %v1029_v37 = vsel %vm966_vm13, %v1028_v32, -inf }
 0x310   : > { %1030 = vmax.xlane.f32.xlu1 %v1029_v37  ;;  %v2282_v37 = vld [vmem:[%s2845_s9 + $0x38] sm:$0xff]  }
 0x314   : > { %968 = vmax.xlane.f32.xlu1 %v967_v38 }
 0x39d   : > { %v1031_v39 = vpop.xlane.xlu1 %1030 }
 0x39e   : > { %v1032_v40 = vsub.f32 %v1028_v32, %v1031_v39  ;;  %v2281_v32 = vld [vmem:[%s2845_s9 + $0x30] sm:$0xff]  }
 0x3a0   : > { %v1033_v41 = vmul.f32 1.442695, %v1032_v40 }
 0x3a1   : > { %v969_v42 = vpop.xlane.xlu1 %968 }
 0x3a2   : > { %2325 = vpow2.f32 %v1033_v41  ;;  %v970_v43 = vsub.f32 %v965_v35, %v969_v42 }
 0x3a4   : > { %v971_v44 = vmul.f32 1.442695, %v970_v43 }
 0x3a6   : > { %2327 = vpow2.f32 %v971_v44 }
 0x3ac   : > { %v2326_v45 = vpop.eup %2325 }
 0x3ad   : > { %v1035_v46 = vsel %vm966_vm13, %v2326_v45, 0.0 }
 0x3ae   : > { %1036 = vadd.xlane.f32.xlu0 %v1035_v46 }
 0x3b0   : > { %v2328_v47 = vpop.eup %2327 }
 0x3b1   : > { %v973_v48 = vsel %vm966_vm13, %v2328_v47, 0.0 }
 0x3b2   : > { %974 = vadd.xlane.f32.xlu1 %v973_v48 }
 0x43b   : > { %v1037_v49 = vpop.xlane.xlu0 %1036 }
 0x43c   : > { %2329 = vrcp.f32 %v1037_v49 }
 0x43f   : > { %v975_v50 = vpop.xlane.xlu1 %974 }
 0x440   : > { %2331 = vrcp.f32 %v975_v50  ;;  %v2283_v50 = vld [vmem:[%s2849_s13] ss:$8 sps:$4 sm:$0xff]  }
 0x446   : > { %v2330_v51 = vpop.eup %2329 }
 0x447   : > { %v1039_v53 = vmul.f32 %v2330_v51, %v2326_v45  ;;  %v2285_v51 = vld [vmem:[%s2849_s13 + $0x4] ss:$8 sps:$4 sm:$0xff]  }
 0x449   : > { %v1042_v54 = vpack.c.bf16 %v1039_v53, %v1039_v53  ;;  %v2286_v53 = vld [vmem:[%s2849_s13 + $0x10] ss:$8 sps:$4 sm:$0xff]  }
 0x44a   : > { %v2332_v55 = vpop.eup %2331 }
 0x44b   : > { %2174 = vmatmul.mubr.msk.bf16.vlgmr.msra.gmra.mrb[12].mxu1 %vm1043_vm14, %v1042_v54  ;;  %v977_v56 = vmul.f32 %v2332_v55, %v2328_v47  ;;  %v2291_v54 = vld [vmem:[%s2849_s13 + $0x24] ss:$8 sps:$4 sm:$0xff]   ;;  %v2289_v55 = vld [vmem:[%s2849_s13 + $0x20] ss:$8 sps:$4 sm:$0xff]  }
 0x44c   : > { %2178 = vmatpush3.bf16.msra.mxu1 %v1095_v24  ;;  %2179 = vmatprep.mubr.msk.bf16.mxu1 %vm2360_vm2, %v2359_v3 }
 0x44d   : > { %2183 = vmatprep.subr.bf16.mxu1 %v2359_v3  ;;  %v980_v57 = vpack.c.bf16 %v977_v56, %v977_v56 }
 0x457   : > { %2180 = vmatmul.mubr.msk.bf16.vlgmr.msra.gmra.mrb[12].mxu1 %vm1043_vm14, %v980_v57 }
 0x458   : > { %2184 = vmatpush3.bf16.xpose.msra.mxu1 %v2612_v58  ;;  %2185 = vmatprep.mubr.msk.bf16.mxu1 %vm2360_vm2, %v2359_v3 }
 0x459   : > { %2189 = vmatprep.subr.bf16.mxu1 %v2359_v3 }
 0x45f   : > { %2186 = vmatmul.mubr.bf16.vlgmr.msra.gmra.mrb[16].mxu1 %v1143_v60 }
 0x460   : > { %2190 = vmatpush3.bf16.msra.mxu1 %v1203_v25  ;;  %2191 = vmatprep.mubr.msk.bf16.mxu1 %vm2360_vm2, %v2359_v3 }
 0x461   : > { %2195 = vmatprep.subr.bf16.mxu1 %v2359_v3 }
 0x532   : > { %v1178_v61 = vpop.f32.mrb[16].mxu1 }
 0x533   : > { %v1184_v63 = vmul.f32 0.25, %v1178_v61  ;;  %v2187_v0 = vpop.f32.mrb[17].mxu1 }
 0x534   : > { %v1181_v2 = vpop.f32.mrb[18].mxu1  ;;  %v2294_v0 = vld [vmem:[%s2849_s13 + $0x34] ss:$8 sps:$4 sm:$0xff]  }
 0x535   : > { %v2188_v4 = vpop.f32.mrb[19].mxu1  ;;  %v1185_v5 = vsel %vm966_vm13, %v1184_v63, -inf  ;;  %v2292_v2 = vld [vmem:[%s2849_s13 + $0x30] ss:$8 sps:$4 sm:$0xff]  }
 0x536   : > { %1186 = vmax.xlane.f32.xlu0 %v1185_v5  ;;  %v2297_v4 = vld [vmem:[%s2849_s13 + $0x44] ss:$8 sps:$4 sm:$0xff]   ;;  %v2300_v5 = vld [vmem:[%s2849_s13 + $0x54] ss:$8 sps:$4 sm:$0xff]  }
 0x5c3   : > { %v1187_v6 = vpop.xlane.xlu0 %1186 }
 0x5c4   : > { %v1188_v7 = vsub.f32 %v1184_v63, %v1187_v6  ;;  %v2298_v6 = vld [vmem:[%s2849_s13 + $0x50] ss:$8 sps:$4 sm:$0xff]  }
 0x5c6   : > { %v1189_v8 = vmul.f32 1.442695, %v1188_v7  ;;  %v2303_v7 = vld [vmem:[%s2849_s13 + $0x64] ss:$8 sps:$4 sm:$0xff]  }
 0x5c8   : > { %2333 = vpow2.f32 %v1189_v8  ;;  %v2301_v8 = vld [vmem:[%s2849_s13 + $0x60] ss:$8 sps:$4 sm:$0xff]  }
 0x5d2   : > { %v2334_v52 = vpop.eup %2333 }
 0x5d3   : > { %v1191_v11 = vsel %vm966_vm13, %v2334_v52, 0.0 }
 0x5d4   : > { %1192 = vadd.xlane.f32.xlu1 %v1191_v11  ;;  %v2304_v11 = vld [vmem:[%s2849_s13 + $0x70] ss:$8 sps:$4 sm:$0xff]  }
 0x661   : > { %v1193_v12 = vpop.xlane.xlu1 %1192 }
 0x662   : > { %2335 = vrcp.f32 %v1193_v12  ;;  %v2361_v12 = vmov 0  }
 0x66c   : > { %v2336_v14 = vpop.eup %2335 }
 0x66d   : > { %v1195_v15 = vmul.f32 %v2336_v14, %v2334_v52  ;;  %v2306_v52 = vld [vmem:[%s2849_s13 + $0x74] ss:$8 sps:$4 sm:$0xff]  }
 0x66f   : > { %v1198_v16 = vpack.c.bf16 %v1195_v15, %v1195_v15 }
 0x671   : > { %2192 = vmatmul.mubr.msk.bf16.vlgmr.msra.gmra.mrb[12].mxu1 %vm1043_vm14, %v1198_v16 }
 0x672   : > { %2196 = vmatpush3.bf16.xpose.msra.mxu1 %v2612_v58  ;;  %2197 = vmatprep.mubr.msk.bf16.mxu1 %vm2360_vm2, %v2359_v3 }
 0x673   : > { %2201 = vmatprep.subr.bf16.mxu1 %v2359_v3 }
 0x679   : > { %2198 = vmatmul.mubr.bf16.vlgmr.msra.gmra.mrb[20].mxu1 %v1251_v17 }
 0x67a   : > { %2202 = vmatpush3.bf16.msra.mxu1 %v2640_v26  ;;  %2203 = vmatprep.mubr.msk.bf16.mxu1 %vm2360_vm2, %v2359_v3  ;;  %v2275_v26 = vld [vmem:[%s2845_s9] sm:$0xff]  }
 0x67b   : > { %2208 = vmatpush3.bf16.msra.mxu0 %v2275_v26  ;;  %1607 = vmatprep.subr.bf16.mxu1 %v2285_v51  ;;  %v2312_v26 = vld [vmem:[%s2851_s15 + $0x10] sm:$0xff]  }
 0x67c   : > { %2209 = vmatprep.subr.bf16.mxu0 %v2359_v3 }
 0x67f   : > { %2210 = vmatpush3.bf16.msra.mxu0 %v2276_v27  ;;  %v2313_v27 = vld [vmem:[%s2851_s15 + $0x58] sm:$0xff]  }
 0x680   : > { %2211 = vmatprep.subr.bf16.mxu0 %v2359_v3 }
 0x683   : > { %2212 = vmatpush3.bf16.msra.mxu0 %v2277_v28  ;;  %v2314_v28 = vld [vmem:[%s2851_s15 + $0x18] sm:$0xff]  }
 0x684   : > { %2213 = vmatprep.subr.bf16.mxu0 %v2359_v3 }
 0x687   : > { %2214 = vmatpush3.bf16.msra.mxu0 %v2278_v29  ;;  %v2315_v29 = vld [vmem:[%s2851_s15 + $0x60] sm:$0xff]  }
 0x688   : > { %2215 = vmatprep.subr.bf16.mxu0 %v2359_v3 }
 0x68b   : > { %2216 = vmatpush3.bf16.msra.mxu0 %v2279_v30  ;;  %v2316_v30 = vld [vmem:[%s2851_s15 + $0x20] sm:$0xff]  }
 0x68c   : > { %2217 = vmatprep.subr.bf16.mxu0 %v2359_v3 }
 0x68f   : > { %2218 = vmatpush3.bf16.msra.mxu0 %v2280_v31  ;;  %v2317_v31 = vld [vmem:[%s2851_s15 + $0x68] sm:$0xff]  }
 0x690   : > { %2219 = vmatprep.subr.bf16.mxu0 %v2359_v3 }
 0x693   : > { %2220 = vmatpush3.bf16.msra.mxu0 %v2281_v32  ;;  %v2318_v32 = vld [vmem:[%s2851_s15 + $0x28] sm:$0xff]  }
 0x694   : > { %2221 = vmatprep.subr.bf16.mxu0 %v2359_v3  ;;  %v1987_v3 = vld [vmem:[%s2846_s10] ss:$0 sm:$0xff] }
 0x697   : > { %2222 = vmatpush3.bf16.msra.mxu0 %v2282_v37  ;;  %v1518_v37 = vshrl.u32 %v547_v9, 7 }
 0x74c   : > { %v1286_v18 = vpop.f32.mrb[20].mxu1 }
 0x74d   : > { %v1292_v19 = vmul.f32 0.25, %v1286_v18  ;;  %v2199_v10 = vpop.f32.mrb[21].mxu1  ;;  %v1988_v18 = vld [vmem:[%s2847_s11] ss:$0 sm:$0xff] }
 0x74e   : > { %v1289_v20 = vpop.f32.mrb[22].mxu1  ;;  %v1989_v10 = vld [vmem:[%s2848_s12] ss:$0 sm:$0xff] }
 0x74f   : > { %v2200_v21 = vpop.f32.mrb[23].mxu1  ;;  %v1293_v58 = vsel %vm966_vm13, %v1292_v19, -inf }
 0x750   : > { %1294 = vmax.xlane.f32.xlu0 %v1293_v58 }
 0x7dd   : > { %v1295_v22 = vpop.xlane.xlu0 %1294 }
 0x7de   : > { %v1296_v23 = vsub.f32 %v1292_v19, %v1295_v22  ;;  %v2307_v22 = vld [vmem:[%s2851_s15 + $0x40] sm:$0xff]  }
 0x7df   : > { %2077 = vmatprep.subr.bf16.mxu0 %v2307_v22 }
 0x7e0   : > { %v1297_v24 = vmul.f32 1.442695, %v1296_v23  ;;  %v2308_v23 = vld [vmem:[%s2851_s15] sm:$0xff]  }
 0x7e2   : > { %2337 = vpow2.f32 %v1297_v24  ;;  %v2309_v24 = vld [vmem:[%s2851_s15 + $0x48] sm:$0xff]  }
 0x7ec   : > { %v2338_v25 = vpop.eup %2337 }
 0x7ed   : > { %v1299_v62 = vsel %vm966_vm13, %v2338_v25, 0.0 }
 0x7ee   : > { %1300 = vadd.xlane.f32.xlu1 %v1299_v62  ;;  %v2311_v62 = vld [vmem:[%s2851_s15 + $0x50] sm:$0xff]  }
 0x87b   : > { %v1301_v33 = vpop.xlane.xlu1 %1300 }
 0x87c   : > { %2339 = vrcp.f32 %v1301_v33  ;;  %v2319_v33 = vld [vmem:[%s2851_s15 + $0x70] sm:$0xff]  }
 0x886   : > { %v2340_v34 = vpop.eup %2339 }
 0x887   : > { %v1303_v35 = vmul.f32 %v2340_v34, %v2338_v25  ;;  %v2310_v25 = vld [vmem:[%s2851_s15 + $0x8] sm:$0xff]   ;;  %v2320_v34 = vld [vmem:[%s2851_s15 + $0x30] sm:$0xff]  }
 0x889   : > { %v1306_v36 = vpack.c.bf16 %v1303_v35, %v1303_v35  ;;  %v2321_v35 = vld [vmem:[%s2851_s15 + $0x78] sm:$0xff]  }
 0x88b   : > { %2204 = vmatmul.mubr.msk.bf16.vlgmr.msra.gmra.mrb[12].mxu1 %vm1043_vm14, %v1306_v36  ;;  %v2322_v36 = vld [vmem:[%s2851_s15 + $0x38] sm:$0xff]  }
 0x88c   : > { %1608 = vmatpush1.bf16.msra.mxu1 %v2283_v50  ;;  %1639 = vmatprep.mubr.bf16.mxu1 %v2361_v12 }
 0x95e   : > { %v1347_v38 = vpop.f32.mrb[12].mxu1 }
 0x95f   : > { %v1354_v39 = vpack.c.bf16 %v1347_v38, %v1347_v38  ;;  %v2205_v40 = vpop.f32.mrb[13].mxu1  ;;  %v1519_v38 = vsub.s32 0, %v1518_v37 }
 0x960   : > { %v1350_v41 = vpop.f32.mrb[14].mxu1  ;;  %v1523_v40 = vsub.s32 1, %v1518_v37 }
 0x961   : > { %v2206_v42 = vpop.f32.mrb[15].mxu1  ;;  %2224 = vmatmul.mubr.bf16.vlgmr.msra.gmra.mrb[8].mxu0 %v1354_v39  ;;  %v1515_v39 = vld [vmem:[%s2850_s14] sm:$0x3] }
 0x962   : > { %2078 = vmatpush3.bf16.msra.mxu0 %v2308_v23  ;;  %v1520_v41 = vrot.slane %v1515_v39, %v1519_v38  ;;  %v1524_v42 = vrot.slane %v1515_v39, %v1523_v40 }
 0x963   : > { %2079 = vmatprep.subr.bf16.mxu0 %v2309_v24 }
 0x966   : > { %2080 = vmatpush3.bf16.msra.mxu0 %v2310_v25 }
 0x967   : > { %2081 = vmatprep.subr.bf16.mxu0 %v2311_v62  ;;  %v2362_v62 = vmov -1.0  }
 0x96a   : > { %2082 = vmatpush3.bf16.msra.mxu0 %v2312_v26 }
 0x96b   : > { %2083 = vmatprep.subr.bf16.mxu0 %v2313_v27 }
 0x96e   : > { %2084 = vmatpush3.bf16.msra.mxu0 %v2314_v28 }
 0x96f   : > { %2085 = vmatprep.subr.bf16.mxu0 %v2315_v29 }
 0x972   : > { %2086 = vmatpush3.bf16.msra.mxu0 %v2316_v30 }
 0x973   : > { %2087 = vmatprep.subr.bf16.mxu0 %v2317_v31 }
 0x976   : > { %2088 = vmatpush3.bf16.msra.mxu0 %v2318_v32 }
 0x977   : > { %2089 = vmatprep.subr.bf16.mxu0 %v2319_v33 }
 0x97a   : > { %2090 = vmatpush3.bf16.msra.mxu0 %v2320_v34 }
 0x97b   : > { %2091 = vmatprep.subr.bf16.mxu0 %v2321_v35 }
 0x97e   : > { %2092 = vmatpush3.bf16.msra.mxu0 %v2322_v36 }
 0xa34   : > { %v1453_v43 = vpop.f32.mrb[8].mxu0 }
 0xa35   : > { %v1459_v44 = vadd.f32 %v1453_v43, %v2469_v1  ;;  %v2225_v45 = vpop.f32.mrb[9].mxu0  ;;  %v2288_v1 = vld [vmem:[%s2849_s13 + $0x14] ss:$8 sps:$4 sm:$0xff]  }
 0xa36   : > { %v1456_v46 = vpop.f32.mrb[10].mxu0  ;;  %1609 = vmatprep.subr.bf16.mxu1 %v2288_v1 }
 0xa37   : > { %v2711_v47 = vadd.f32 %v1987_v3, %v1459_v44  ;;  %v2226_v48 = vpop.f32.mrb[11].mxu0  ;;  %1610 = vmatpush1.bf16.msra.mxu1 %v2286_v53 }
 0xa38   : > { %1611 = vmatprep.subr.bf16.mxu1 %v2291_v54 }
 0xa39   : > { %v1470_v49 = vsel %vm554_vm0, %v2711_v47, 0.0 }
 0xa3a   : > { %1471 = vadd.xlane.f32.xlu0 %v1470_v49 }
 0xa3b   : > { %1612 = vmatpush1.bf16.msra.mxu1 %v2289_v55 }
 0xa3c   : > { %1613 = vmatprep.subr.bf16.mxu1 %v2294_v0 }
 0xa3f   : > { %1614 = vmatpush1.bf16.msra.mxu1 %v2292_v2 }
 0xa40   : > { %1615 = vmatprep.subr.bf16.mxu1 %v2297_v4 }
 0xac7   : > { %v1472_v56 = vpop.xlane.xlu0 %1471 }
 0xac8   : > { %v1473_v57 = vmul.f32 0.015625, %v1472_v56 }
 0xaca   : > { %v1474_v59 = vsub.f32 %v2711_v47, %v1473_v57 }
 0xacc   : > { %v1475_v60 = vmul.f32 %v2502_v13, %v1474_v59  ;;  %v2295_v13 = vld [vmem:[%s2849_s13 + $0x40] ss:$8 sps:$4 sm:$0xff]  }
 0xacd   : > { %1616 = vmatpush1.bf16.msra.mxu1 %v2295_v13 }
 0xace   : > { %v1476_v61 = vmul.f32 %v1475_v60, %v1475_v60  ;;  %1617 = vmatprep.subr.bf16.mxu1 %v2300_v5 }
 0xad0   : > { %v1477_v63 = vsel %vm554_vm0, %v1476_v61, 0.0 }
 0xad1   : > { %1478 = vadd.xlane.f32.xlu1 %v1477_v63  ;;  %1618 = vmatpush1.bf16.msra.mxu1 %v2298_v6 }
 0xad2   : > { %1619 = vmatprep.subr.bf16.mxu1 %v2303_v7 }
 0xad5   : > { %1620 = vmatpush1.bf16.msra.mxu1 %v2301_v8 }
 0xad6   : > { %1621 = vmatprep.subr.bf16.mxu1 %v2306_v52 }
 0xad9   : > { %1622 = vmatpush1.bf16.msra.mxu1 %v2304_v11 }
 0xb5e   : > { %v1479_v14 = vpop.xlane.xlu1 %1478 }
 0xb5f   : > { %v1480_v15 = vmul.f32 0.015625, %v1479_v14 }
 0xb61   : > { %v1481_v16 = vadd.f32 1e-05, %v1480_v15 }
 0xb63   : > { %2341 = vrsqrt.f32 %v1481_v16 }
 0xb6d   : > { %v2342_v17 = vpop.eup %2341 }
 0xb6e   : > { %v1483_v19 = vmul.f32 %v2342_v17, %v1475_v60 }
 0xb70   : > { %v1490_v20 = vmul.f32 %v1988_v18, %v1483_v19 }
 0xb72   : > { %v1497_v21 = vadd.f32 %v1989_v10, %v1490_v20 }
 0xb74   : > { %v1498_v58 = vpack.c.bf16 %v1497_v21, %v1497_v21 }
 0xb76   : > { %1640 = vmatmul.mubr.bf16.vlgmr.msra.gmra.mrb[24].mxu1 %v1498_v58 }
 0xc49   : > { %v1641_v43 = vpop.f32.mrb[24].mxu1 }
 0xc4a   : > { %v1642_v3 = vadd.f32 %v1641_v43, %v1520_v41  ;;  %v1643_v44 = vpop.f32.mrb[25].mxu1  ;;  %v2022_v43 = vld [vmem:[%s2852_s16] ss:$0 sm:$0xff] }
 0xc4b   : > { %v1644_v45 = vadd.f32 %v1643_v44, %v1524_v42  ;;  %v1645_v46 = vpop.f32.mrb[26].mxu1 }
 0xc4c   : > { %v1650_v48 = vmul.f32 0.70710677, %v1642_v3  ;;  %v1646_v49 = vpop.f32.mrb[27].mxu1  ;;  %v1648_v31 = vmul.f32 0.5, %v1642_v3 }
 0xc4d   : > { %v1651_v50 = vmul.f32 0.70710677, %v1644_v45  ;;  %v1649_v33 = vmul.f32 0.5, %v1644_v45 }
 0xc4e   : > { %v1656_v51 = vand.u32 2147483647, %v1650_v48  ;;  %vm1652_vm15 = vcmp.ge.f32.partialorder %v1650_v48, 0.0 }
 0xc4f   : > { %v1657_v1 = vand.u32 2147483647, %v1651_v50  ;;  %vm1653_vm0 = vcmp.ge.f32.partialorder %v1651_v50, 0.0  ;;  %v1654_v26 = vsel %vm1652_vm15, 1.0, %v2362_v62 }
 0xc50   : > { %v1658_v53 = vmul.f32 0.3275911, %v1656_v51  ;;  %v1682_v56 = vsub.f32 0.0, %v1656_v51  ;;  %v1655_v29 = vsel %vm1653_vm0, 1.0, %v2362_v62 }
 0xc51   : > { %v1659_v9 = vmul.f32 0.3275911, %v1657_v1  ;;  %v1683_v57 = vsub.f32 0.0, %v1657_v1 }
 0xc52   : > { %v1660_v54 = vadd.f32 1.0, %v1658_v53  ;;  %v1684_v60 = vmul.f32 %v1682_v56, %v1656_v51 }
 0xc53   : > { %v1661_v55 = vadd.f32 1.0, %v1659_v9  ;;  %v1685_v0 = vmul.f32 %v1683_v57, %v1657_v1 }
 0xc54   : > { %2343 = vrcp.f32 %v1660_v54  ;;  %v1686_v13 = vmul.f32 1.442695, %v1684_v60 }
 0xc55   : > { %2345 = vrcp.f32 %v1661_v55  ;;  %v1688_v7 = vmul.f32 1.442695, %v1685_v0 }
 0xc56   : > { %2347 = vpow2.f32 %v1686_v13 }
 0xc57   : > { %2349 = vpow2.f32 %v1688_v7 }
 0xc5e   : > { %v2344_v59 = vpop.eup %2343 }
 0xc5f   : > { %v2346_v61 = vpop.eup %2345  ;;  %v1664_v63 = vmul.f32 1.0614054, %v2344_v59 }
 0xc60   : > { %v1665_v2 = vmul.f32 1.0614054, %v2346_v61  ;;  %v2348_v21 = vpop.eup %2347 }
 0xc61   : > { %v1666_v4 = vadd.f32 -1.4531521, %v1664_v63  ;;  %v2350_v22 = vpop.eup %2349 }
 0xc62   : > { %v1667_v5 = vadd.f32 -1.4531521, %v1665_v2 }
 0xc63   : > { %v1668_v6 = vmul.f32 %v2344_v59, %v1666_v4 }
 0xc64   : > { %v1669_v8 = vmul.f32 %v2346_v61, %v1667_v5 }
 0xc65   : > { %v1670_v52 = vadd.f32 1.4214138, %v1668_v6 }
 0xc66   : > { %v1671_v11 = vadd.f32 1.4214138, %v1669_v8 }
 0xc67   : > { %v1672_v12 = vmul.f32 %v2344_v59, %v1670_v52 }
 0xc68   : > { %v1673_v14 = vmul.f32 %v2346_v61, %v1671_v11 }
 0xc69   : > { %v1674_v15 = vadd.f32 -0.28449672, %v1672_v12 }
 0xc6a   : > { %v1675_v16 = vadd.f32 -0.28449672, %v1673_v14 }
 0xc6b   : > { %v1676_v17 = vmul.f32 %v2344_v59, %v1674_v15 }
 0xc6c   : > { %v1677_v18 = vmul.f32 %v2346_v61, %v1675_v16 }
 0xc6d   : > { %v1678_v19 = vadd.f32 0.2548296, %v1676_v17 }
 0xc6e   : > { %v1679_v10 = vadd.f32 0.2548296, %v1677_v18 }
 0xc6f   : > { %v1680_v20 = vmul.f32 %v2344_v59, %v1678_v19 }
 0xc70   : > { %v1681_v58 = vmul.f32 %v2346_v61, %v1679_v10 }
 0xc71   : > { %v1690_v23 = vmul.f32 %v2348_v21, %v1680_v20 }
 0xc72   : > { %v1691_v24 = vmul.f32 %v2350_v22, %v1681_v58 }
 0xc73   : > { %v1692_v25 = vsub.f32 1.0, %v1690_v23 }
 0xc74   : > { %v1693_v27 = vsub.f32 1.0, %v1691_v24 }
 0xc75   : > { %v1694_v28 = vmul.f32 %v1692_v25, %v1654_v26 }
 0xc76   : > { %v1695_v30 = vmul.f32 %v1693_v27, %v1655_v29 }
 0xc77   : > { %v1696_v32 = vadd.f32 1.0, %v1694_v28 }
 0xc78   : > { %v1697_v34 = vadd.f32 1.0, %v1695_v30 }
 0xc79   : > { %v1698_v35 = vmul.f32 %v1696_v32, %v1648_v31 }
 0xc7a   : > { %v1699_v36 = vmul.f32 %v1697_v34, %v1649_v33 }
 0xc7b   : > { %v1700_v38 = vpack.c.bf16 %v1698_v35, %v1698_v35 }
 0xc7c   : > { %v1701_v37 = vpack.c.bf16 %v1699_v36, %v1699_v36 }
 0xc7e   : > { %1862 = vmatprep.mubr.bf16.mxu0 %v1701_v37 }
 0xc7f   : > { %1863 = vmatmul.mubr.bf16.vlgmr.msra.gmra.mrb[12].mxu0 %v1700_v38 }
 0xd52   : > { %v2093_v39 = vpop.f32.mrb[12].mxu0 }
 0xd53   : > { %v2094_v40 = vpop.f32.mrb[13].mxu0 }
 0xd54   : > { %v2095_v41 = vadd.f32 %v2094_v40, %v2093_v39  ;;  %v2096_v42 = vpop.f32.mrb[14].mxu0 }
 0xd55   : > { %v2097_v44 = vpop.f32.mrb[15].mxu0 }
 0xd56   : > { %v1870_v3 = vadd.f32 %v2095_v41, %v2711_v47 }
 0xd58   : > { %v1878_v45 = vadd.f32 %v2022_v43, %v1870_v3 }
 0xd5a   : > { %v1879_v46 = vpack.c.bf16 %v1878_v45, %v1878_v45 }
 0xd5c   : > { %1880 = vst [vmem:[%s543_s23] sm:$0x3] %v1879_v46 }
 0xd5d PF: > { %s27_s24 = sadd.s32 1, %s2357_s24  }
 0xd5e   : > { %p24_p4 = scmp.ge.s32.totalorder %s27_s24, 4  }
 0xd60   :  { %26 = sbr.rel (!%p24_p4) target bundleno = 3 (0x3), region = 118 }

// kernel: _lambda_.15
= control target key start
LH: loop header
LB: loop body
LE: loop exit
PB: predicated region body
PF: predicated region fallthrough
CT: control target
= control target key end

     0   :  { %s422_s0 = inlined_call_operand.vmem [shape: f32[32,128], index: 0, kind: input, shape index: {}]   ;;  %s423_s1 = inlined_call_operand.vmem [shape: bf16[32,128], index: 1, kind: input, shape index: {}]   ;;  %s424_s2 = inlined_call_operand.vmem [shape: bf16[128,128], index: 2, kind: input, shape index: {}]   ;;  %s425_s3 = inlined_call_operand.vmem [shape: f32[1,128], index: 3, kind: input, shape index: {}]   ;;  %s426_s4 = inlined_call_operand.vmem [shape: f32[32,1], index: 4, kind: input, shape index: {}]   ;;  %s427_s5 = inlined_call_operand.hbm [shape: f32[1,1], index: 5, kind: output, shape index: {}]  }
   0x1   :  { %v290_v0 = vld [vmem:[%s424_s2] sm:$0xff]   ;;  %v291_v1 = vld [vmem:[%s424_s2 + $0x8] sm:$0xff]   ;;  %v292_v2 = vld [vmem:[%s424_s2 + $0x10] sm:$0xff]  }
   0x2   :  { %263 = vmatprep.subr.bf16.mxu0 %v290_v0  ;;  %v293_v3 = vld [vmem:[%s424_s2 + $0x18] sm:$0xff]   ;;  %v298_v4 = vld [vmem:[%s423_s1] sm:$0xff]  }
   0x3   :  { %264 = vmatpush3.bf16.msra.mxu0 %v290_v0  ;;  %279 = vmatprep.mubr.bf16.mxu0 %v298_v4 }
   0x4   :  { %265 = vmatprep.subr.bf16.mxu0 %v291_v1 }
   0x7   :  { %266 = vmatpush3.bf16.msra.mxu0 %v291_v1 }
   0x8   :  { %267 = vmatprep.subr.bf16.mxu0 %v292_v2 }
   0x9   :  { %10 = vsyncpa [#allocation3], 0  ;;  %v294_v5 = vld [vmem:[%s424_s2 + $0x20] sm:$0xff]   ;;  %v295_v6 = vld [vmem:[%s424_s2 + $0x28] sm:$0xff]   ;;  %vm190_vm0 = vcmask 7168   ;;  %s302_s7 = scalar_lea.hbm %s427_s5, 16 }
   0xa   :  { %v296_v7 = vld [vmem:[%s424_s2 + $0x30] sm:$0xff]   ;;  %v297_v8 = vld [vmem:[%s424_s2 + $0x38] sm:$0xff]   ;;  %v299_v9 = vld [vmem:[%s423_s1 + $0x8] sm:$0xff]   ;;  %p303_p0 = scmp.ne.s32.totalorder %s427_s5, %s302_s7  ;;  %p306_p1 = scmp.lt.u32.totalorder %s302_s7, %s427_s5 }
   0xb   :  { %268 = vmatpush3.bf16.msra.mxu0 %v292_v2  ;;  %v242_v10 = vld [vmem:[%s425_s3] ss:$0 sm:$0xff]  ;;  %v160_v12 = vld [vmem:[%s422_s0 + $0x10] sm:$0xff]  ;;  %v161_v18 = vld [vmem:[%s422_s0 + $0x18] sm:$0xff] }
   0xc   :  { %269 = vmatprep.subr.bf16.mxu0 %v293_v3  ;;  %v158_v15 = vld [vmem:[%s422_s0] sm:$0xff]  ;;  %v159_v22 = vld [vmem:[%s422_s0 + $0x8] sm:$0xff]  ;;  %v184_v35 = vld [vmem:[%s426_s4 + $0x10] sm:$0xff]  ;;  %p308_p2 = pnand %p306_p1, %p303_p0 }
   0xd   :  { %v182_v31 = vld [vmem:[%s426_s4] sm:$0xff]  ;;  %v183_v32 = vld [vmem:[%s426_s4 + $0x8] sm:$0xff]  ;;  %v185_v37 = vld [vmem:[%s426_s4 + $0x18] sm:$0xff]  ;;  %v210_v38 = vsel %vm190_vm0, %v184_v35, 0.0 }
   0xe   :  { %v207_v33 = vsel %vm190_vm0, %v182_v31, 0.0  ;;  %v208_v34 = vsel %vm190_vm0, %v183_v32, 0.0  ;;  %v212_v40 = vsel %vm190_vm0, %v185_v37, 0.0 }
   0xf   :  { %270 = vmatpush3.bf16.msra.mxu0 %v293_v3  ;;  %v209_v36 = vadd.f32 %v208_v34, %v207_v33 }
  0x10   :  { %271 = vmatprep.subr.bf16.mxu0 %v294_v5 }
  0x11   :  { %v211_v39 = vadd.f32 %v210_v38, %v209_v36 }
  0x13   :  { %272 = vmatpush3.bf16.msra.mxu0 %v294_v5  ;;  %v213_v41 = vadd.f32 %v212_v40, %v211_v39 }
  0x14   :  { %273 = vmatprep.subr.bf16.mxu0 %v295_v6 }
  0x17   :  { %274 = vmatpush3.bf16.msra.mxu0 %v295_v6 }
  0x18   :  { %275 = vmatprep.subr.bf16.mxu0 %v296_v7 }
  0x1b   :  { %276 = vmatpush3.bf16.msra.mxu0 %v296_v7 }
  0x1c   :  { %277 = vmatprep.subr.bf16.mxu0 %v297_v8 }
  0x1f   :  { %278 = vmatpush3.bf16.msra.mxu0 %v297_v8 }
  0x22   :  { %280 = vmatmul.mubr.bf16.vlgmr.msra.gmra.mrb[0].mxu0 %v299_v9 }
  0xf5   :  { %v281_v11 = vpop.f32.mrb[0].mxu0 }
  0xf6   :  { %v152_v13 = vadd.f32 %v281_v11, %v242_v10  ;;  %v143_v14 = vpop.f32.mrb[1].mxu0 }
  0xf7   :  { %v144_v16 = vadd.f32 %v242_v10, %v143_v14  ;;  %v282_v17 = vpop.f32.mrb[2].mxu0 }
  0xf8   :  { %v155_v19 = vadd.f32 %v282_v17, %v242_v10  ;;  %v146_v20 = vpop.f32.mrb[3].mxu0  ;;  %v164_v21 = vsub.f32 %v160_v12, %v152_v13 }
  0xf9   :  { %v147_v23 = vadd.f32 %v242_v10, %v146_v20  ;;  %v162_v24 = vsub.f32 %v158_v15, %v144_v16 }
  0xfa   :  { %v168_v25 = vmul.f32 %v164_v21, %v164_v21  ;;  %v165_v26 = vsub.f32 %v161_v18, %v155_v19 }
  0xfb   :  { %v166_v27 = vmul.f32 %v162_v24, %v162_v24  ;;  %v163_v28 = vsub.f32 %v159_v22, %v147_v23 }
  0xfc   :  { %174 = vadd.xlane.f32.xlu1 %v168_v25  ;;  %v169_v29 = vmul.f32 %v165_v26, %v165_v26 }
  0xfd   :  { %170 = vadd.xlane.f32.xlu0 %v166_v27  ;;  %v167_v30 = vmul.f32 %v163_v28, %v163_v28 }
 0x100   :  { %176 = vadd.xlane.f32.xlu1 %v169_v29 }
 0x101   :  { %172 = vadd.xlane.f32.xlu0 %v167_v30 }
 0x104   :  { %214 = vadd.xlane.f32.xlu1 %v213_v41 }
 0x189   :  { %v175_v42 = vpop.xlane.xlu1 %174 }
 0x18a   :  { %v171_v43 = vpop.xlane.xlu0 %170  ;;  %v180_v45 = vmul.f32 0.020833334, %v175_v42 }
 0x18b   :  { %v178_v44 = vmul.f32 0.020833334, %v171_v43 }
 0x18c   :  { %v188_v51 = vmul.f32 %v184_v35, %v180_v45 }
 0x18d   :  { %v177_v46 = vpop.xlane.xlu1 %176  ;;  %v186_v48 = vmul.f32 %v182_v31, %v178_v44 }
 0x18e   :  { %v173_v47 = vpop.xlane.xlu0 %172  ;;  %v181_v49 = vmul.f32 0.020833334, %v177_v46  ;;  %v194_v57 = vsel %vm190_vm0, %v188_v51, 0.0 }
 0x18f   :  { %v179_v50 = vmul.f32 0.020833334, %v173_v47  ;;  %v191_v53 = vsel %vm190_vm0, %v186_v48, 0.0 }
 0x190   :  { %v189_v54 = vmul.f32 %v185_v37, %v181_v49 }
 0x191   :  { %v187_v52 = vmul.f32 %v183_v32, %v179_v50  ;;  %v215_v61 = vpop.xlane.xlu1 %214 }
 0x192   :  { %v196_v59 = vsel %vm190_vm0, %v189_v54, 0.0  ;;  %v216_v62 = vrot.slane %v215_v61, 4 }
 0x193   :  { %v192_v55 = vsel %vm190_vm0, %v187_v52, 0.0 }
 0x194   :  { %v193_v56 = vadd.f32 %v192_v55, %v191_v53  ;;  %v217_v63 = vadd.f32 %v216_v62, %v215_v61 }
 0x196   :  { %v195_v58 = vadd.f32 %v194_v57, %v193_v56  ;;  %v218_v0 = vrot.slane %v217_v63, 2 }
 0x198   :  { %v197_v60 = vadd.f32 %v196_v59, %v195_v58  ;;  %v219_v4 = vadd.f32 %v218_v0, %v217_v63 }
 0x19a   :  { %198 = vadd.xlane.f32.xlu0 %v197_v60  ;;  %v220_v7 = vrot.slane %v219_v4, 1 }
 0x19c   :  { %v221_v10 = vadd.f32 %v220_v7, %v219_v4 }
 0x227   :  { %v199_v1 = vpop.xlane.xlu0 %198 }
 0x228   :  { %v200_v2 = vrot.slane %v199_v1, 4 }
 0x22a   :  { %v201_v3 = vadd.f32 %v200_v2, %v199_v1 }
 0x22c   :  { %v202_v5 = vrot.slane %v201_v3, 2 }
 0x22e   :  { %v203_v6 = vadd.f32 %v202_v5, %v201_v3 }
 0x230   :  { %v204_v8 = vrot.slane %v203_v6, 1 }
 0x232   :  { %v205_v9 = vadd.f32 %v204_v8, %v203_v6 }
 0x234   :  { %283 = vpush %v205_v9 }
 0x235   :  { %285 = vpush %v221_v10 }
 0x265   :  { %s284_s4 = spop %283 }
 0x266   :  { %s286_s27 = spop %285 }
 0x267   :  { %v223_v11 = vstv %s286_s27 }
 0x268   :  { %300 = vrcp.f32 %v223_v11 }
 0x272   :  { %v301_v12 = vpop.eup %300 }
 0x273   :  { %287 = vpush %v301_v12 }
 0x2a4   :  { %s288_s28 = spop %287 }
 0x2a5   :  { %s226_s29 = smul.f32 %s288_s28, %s284_s4 }
 0x2a7   :  { %228 = sst [smem:[#allocation2]] %s226_s29 }
 0x2a8   :  { %311 = shalt.err (!%p308_p2)
}
 0x2a9   :  { %s314_s12 = smov [#allocation2]  }
 0x2aa   :  { %236 = dma.smem_to_hbm %s314_s12, 16, %s427_s5, [#allocation3]  }
 0x2ab   :  { %312 = dma.done.wait [#allocation3], 16  }
 0x2ac   :  { %313 = vsyncadd [#allocation3], 4294967280 }
 0x2ad   :  { %240 = sfence }
 0x2ae   :  { %241 = vsyncpa [#allocation3], 1 }

// kernel: _lambda_.14
= control target key start
LH: loop header
LB: loop body
LE: loop exit
PB: predicated region body
PF: predicated region fallthrough
CT: control target
= control target key end

     0   :  { %s275_s1 = inlined_call_operand.vmem [shape: bf16[128,128], index: 1, kind: input, shape index: {}]   ;;  %s276_s0 = inlined_call_operand.vmem [shape: bf16[32,128], index: 0, kind: input, shape index: {}]   ;;  %s277_s2 = inlined_call_operand.vmem [shape: f32[1,128], index: 2, kind: input, shape index: {}]   ;;  %s278_s3 = inlined_call_operand.vmem [shape: f32[32,128], index: 3, kind: output, shape index: {}]  }
   0x1   :  { %v200_v0 = vld [vmem:[%s275_s1] sm:$0xff]   ;;  %v201_v1 = vld [vmem:[%s275_s1 + $0x8] sm:$0xff]   ;;  %v202_v2 = vld [vmem:[%s275_s1 + $0x10] sm:$0xff]  }
   0x2   :  { %180 = vmatprep.subr.bf16.mxu0 %v200_v0  ;;  %v203_v3 = vld [vmem:[%s275_s1 + $0x18] sm:$0xff]   ;;  %v208_v4 = vld [vmem:[%s276_s0] sm:$0xff]   ;;  %v205_v6 = vld [vmem:[%s275_s1 + $0x28] sm:$0xff]  }
   0x3   :  { %181 = vmatpush3.bf16.msra.mxu0 %v200_v0  ;;  %196 = vmatprep.mubr.bf16.mxu0 %v208_v4  ;;  %v204_v5 = vld [vmem:[%s275_s1 + $0x20] sm:$0xff]   ;;  %v206_v7 = vld [vmem:[%s275_s1 + $0x30] sm:$0xff]   ;;  %v207_v8 = vld [vmem:[%s275_s1 + $0x38] sm:$0xff]  }
   0x4   :  { %182 = vmatprep.subr.bf16.mxu0 %v201_v1  ;;  %v209_v9 = vld [vmem:[%s276_s0 + $0x8] sm:$0xff]   ;;  %v159_v10 = vld [vmem:[%s277_s2] ss:$0 sm:$0xff] }
   0x7   :  { %183 = vmatpush3.bf16.msra.mxu0 %v201_v1 }
   0x8   :  { %184 = vmatprep.subr.bf16.mxu0 %v202_v2 }
   0xb   :  { %185 = vmatpush3.bf16.msra.mxu0 %v202_v2 }
   0xc   :  { %186 = vmatprep.subr.bf16.mxu0 %v203_v3 }
   0xf   :  { %187 = vmatpush3.bf16.msra.mxu0 %v203_v3 }
  0x10   :  { %188 = vmatprep.subr.bf16.mxu0 %v204_v5 }
  0x13   :  { %189 = vmatpush3.bf16.msra.mxu0 %v204_v5 }
  0x14   :  { %190 = vmatprep.subr.bf16.mxu0 %v205_v6 }
  0x17   :  { %191 = vmatpush3.bf16.msra.mxu0 %v205_v6 }
  0x18   :  { %192 = vmatprep.subr.bf16.mxu0 %v206_v7 }
  0x1b   :  { %193 = vmatpush3.bf16.msra.mxu0 %v206_v7 }
  0x1c   :  { %194 = vmatprep.subr.bf16.mxu0 %v207_v8 }
  0x1f   :  { %195 = vmatpush3.bf16.msra.mxu0 %v207_v8 }
  0x22   :  { %197 = vmatmul.mubr.bf16.vlgmr.msra.gmra.mrb[0].mxu0 %v209_v9 }
  0xf5   :  { %v198_v11 = vpop.f32.mrb[0].mxu0 }
  0xf6   :  { %v145_v12 = vadd.f32 %v198_v11, %v159_v10  ;;  %v136_v13 = vpop.f32.mrb[1].mxu0 }
  0xf7   :  { %v137_v14 = vadd.f32 %v159_v10, %v136_v13  ;;  %v199_v15 = vpop.f32.mrb[2].mxu0 }
  0xf8   :  { %153 = vst [vmem:[%s278_s3 + $0x10] sm:$0xff] %v145_v12  ;;  %v148_v16 = vadd.f32 %v199_v15, %v159_v10  ;;  %v139_v17 = vpop.f32.mrb[3].mxu0 }
  0xf9   :  { %151 = vst [vmem:[%s278_s3] sm:$0xff] %v137_v14  ;;  %v140_v18 = vadd.f32 %v159_v10, %v139_v17 }
  0xfa   :  { %154 = vst [vmem:[%s278_s3 + $0x18] sm:$0xff] %v148_v16 }
  0xfb   :  { %152 = vst [vmem:[%s278_s3 + $0x8] sm:$0xff] %v140_v18 }

// kernel: _lambda_.12
= control target key start
LH: loop header
LB: loop body
LE: loop exit
PB: predicated region body
PF: predicated region fallthrough
CT: control target
= control target key end

     0   :  { %s2484_s24 = smov 0   ;;  %s2881_s0 = inlined_call_operand.vmem [shape: bf16[2,16,128], index: 0, kind: input, shape index: {}]   ;;  %s2882_s1 = inlined_call_operand.vmem [shape: f32[1,128], index: 1, kind: input, shape index: {}]   ;;  %s2883_s2 = inlined_call_operand.vmem [shape: f32[1,128], index: 2, kind: input, shape index: {}]   ;;  %s2884_s3 = inlined_call_operand.vmem [shape: bf16[128,128], index: 3, kind: input, shape index: {}]   ;;  %s2885_s4 = inlined_call_operand.vmem [shape: f32[1,128], index: 4, kind: input, shape index: {}]   ;;  %s2886_s5 = inlined_call_operand.vmem [shape: bf16[128,128], index: 5, kind: input, shape index: {}]   ;;  %s2887_s6 = inlined_call_operand.vmem [shape: f32[1,128], index: 6, kind: input, shape index: {}]   ;;  %s2888_s7 = inlined_call_operand.vmem [shape: bf16[128,128], index: 7, kind: input, shape index: {}]   ;;  %s2889_s8 = inlined_call_operand.vmem [shape: f32[1,128], index: 8, kind: input, shape index: {}]   ;;  %s2890_s9 = inlined_call_operand.vmem [shape: bf16[128,128], index: 9, kind: input, shape index: {}]   ;;  %s2891_s10 = inlined_call_operand.vmem [shape: f32[1,128], index: 10, kind: input, shape index: {}]   ;;  %s2892_s11 = inlined_call_operand.vmem [shape: f32[1,128], index: 11, kind: input, shape index: {}]   ;;  %s2893_s12 = inlined_call_operand.vmem [shape: f32[1,128], index: 12, kind: input, shape index: {}]   ;;  %s2894_s13 = inlined_call_operand.vmem [shape: bf16[128,128], index: 13, kind: input, shape index: {}]   ;;  %s2895_s14 = inlined_call_operand.vmem [shape: f32[1,128], index: 14, kind: input, shape index: {}]   ;;  %s2896_s15 = inlined_call_operand.vmem [shape: bf16[128,128], index: 15, kind: input, shape index: {}]   ;;  %s2897_s16 = inlined_call_operand.vmem [shape: f32[1,128], index: 16, kind: input, shape index: {}]   ;;  %s2898_s17 = inlined_call_operand.vmem [shape: bf16[2,16,128], index: 17, kind: output, shape index: {}]  }
   0x1   :  { %2899 = sst [smem:[#allocation2_spill]] %s2881_s0 }
   0x2   :  { %2900 = sst [smem:[#allocation3_spill]] %s2882_s1 }
   0x3 LB: > { %s1933_s25 = sadd.s32 4294967295, %s2389_s24   ;;  %p1937_p0 = scmp.ge.s32.totalorder %s2389_s24, 1  ;;  %s2389_s24 = sphi %s2484_s24, %s27_s24  }
   0x4   : > { %p487_p1 = scmp.lt.s32.totalorder %s2389_s24, 3 }
   0x6   : > { %p488_p2 = pnand %p1937_p0, %p487_p1 }
   0x7   : > { %p539_p3 = scmp.lt.s32.totalorder (!%p488_p2), %s1933_s25, 1  ;;  %s2901_s29 = sld [smem:[#allocation2_spill]] (!%p488_p2)  ;;  %v2391_v3 = vmov (!%p488_p2), 0.0   ;;  %v2287_v4 = vld [vmem:[%s2884_s3] sm:$0xff] (!%p488_p2)   ;;  %v2289_v6 = vld [vmem:[%s2884_s3 + $0x8] sm:$0xff] (!%p488_p2)   ;;  %v554_v7 = vlaneseq (!%p488_p2)  ;;  %v2291_v21 = vld [vmem:[%s2884_s3 + $0x10] sm:$0xff] (!%p488_p2)  }
   0x8   : > { %491 = sbr.rel (%p488_p2) target bundleno = 3433 (0xd69), region = 88  ;;  %2096 = vmatprep.subr.bf16.mxu0 (!%p488_p2), %v2391_v3  ;;  %2116 = vmatprep.subr.bf16.mxu1 (!%p488_p2), %v2391_v3  ;;  %v2288_v5 = vld [vmem:[%s2886_s5] sm:$0xff] (!%p488_p2)   ;;  %v2290_v20 = vld [vmem:[%s2886_s5 + $0x8] sm:$0xff] (!%p488_p2)   ;;  %v2292_v22 = vld [vmem:[%s2886_s5 + $0x10] sm:$0xff] (!%p488_p2)   ;;  %vm2392_vm1 = vmmov (!%p488_p2), 0   ;;  %vm990_vm11 = vcmask (!%p488_p2), 130048  }
   0x9   : > { %2097 = vmatpush3.bf16.msra.mxu0 (!%p488_p2), %v2287_v4  ;;  %2117 = vmatpush3.bf16.msra.mxu1 (!%p488_p2), %v2288_v5  ;;  %v2520_v8 = vand.u32 (!%p488_p2), 127, %v554_v7  ;;  %v2293_v23 = vld [vmem:[%s2884_s3 + $0x18] sm:$0xff] (!%p488_p2)   ;;  %v2295_v25 = vld [vmem:[%s2884_s3 + $0x20] sm:$0xff] (!%p488_p2)   ;;  %v2297_v27 = vld [vmem:[%s2884_s3 + $0x28] sm:$0xff] (!%p488_p2)  }
   0xa   : > { %2098 = vmatprep.subr.bf16.mxu0 (!%p488_p2), %v2391_v3  ;;  %2118 = vmatprep.subr.bf16.mxu1 (!%p488_p2), %v2391_v3  ;;  %v2294_v24 = vld [vmem:[%s2886_s5 + $0x18] sm:$0xff] (!%p488_p2)   ;;  %v2296_v26 = vld [vmem:[%s2886_s5 + $0x20] sm:$0xff] (!%p488_p2)   ;;  %v2298_v28 = vld [vmem:[%s2886_s5 + $0x28] sm:$0xff] (!%p488_p2)  }
   0xb   : > { %vm556_vm0 = vcmp.lt.s32.totalorder (!%p488_p2), %v2520_v8, 32  ;;  %2112 = vmatprep.mubr.msk.bf16.mxu0 (!%p488_p2), %vm2392_vm1, %v2391_v3  ;;  %2132 = vmatprep.mubr.msk.bf16.mxu1 (!%p488_p2), %vm2392_vm1, %v2391_v3  ;;  %v2299_v29 = vld [vmem:[%s2884_s3 + $0x30] sm:$0xff] (!%p488_p2)   ;;  %v2301_v31 = vld [vmem:[%s2884_s3 + $0x38] sm:$0xff] (!%p488_p2)   ;;  %v1944_v45 = vld [vmem:[%s2883_s2] ss:$0 sm:$0xff] (!%p488_p2)  ;;  %vm1305_vm2 = vcmp.ge.s32.totalorder (!%p488_p2), %v2520_v8, 24 }
   0xc   : > { %v2526_v11 = vsel (!%p488_p2), %vm556_vm0, 1.0, %v2391_v3  ;;  %v2300_v30 = vld [vmem:[%s2886_s5 + $0x30] sm:$0xff] (!%p488_p2)   ;;  %v2302_v32 = vld [vmem:[%s2886_s5 + $0x38] sm:$0xff] (!%p488_p2)   ;;  %v2303_v49 = vld [vmem:[%s2888_s7] sm:$0xff] (!%p488_p2)   ;;  %vm1017_vm3 = vcmp.ge.s32.totalorder (!%p488_p2), %v2520_v8, 8  ;;  %vm1018_vm4 = vcmp.lt.s32.totalorder (!%p488_p2), %v2520_v8, 16 }
   0xd   : > { %2099 = vmatpush3.bf16.msra.mxu0 (!%p488_p2), %v2289_v6  ;;  %2119 = vmatpush3.bf16.msra.mxu1 (!%p488_p2), %v2290_v20  ;;  %v2304_v51 = vld [vmem:[%s2888_s7 + $0x8] sm:$0xff] (!%p488_p2)   ;;  %v2305_v52 = vld [vmem:[%s2888_s7 + $0x10] sm:$0xff] (!%p488_p2)   ;;  %v2306_v53 = vld [vmem:[%s2888_s7 + $0x18] sm:$0xff] (!%p488_p2)   ;;  %vm1182_vm5 = vcmp.ge.s32.totalorder (!%p488_p2), %v2520_v8, 16  ;;  %vm1183_vm6 = vcmp.lt.s32.totalorder (!%p488_p2), %v2520_v8, 24  ;;  %vm940_vm9 = vcmp.lt.s32.totalorder (!%p488_p2), %v2520_v8, 8 }
   0xe   : > { %2100 = vmatprep.subr.bf16.mxu0 (!%p488_p2), %v2391_v3  ;;  %2120 = vmatprep.subr.bf16.mxu1 (!%p488_p2), %v2391_v3  ;;  %v2307_v54 = vld [vmem:[%s2888_s7 + $0x20] sm:$0xff] (!%p488_p2)   ;;  %v2308_v55 = vld [vmem:[%s2888_s7 + $0x28] sm:$0xff] (!%p488_p2)   ;;  %v2309_v56 = vld [vmem:[%s2888_s7 + $0x30] sm:$0xff] (!%p488_p2)   ;;  %v1972_v5 = vsel (!%p488_p2), %vm940_vm9, 1.0, %v2391_v3 }
   0xf   : > { %s2904_s25 = smov (!%p539_p3, %s1933_s25), 1  ;;  %v2310_v57 = vld [vmem:[%s2888_s7 + $0x38] sm:$0xff]   ;;  %vm1306_vm7 = vmand %vm1305_vm2, %vm556_vm0  ;;  %v1945_v58 = vld [vmem:[%s2885_s4] ss:$0 sm:$0xff] }
  0x10   : > { %s2013_s26 = sshll.u32 %s2904_s25, 3  ;;  %vm1019_vm8 = vmand %vm1017_vm3, %vm1018_vm4  ;;  %v1978_v59 = vsel %vm1306_vm7, 1.0, %v2391_v3  ;;  %v1954_v63 = vld [vmem:[%s2887_s6] ss:$0 sm:$0xff] }
  0x11   : > { %s543_s0 = scalar_lea.vmem %s2901_s29, %s2013_s26  ;;  %2101 = vmatpush3.bf16.msra.mxu0 %v2291_v21  ;;  %2121 = vmatpush3.bf16.msra.mxu1 %v2292_v22  ;;  %s2902_s29 = sld [smem:[#allocation3_spill]]  ;;  %vm1184_vm10 = vmand %vm1182_vm5, %vm1183_vm6  ;;  %v1973_v6 = vsel %vm1019_vm8, 1.0, %v2391_v3 }
  0x12   : > { %v2018_v0 = vld [vmem:[%s543_s0] sm:$0xff]   ;;  %2102 = vmatprep.subr.bf16.mxu0 %v2391_v3  ;;  %2122 = vmatprep.subr.bf16.mxu1 %v2391_v3  ;;  %v1976_v7 = vsel %vm1184_vm10, 1.0, %v2391_v3  ;;  %s548_s0 = scalar_lea.vmem %s2898_s17, %s2013_s26 }
  0x13   : > { %v2500_v1 = vunpack.c.l.bf16 %v2018_v0  ;;  %v2503_v2 = vunpack.c.h.bf16 %v2018_v0 }
  0x15   : > { %561 = vadd.xlane.f32.xlu0 %v2500_v1  ;;  %2103 = vmatpush3.bf16.msra.mxu0 %v2293_v23 }
  0x16   : > { %2123 = vmatpush3.bf16.msra.mxu1 %v2294_v24  ;;  %2104 = vmatprep.subr.bf16.mxu0 %v2391_v3 }
  0x17   : > { %2124 = vmatprep.subr.bf16.mxu1 %v2391_v3  ;;  %v1943_v41 = vld [vmem:[%s2902_s29] ss:$0 sm:$0xff] }
  0x19   : > { %563 = vadd.xlane.f32.xlu0 %v2503_v2  ;;  %2105 = vmatpush3.bf16.msra.mxu0 %v2295_v25 }
  0x1a   : > { %2125 = vmatpush3.bf16.msra.mxu1 %v2296_v26  ;;  %2106 = vmatprep.subr.bf16.mxu0 %v2391_v3 }
  0x1b   : > { %2126 = vmatprep.subr.bf16.mxu1 %v2391_v3 }
  0x1d   : > { %2107 = vmatpush3.bf16.msra.mxu0 %v2297_v27 }
  0x1e   : > { %2127 = vmatpush3.bf16.msra.mxu1 %v2298_v28  ;;  %2108 = vmatprep.subr.bf16.mxu0 %v2391_v3 }
  0x1f   : > { %2128 = vmatprep.subr.bf16.mxu1 %v2391_v3 }
  0x21   : > { %2109 = vmatpush3.bf16.msra.mxu0 %v2299_v29  ;;  %v1963_v29 = vld [vmem:[%s2889_s8] ss:$0 sm:$0xff] }
  0x22   : > { %2129 = vmatpush3.bf16.msra.mxu1 %v2300_v30  ;;  %2110 = vmatprep.subr.bf16.mxu0 %v2391_v3 }
  0x23   : > { %2130 = vmatprep.subr.bf16.mxu1 %v2391_v3 }
  0x25   : > { %2111 = vmatpush3.bf16.msra.mxu0 %v2301_v31 }
  0x26   : > { %2131 = vmatpush3.bf16.msra.mxu1 %v2302_v32  ;;  %2136 = vmatprep.subr.bf16.mxu0 %v2391_v3 }
  0x27   : > { %2156 = vmatprep.subr.bf16.mxu1 %v2391_v3 }
  0xa2   : > { %v562_v9 = vpop.xlane.xlu0 %561 }
  0xa3   : > { %v565_v10 = vmul.f32 0.03125, %v562_v9 }
  0xa5   : > { %v567_v12 = vsub.f32 %v2500_v1, %v565_v10 }
  0xa6   : > { %v564_v13 = vpop.xlane.xlu0 %563 }
  0xa7   : > { %v566_v14 = vmul.f32 0.03125, %v564_v13  ;;  %v569_v15 = vmul.f32 %v2526_v11, %v567_v12 }
  0xa9   : > { %v568_v16 = vsub.f32 %v2503_v2, %v566_v14  ;;  %v571_v17 = vmul.f32 %v569_v15, %v569_v15 }
  0xab   : > { %573 = vadd.xlane.f32.xlu1 %v571_v17  ;;  %v570_v18 = vmul.f32 %v2526_v11, %v568_v16 }
  0xad   : > { %v572_v19 = vmul.f32 %v570_v18, %v570_v18 }
  0xaf   : > { %575 = vadd.xlane.f32.xlu1 %v572_v19 }
 0x138   : > { %v574_v33 = vpop.xlane.xlu1 %573 }
 0x139   : > { %v577_v34 = vmul.f32 0.03125, %v574_v33 }
 0x13b   : > { %v579_v35 = vadd.f32 1e-05, %v577_v34 }
 0x13c   : > { %v576_v36 = vpop.xlane.xlu1 %575 }
 0x13d   : > { %2335 = vrsqrt.f32 %v579_v35  ;;  %v578_v37 = vmul.f32 0.03125, %v576_v36 }
 0x13f   : > { %v580_v38 = vadd.f32 1e-05, %v578_v37 }
 0x141   : > { %2337 = vrsqrt.f32 %v580_v38 }
 0x147   : > { %v2336_v39 = vpop.eup %2335 }
 0x148   : > { %v583_v40 = vmul.f32 %v2336_v39, %v569_v15 }
 0x14a   : > { %v591_v44 = vmul.f32 %v1943_v41, %v583_v40 }
 0x14b   : > { %v2338_v42 = vpop.eup %2337 }
 0x14c   : > { %v584_v43 = vmul.f32 %v2338_v42, %v570_v18  ;;  %v599_v47 = vadd.f32 %v1944_v45, %v591_v44 }
 0x14e   : > { %v592_v46 = vmul.f32 %v1943_v41, %v584_v43 }
 0x150   : > { %v600_v48 = vadd.f32 %v1944_v45, %v592_v46 }
 0x152   : > { %v601_v50 = vpack.c.bf16 %v600_v48, %v599_v47 }
 0x154   : > { %2113 = vmatmul.mubr.bf16.vlgmr.msra.gmra.mrb[0].mxu0 %v601_v50  ;;  %2133 = vmatmul.mubr.bf16.vlgmr.msra.gmra.mrb[0].mxu1 %v601_v50 }
 0x155   : > { %2137 = vmatpush3.bf16.msra.mxu0 %v2303_v49  ;;  %2152 = vmatprep.mubr.msk.bf16.mxu0 %vm2392_vm1, %v2391_v3 }
 0x156   : > { %2138 = vmatprep.subr.bf16.mxu0 %v2391_v3  ;;  %2158 = vmatprep.mubr.msk.bf16.mxu1 %vm2392_vm1, %v2391_v3 }
 0x159   : > { %2139 = vmatpush3.bf16.msra.mxu0 %v2304_v51 }
 0x15a   : > { %2140 = vmatprep.subr.bf16.mxu0 %v2391_v3 }
 0x15d   : > { %2141 = vmatpush3.bf16.msra.mxu0 %v2305_v52 }
 0x15e   : > { %2142 = vmatprep.subr.bf16.mxu0 %v2391_v3 }
 0x161   : > { %2143 = vmatpush3.bf16.msra.mxu0 %v2306_v53 }
 0x162   : > { %2144 = vmatprep.subr.bf16.mxu0 %v2391_v3 }
 0x165   : > { %2145 = vmatpush3.bf16.msra.mxu0 %v2307_v54 }
 0x166   : > { %2146 = vmatprep.subr.bf16.mxu0 %v2391_v3 }
 0x169   : > { %2147 = vmatpush3.bf16.msra.mxu0 %v2308_v55 }
 0x16a   : > { %2148 = vmatprep.subr.bf16.mxu0 %v2391_v3 }
 0x16d   : > { %2149 = vmatpush3.bf16.msra.mxu0 %v2309_v56 }
 0x16e   : > { %2150 = vmatprep.subr.bf16.mxu0 %v2391_v3 }
 0x171   : > { %2151 = vmatpush3.bf16.msra.mxu0 %v2310_v57 }
 0x172   : > { %2204 = vmatprep.subr.bf16.mxu0 %v2391_v3 }
 0x174   : > { %2153 = vmatmul.mubr.bf16.vlgmr.msra.gmra.mrb[4].mxu0 %v601_v50 }
 0x175   : > { %2220 = vmatprep.mubr.msk.bf16.mxu0 %vm2392_vm1, %v2391_v3 }
 0x227   : > { %v707_v60 = vpop.f32.mrb[0].mxu0  ;;  %v819_v61 = vpop.f32.mrb[0].mxu1 }
 0x228   : > { %v708_v62 = vadd.f32 %v1945_v58, %v707_v60  ;;  %v2114_v0 = vpop.f32.mrb[1].mxu0  ;;  %v2134_v4 = vpop.f32.mrb[1].mxu1  ;;  %v820_v19 = vadd.f32 %v1954_v63, %v819_v61 }
 0x229   : > { %v710_v9 = vpop.f32.mrb[2].mxu0  ;;  %v822_v8 = vpop.f32.mrb[2].mxu1 }
 0x22a   : > { %v2650_v10 = vmul.f32 %v1978_v59, %v708_v62  ;;  %v2115_v12 = vpop.f32.mrb[3].mxu0  ;;  %v2135_v13 = vpop.f32.mrb[3].mxu1  ;;  %v711_v14 = vadd.f32 %v1945_v58, %v710_v9  ;;  %v823_v15 = vadd.f32 %v1954_v63, %v822_v8  ;;  %v944_v16 = vmul.f32 %v1972_v5, %v708_v62 }
 0x22b   : > { %v1022_v17 = vmul.f32 %v1973_v6, %v708_v62  ;;  %v2652_v18 = vmul.f32 %v1976_v7, %v708_v62 }
 0x22c   : > { %v945_v20 = vmul.f32 %v1972_v5, %v711_v14  ;;  %v1023_v21 = vmul.f32 %v1973_v6, %v711_v14  ;;  %v2654_v22 = vmul.f32 %v1976_v7, %v711_v14  ;;  %v2656_v23 = vmul.f32 %v1978_v59, %v711_v14 }
 0x22d   : > { %v2658_v24 = vpack.c.bf16 %v823_v15, %v820_v19 }
 0x22e   : > { %v946_v25 = vpack.c.bf16 %v945_v20, %v944_v16  ;;  %v1024_v26 = vpack.c.bf16 %v1023_v21, %v1022_v17  ;;  %v1189_v27 = vpack.c.bf16 %v2654_v22, %v2652_v18  ;;  %v1311_v28 = vpack.c.bf16 %v2656_v23, %v2650_v10 }
 0x22f   : > { %2157 = vmatpush3.bf16.xpose.msra.mxu1 %v2658_v24 }
 0x230   : > { %2162 = vmatprep.subr.bf16.mxu1 %v2391_v3 }
 0x236   : > { %2159 = vmatmul.mubr.bf16.vlgmr.msra.gmra.mrb[4].mxu1 %v946_v25 }
 0x237   : > { %2163 = vmatpush3.bf16.xpose.msra.mxu1 %v2658_v24  ;;  %2164 = vmatprep.mubr.msk.bf16.mxu1 %vm2392_vm1, %v2391_v3 }
 0x238   : > { %2168 = vmatprep.subr.bf16.mxu1 %v2391_v3 }
 0x23e   : > { %2165 = vmatmul.mubr.bf16.vlgmr.msra.gmra.mrb[8].mxu1 %v1024_v26 }
 0x23f   : > { %2170 = vmatprep.mubr.msk.bf16.mxu1 %vm2392_vm1, %v2391_v3 }
 0x247   : > { %v931_v30 = vpop.f32.mrb[4].mxu0 }
 0x248   : > { %v932_v31 = vadd.f32 %v1963_v29, %v931_v30  ;;  %v2154_v32 = vpop.f32.mrb[5].mxu0 }
 0x249   : > { %v934_v33 = vpop.f32.mrb[6].mxu0 }
 0x24a   : > { %v2675_v34 = vmul.f32 %v1972_v5, %v932_v31  ;;  %v2677_v35 = vmul.f32 %v1978_v59, %v932_v31  ;;  %v2155_v36 = vpop.f32.mrb[7].mxu0  ;;  %v935_v37 = vadd.f32 %v1963_v29, %v934_v33  ;;  %v1090_v38 = vmul.f32 %v1973_v6, %v932_v31 }
 0x24b   : > { %v2679_v39 = vmul.f32 %v1976_v7, %v932_v31 }
 0x24c   : > { %v2681_v40 = vmul.f32 %v1972_v5, %v935_v37  ;;  %v1091_v41 = vmul.f32 %v1973_v6, %v935_v37  ;;  %v2683_v42 = vmul.f32 %v1976_v7, %v935_v37  ;;  %v2685_v43 = vmul.f32 %v1978_v59, %v935_v37 }
 0x24e   : > { %v1092_v44 = vpack.c.bf16 %v1091_v41, %v1090_v38  ;;  %v1015_v45 = vpack.c.bf16 %v2681_v40, %v2675_v34  ;;  %v1257_v46 = vpack.c.bf16 %v2683_v42, %v2679_v39  ;;  %v1379_v47 = vpack.c.bf16 %v2685_v43, %v2677_v35 }
 0x250   : > { %2169 = vmatpush3.bf16.msra.mxu1 %v1092_v44 }
 0x251   : > { %2174 = vmatprep.subr.bf16.mxu1 %v2391_v3 }
 0x309   : > { %v981_v48 = vpop.f32.mrb[4].mxu1 }
 0x30a   : > { %v2160_v49 = vpop.f32.mrb[5].mxu1  ;;  %v988_v56 = vmul.f32 0.35355338, %v981_v48 }
 0x30b   : > { %v984_v50 = vpop.f32.mrb[6].mxu1 }
 0x30c   : > { %v2161_v51 = vpop.f32.mrb[7].mxu1  ;;  %v989_v60 = vmul.f32 0.35355338, %v984_v50  ;;  %v991_v62 = vsel %vm990_vm11, %v988_v56, -inf }
 0x30e   : > { %v994_v63 = vsel %vm990_vm11, %v989_v60, -inf }
 0x311   : > { %v1059_v52 = vpop.f32.mrb[8].mxu1 }
 0x312   : > { %v1066_v53 = vmul.f32 0.35355338, %v1059_v52  ;;  %v2166_v54 = vpop.f32.mrb[9].mxu1 }
 0x313   : > { %v1062_v55 = vpop.f32.mrb[10].mxu1 }
 0x314   : > { %v1067_v57 = vmul.f32 0.35355338, %v1062_v55  ;;  %v2167_v58 = vpop.f32.mrb[11].mxu1  ;;  %v1068_v59 = vsel %vm990_vm11, %v1066_v53, -inf }
 0x315   : > { %1069 = vmax.xlane.f32.xlu0 %v1068_v59 }
 0x316   : > { %v1071_v61 = vsel %vm990_vm11, %v1067_v57, -inf }
 0x317   : > { %1072 = vmax.xlane.f32.xlu1 %v1071_v61 }
 0x319   : > { %992 = vmax.xlane.f32.xlu0 %v991_v62 }
 0x31b   : > { %995 = vmax.xlane.f32.xlu1 %v994_v63 }
 0x3a2   : > { %v1070_v0 = vpop.xlane.xlu0 %1069 }
 0x3a3   : > { %v1074_v4 = vsub.f32 %v1066_v53, %v1070_v0 }
 0x3a4   : > { %v1073_v5 = vpop.xlane.xlu1 %1072 }
 0x3a5   : > { %v1076_v6 = vmul.f32 1.442695, %v1074_v4  ;;  %v1075_v7 = vsub.f32 %v1067_v57, %v1073_v5 }
 0x3a6   : > { %v993_v9 = vpop.xlane.xlu0 %992 }
 0x3a7   : > { %2339 = vpow2.f32 %v1076_v6  ;;  %v1078_v8 = vmul.f32 1.442695, %v1075_v7  ;;  %v997_v12 = vsub.f32 %v988_v56, %v993_v9 }
 0x3a8   : > { %v996_v13 = vpop.xlane.xlu1 %995 }
 0x3a9   : > { %2341 = vpow2.f32 %v1078_v8  ;;  %v999_v14 = vmul.f32 1.442695, %v997_v12  ;;  %v998_v15 = vsub.f32 %v989_v60, %v996_v13 }
 0x3ab   : > { %2343 = vpow2.f32 %v999_v14  ;;  %v1001_v16 = vmul.f32 1.442695, %v998_v15 }
 0x3ad   : > { %2345 = vpow2.f32 %v1001_v16 }
 0x3b1   : > { %v2340_v17 = vpop.eup %2339 }
 0x3b2   : > { %v1080_v19 = vsel %vm990_vm11, %v2340_v17, 0.0 }
 0x3b3   : > { %v2342_v20 = vpop.eup %2341  ;;  %1081 = vadd.xlane.f32.xlu0 %v1080_v19 }
 0x3b4   : > { %v1083_v21 = vsel %vm990_vm11, %v2342_v20, 0.0 }
 0x3b5   : > { %v2344_v25 = vpop.eup %2343  ;;  %1084 = vadd.xlane.f32.xlu1 %v1083_v21 }
 0x3b6   : > { %v1003_v26 = vsel %vm990_vm11, %v2344_v25, 0.0 }
 0x3b7   : > { %v2346_v29 = vpop.eup %2345  ;;  %1004 = vadd.xlane.f32.xlu0 %v1003_v26  ;;  %v2311_v26 = vld [vmem:[%s2890_s9] sm:$0xff]  }
 0x3b8   : > { %v1006_v30 = vsel %vm990_vm11, %v2346_v29, 0.0  ;;  %2205 = vmatpush3.bf16.msra.mxu0 %v2311_v26 }
 0x3b9   : > { %1007 = vadd.xlane.f32.xlu1 %v1006_v30  ;;  %2206 = vmatprep.subr.bf16.mxu0 %v2391_v3  ;;  %v2313_v30 = vld [vmem:[%s2890_s9 + $0x10] sm:$0xff]  }
 0x440   : > { %v1082_v31 = vpop.xlane.xlu0 %1081 }
 0x441   : > { %2347 = vrcp.f32 %v1082_v31  ;;  %v2314_v31 = vld [vmem:[%s2890_s9 + $0x18] sm:$0xff]  }
 0x442   : > { %v1085_v32 = vpop.xlane.xlu1 %1084 }
 0x443   : > { %2349 = vrcp.f32 %v1085_v32  ;;  %v2315_v32 = vld [vmem:[%s2890_s9 + $0x20] sm:$0xff]  }
 0x444   : > { %v1005_v36 = vpop.xlane.xlu0 %1004 }
 0x446   : > { %v1008_v33 = vpop.xlane.xlu1 %1007 }
 0x447   : > { %2351 = vrcp.f32 %v1008_v33  ;;  %v2316_v33 = vld [vmem:[%s2890_s9 + $0x28] sm:$0xff]  }
 0x448   : > { %2353 = vrcp.f32 %v1005_v36  ;;  %v2317_v36 = vld [vmem:[%s2890_s9 + $0x30] sm:$0xff]  }
 0x44b   : > { %v2348_v37 = vpop.eup %2347 }
 0x44c   : > { %v1088_v41 = vmul.f32 %v2348_v37, %v2340_v17 }
 0x44d   : > { %v2350_v38 = vpop.eup %2349 }
 0x44e   : > { %v1089_v44 = vmul.f32 %v2350_v38, %v2342_v20 }
 0x450   : > { %v1093_v48 = vpack.c.bf16 %v1089_v44, %v1088_v41 }
 0x451   : > { %v2352_v49 = vpop.eup %2351 }
 0x452   : > { %2171 = vmatmul.mubr.msk.bf16.vlgmr.msra.gmra.mrb[12].mxu1 %vm990_vm11, %v1093_v48  ;;  %v2354_v50 = vpop.eup %2353  ;;  %v1012_v51 = vmul.f32 %v2352_v49, %v2346_v29  ;;  %v2312_v29 = vld [vmem:[%s2890_s9 + $0x8] sm:$0xff]  }
 0x453   : > { %2175 = vmatpush3.bf16.msra.mxu1 %v1015_v45  ;;  %2176 = vmatprep.mubr.msk.bf16.mxu1 %vm2392_vm1, %v2391_v3  ;;  %v1011_v52 = vmul.f32 %v2354_v50, %v2344_v25 }
 0x454   : > { %2180 = vmatprep.subr.bf16.mxu1 %v2391_v3  ;;  %2207 = vmatpush3.bf16.msra.mxu0 %v2312_v29  ;;  %v2327_v29 = vld [vmem:[%s2896_s15] sm:$0xff]  }
 0x455   : > { %v1016_v53 = vpack.c.bf16 %v1012_v51, %v1011_v52  ;;  %2208 = vmatprep.subr.bf16.mxu0 %v2391_v3  ;;  %v2318_v51 = vld [vmem:[%s2890_s9 + $0x38] sm:$0xff]  }
 0x458   : > { %2209 = vmatpush3.bf16.msra.mxu0 %v2313_v30  ;;  %v2328_v30 = vld [vmem:[%s2896_s15 + $0x8] sm:$0xff]  }
 0x459   : > { %2210 = vmatprep.subr.bf16.mxu0 %v2391_v3 }
 0x45c   : > { %2211 = vmatpush3.bf16.msra.mxu0 %v2314_v31  ;;  %v2329_v31 = vld [vmem:[%s2896_s15 + $0x10] sm:$0xff]  }
 0x45d   : > { %2212 = vmatprep.subr.bf16.mxu0 %v2391_v3 }
 0x45e   : > { %2177 = vmatmul.mubr.msk.bf16.vlgmr.msra.gmra.mrb[12].mxu1 %vm990_vm11, %v1016_v53 }
 0x45f   : > { %2181 = vmatpush3.bf16.xpose.msra.mxu1 %v2658_v24  ;;  %2182 = vmatprep.mubr.msk.bf16.mxu1 %vm2392_vm1, %v2391_v3 }
 0x460   : > { %2186 = vmatprep.subr.bf16.mxu1 %v2391_v3  ;;  %2213 = vmatpush3.bf16.msra.mxu0 %v2315_v32  ;;  %v2330_v32 = vld [vmem:[%s2896_s15 + $0x18] sm:$0xff]  }
 0x461   : > { %2214 = vmatprep.subr.bf16.mxu0 %v2391_v3 }
 0x464   : > { %2215 = vmatpush3.bf16.msra.mxu0 %v2316_v33  ;;  %v2331_v33 = vld [vmem:[%s2896_s15 + $0x20] sm:$0xff]  }
 0x465   : > { %2216 = vmatprep.subr.bf16.mxu0 %v2391_v3 }
 0x466   : > { %2183 = vmatmul.mubr.bf16.vlgmr.msra.gmra.mrb[16].mxu1 %v1189_v27 }
 0x467   : > { %2187 = vmatpush3.bf16.msra.mxu1 %v1257_v46  ;;  %2188 = vmatprep.mubr.msk.bf16.mxu1 %vm2392_vm1, %v2391_v3 }
 0x468   : > { %2192 = vmatprep.subr.bf16.mxu1 %v2391_v3  ;;  %2217 = vmatpush3.bf16.msra.mxu0 %v2317_v36  ;;  %v2332_v36 = vld [vmem:[%s2896_s15 + $0x28] sm:$0xff]  }
 0x469   : > { %2218 = vmatprep.subr.bf16.mxu0 %v2391_v3 }
 0x46c   : > { %2219 = vmatpush3.bf16.msra.mxu0 %v2318_v51 }
 0x46d   : > { %2244 = vmatprep.subr.bf16.mxu0 %v2391_v3 }
 0x539   : > { %v1224_v34 = vpop.f32.mrb[16].mxu1 }
 0x53a   : > { %v1231_v40 = vmul.f32 0.35355338, %v1224_v34  ;;  %v2184_v45 = vpop.f32.mrb[17].mxu1 }
 0x53b   : > { %v1227_v54 = vpop.f32.mrb[18].mxu1 }
 0x53c   : > { %v1232_v55 = vmul.f32 0.35355338, %v1227_v54  ;;  %v2185_v56 = vpop.f32.mrb[19].mxu1  ;;  %v1233_v57 = vsel %vm990_vm11, %v1231_v40, -inf }
 0x53d   : > { %1234 = vmax.xlane.f32.xlu0 %v1233_v57 }
 0x53e   : > { %v1236_v18 = vsel %vm990_vm11, %v1232_v55, -inf }
 0x53f   : > { %1237 = vmax.xlane.f32.xlu1 %v1236_v18 }
 0x5ca   : > { %v1235_v22 = vpop.xlane.xlu0 %1234 }
 0x5cb   : > { %v1239_v27 = vsub.f32 %v1231_v40, %v1235_v22 }
 0x5cc   : > { %v1238_v39 = vpop.xlane.xlu1 %1237 }
 0x5cd   : > { %v1241_v42 = vmul.f32 1.442695, %v1239_v27  ;;  %v1240_v46 = vsub.f32 %v1232_v55, %v1238_v39  ;;  %v1988_v55 = vld [vmem:[%s2891_s10] ss:$0 sm:$0xff] }
 0x5cf   : > { %2355 = vpow2.f32 %v1241_v42  ;;  %v1243_v58 = vmul.f32 1.442695, %v1240_v46  ;;  %v2319_v46 = vld [vmem:[%s2894_s13] sm:$0xff]  }
 0x5d1   : > { %2357 = vpow2.f32 %v1243_v58 }
 0x5d9   : > { %v2356_v59 = vpop.eup %2355 }
 0x5da   : > { %v1245_v60 = vsel %vm990_vm11, %v2356_v59, 0.0 }
 0x5db   : > { %v2358_v61 = vpop.eup %2357  ;;  %1246 = vadd.xlane.f32.xlu0 %v1245_v60 }
 0x5dc   : > { %v1248_v62 = vsel %vm990_vm11, %v2358_v61, 0.0 }
 0x5dd   : > { %1249 = vadd.xlane.f32.xlu1 %v1248_v62 }
 0x668   : > { %v1247_v63 = vpop.xlane.xlu0 %1246 }
 0x669   : > { %2359 = vrcp.f32 %v1247_v63 }
 0x66a   : > { %v1250_v0 = vpop.xlane.xlu1 %1249 }
 0x66b   : > { %2361 = vrcp.f32 %v1250_v0 }
 0x673   : > { %v2360_v4 = vpop.eup %2359 }
 0x674   : > { %v1253_v6 = vmul.f32 %v2360_v4, %v2356_v59 }
 0x675   : > { %v2362_v5 = vpop.eup %2361 }
 0x676   : > { %v1254_v7 = vmul.f32 %v2362_v5, %v2358_v61 }
 0x678   : > { %v1258_v9 = vpack.c.bf16 %v1254_v7, %v1253_v6  ;;  %v2321_v6 = vld [vmem:[%s2894_s13 + $0x10] sm:$0xff]   ;;  %v2322_v7 = vld [vmem:[%s2894_s13 + $0x18] sm:$0xff]  }
 0x67a   : > { %2189 = vmatmul.mubr.msk.bf16.vlgmr.msra.gmra.mrb[12].mxu1 %vm990_vm11, %v1258_v9  ;;  %v2324_v9 = vld [vmem:[%s2894_s13 + $0x28] sm:$0xff]  }
 0x67b   : > { %2193 = vmatpush3.bf16.xpose.msra.mxu1 %v2658_v24  ;;  %2194 = vmatprep.mubr.msk.bf16.mxu1 %vm2392_vm1, %v2391_v3 }
 0x67c   : > { %2198 = vmatprep.subr.bf16.mxu1 %v2391_v3 }
 0x682   : > { %2195 = vmatmul.mubr.bf16.vlgmr.msra.gmra.mrb[20].mxu1 %v1311_v28 }
 0x683   : > { %2199 = vmatpush3.bf16.msra.mxu1 %v1379_v47  ;;  %2200 = vmatprep.mubr.msk.bf16.mxu1 %vm2392_vm1, %v2391_v3 }
 0x684   : > { %2224 = vmatprep.subr.bf16.mxu1 %v2391_v3 }
 0x755   : > { %v1346_v8 = vpop.f32.mrb[20].mxu1 }
 0x756   : > { %v1353_v24 = vmul.f32 0.35355338, %v1346_v8  ;;  %v2196_v12 = vpop.f32.mrb[21].mxu1  ;;  %v2325_v8 = vld [vmem:[%s2894_s13 + $0x30] sm:$0xff]  }
 0x757   : > { %v1349_v13 = vpop.f32.mrb[22].mxu1 }
 0x758   : > { %v1354_v14 = vmul.f32 0.35355338, %v1349_v13  ;;  %v2197_v15 = vpop.f32.mrb[23].mxu1  ;;  %v1355_v16 = vsel %vm990_vm11, %v1353_v24, -inf }
 0x759   : > { %1356 = vmax.xlane.f32.xlu0 %v1355_v16 }
 0x75a   : > { %v1358_v10 = vsel %vm990_vm11, %v1354_v14, -inf }
 0x75b   : > { %1359 = vmax.xlane.f32.xlu1 %v1358_v10 }
 0x7e6   : > { %v1357_v23 = vpop.xlane.xlu0 %1356 }
 0x7e7   : > { %v1361_v28 = vsub.f32 %v1353_v24, %v1357_v23  ;;  %v2326_v24 = vld [vmem:[%s2894_s13 + $0x38] sm:$0xff]  }
 0x7e8   : > { %v1360_v35 = vpop.xlane.xlu1 %1359 }
 0x7e9   : > { %v1363_v43 = vmul.f32 1.442695, %v1361_v28  ;;  %v1362_v47 = vsub.f32 %v1354_v14, %v1360_v35  ;;  %v1989_v28 = vld [vmem:[%s2892_s11] ss:$0 sm:$0xff] }
 0x7eb   : > { %2363 = vpow2.f32 %v1363_v43  ;;  %v1365_v17 = vmul.f32 1.442695, %v1362_v47 }
 0x7ed   : > { %2365 = vpow2.f32 %v1365_v17 }
 0x7f5   : > { %v2364_v19 = vpop.eup %2363 }
 0x7f6   : > { %v1367_v20 = vsel %vm990_vm11, %v2364_v19, 0.0 }
 0x7f7   : > { %v2366_v21 = vpop.eup %2365  ;;  %1368 = vadd.xlane.f32.xlu0 %v1367_v20 }
 0x7f8   : > { %v1370_v25 = vsel %vm990_vm11, %v2366_v21, 0.0 }
 0x7f9   : > { %1371 = vadd.xlane.f32.xlu1 %v1370_v25 }
 0x884   : > { %v1369_v37 = vpop.xlane.xlu0 %1368 }
 0x885   : > { %2367 = vrcp.f32 %v1369_v37  ;;  %v2333_v37 = vld [vmem:[%s2896_s15 + $0x30] sm:$0xff]  }
 0x886   : > { %v1372_v38 = vpop.xlane.xlu1 %1371 }
 0x887   : > { %2369 = vrcp.f32 %v1372_v38  ;;  %v2334_v38 = vld [vmem:[%s2896_s15 + $0x38] sm:$0xff]  }
 0x88f   : > { %v2368_v41 = vpop.eup %2367 }
 0x890   : > { %v1375_v48 = vmul.f32 %v2368_v41, %v2364_v19  ;;  %v1990_v19 = vld [vmem:[%s2893_s12] ss:$0 sm:$0xff] }
 0x891   : > { %v2370_v44 = vpop.eup %2369  ;;  %v1991_v41 = vld [vmem:[%s2895_s14] ss:$0 sm:$0xff] }
 0x892   : > { %v1376_v49 = vmul.f32 %v2370_v44, %v2366_v21 }
 0x894   : > { %v1380_v50 = vpack.c.bf16 %v1376_v49, %v1375_v48 }
 0x896   : > { %2201 = vmatmul.mubr.msk.bf16.vlgmr.msra.gmra.mrb[12].mxu1 %vm990_vm11, %v1380_v50 }
 0x897   : > { %2240 = vmatprep.mubr.msk.bf16.mxu1 %vm2392_vm1, %v2391_v3  ;;  %2225 = vmatpush3.bf16.msra.mxu1 %v2319_v46 }
 0x898   : > { %2226 = vmatprep.subr.bf16.mxu1 %v2391_v3 }
 0x969   : > { %v1418_v52 = vpop.f32.mrb[12].mxu1 }
 0x96a   : > { %v2202_v53 = vpop.f32.mrb[13].mxu1 }
 0x96b   : > { %v1421_v34 = vpop.f32.mrb[14].mxu1 }
 0x96c   : > { %v1427_v40 = vpack.c.bf16 %v1421_v34, %v1418_v52  ;;  %v2203_v45 = vpop.f32.mrb[15].mxu1 }
 0x96e   : > { %2221 = vmatmul.mubr.bf16.vlgmr.msra.gmra.mrb[8].mxu0 %v1427_v40 }
 0x96f   : > { %2260 = vmatprep.mubr.msk.bf16.mxu0 %vm2392_vm1, %v2391_v3  ;;  %2245 = vmatpush3.bf16.msra.mxu0 %v2327_v29 }
 0x970   : > { %2246 = vmatprep.subr.bf16.mxu0 %v2391_v3 }
 0x973   : > { %2247 = vmatpush3.bf16.msra.mxu0 %v2328_v30 }
 0x974   : > { %2248 = vmatprep.subr.bf16.mxu0 %v2391_v3 }
 0x977   : > { %2249 = vmatpush3.bf16.msra.mxu0 %v2329_v31 }
 0x978   : > { %2250 = vmatprep.subr.bf16.mxu0 %v2391_v3 }
 0x97b   : > { %2251 = vmatpush3.bf16.msra.mxu0 %v2330_v32 }
 0x97c   : > { %2252 = vmatprep.subr.bf16.mxu0 %v2391_v3 }
 0x97f   : > { %2253 = vmatpush3.bf16.msra.mxu0 %v2331_v33 }
 0x980   : > { %2254 = vmatprep.subr.bf16.mxu0 %v2391_v3 }
 0x983   : > { %2255 = vmatpush3.bf16.msra.mxu0 %v2332_v36 }
 0x984   : > { %2256 = vmatprep.subr.bf16.mxu0 %v2391_v3 }
 0x987   : > { %2257 = vmatpush3.bf16.msra.mxu0 %v2333_v37 }
 0x988   : > { %2258 = vmatprep.subr.bf16.mxu0 %v2391_v3 }
 0x98b   : > { %2259 = vmatpush3.bf16.msra.mxu0 %v2334_v38 }
 0xa41   : > { %v1526_v54 = vpop.f32.mrb[8].mxu0 }
 0xa42   : > { %v1533_v56 = vadd.f32 %v2500_v1, %v1526_v54  ;;  %v2222_v57 = vpop.f32.mrb[9].mxu0  ;;  %v2320_v1 = vld [vmem:[%s2894_s13 + $0x8] sm:$0xff]  }
 0xa43   : > { %v1529_v18 = vpop.f32.mrb[10].mxu0  ;;  %2227 = vmatpush3.bf16.msra.mxu1 %v2320_v1 }
 0xa44   : > { %v2786_v22 = vadd.f32 %v1988_v55, %v1533_v56  ;;  %v1534_v27 = vadd.f32 %v2503_v2, %v1529_v18  ;;  %v2223_v39 = vpop.f32.mrb[11].mxu0  ;;  %2228 = vmatprep.subr.bf16.mxu1 %v2391_v3 }
 0xa46   : > { %v2789_v42 = vadd.f32 %v1988_v55, %v1534_v27  ;;  %1546 = vadd.xlane.f32.xlu0 %v2786_v22 }
 0xa47   : > { %2229 = vmatpush3.bf16.msra.mxu1 %v2321_v6 }
 0xa48   : > { %1548 = vadd.xlane.f32.xlu1 %v2789_v42  ;;  %2230 = vmatprep.subr.bf16.mxu1 %v2391_v3 }
 0xa4b   : > { %2231 = vmatpush3.bf16.msra.mxu1 %v2322_v7 }
 0xa4c   : > { %2232 = vmatprep.subr.bf16.mxu1 %v2391_v3 }
 0xad3   : > { %v1547_v2 = vpop.xlane.xlu0 %1546 }
 0xad4   : > { %v1550_v58 = vmul.f32 0.03125, %v1547_v2 }
 0xad5   : > { %v1549_v59 = vpop.xlane.xlu1 %1548 }
 0xad6   : > { %v1552_v60 = vsub.f32 %v2786_v22, %v1550_v58  ;;  %v1551_v61 = vmul.f32 0.03125, %v1549_v59 }
 0xad8   : > { %v1553_v62 = vsub.f32 %v2789_v42, %v1551_v61  ;;  %v1554_v63 = vmul.f32 %v2526_v11, %v1552_v60 }
 0xada   : > { %v1556_v0 = vmul.f32 %v1554_v63, %v1554_v63  ;;  %v1555_v4 = vmul.f32 %v2526_v11, %v1553_v62  ;;  %v2323_v11 = vld [vmem:[%s2894_s13 + $0x20] sm:$0xff]  }
 0xadb   : > { %2233 = vmatpush3.bf16.msra.mxu1 %v2323_v11 }
 0xadc   : > { %1558 = vadd.xlane.f32.xlu0 %v1556_v0  ;;  %v1557_v5 = vmul.f32 %v1555_v4, %v1555_v4  ;;  %2234 = vmatprep.subr.bf16.mxu1 %v2391_v3 }
 0xade   : > { %1560 = vadd.xlane.f32.xlu1 %v1557_v5 }
 0xadf   : > { %2235 = vmatpush3.bf16.msra.mxu1 %v2324_v9 }
 0xae0   : > { %2236 = vmatprep.subr.bf16.mxu1 %v2391_v3 }
 0xae3   : > { %2237 = vmatpush3.bf16.msra.mxu1 %v2325_v8 }
 0xae4   : > { %2238 = vmatprep.subr.bf16.mxu1 %v2391_v3 }
 0xae7   : > { %2239 = vmatpush3.bf16.msra.mxu1 %v2326_v24 }
 0xb69   : > { %v1559_v12 = vpop.xlane.xlu0 %1558 }
 0xb6a   : > { %v1562_v13 = vmul.f32 0.03125, %v1559_v12 }
 0xb6b   : > { %v1561_v14 = vpop.xlane.xlu1 %1560 }
 0xb6c   : > { %v1564_v15 = vadd.f32 1e-05, %v1562_v13  ;;  %v1563_v16 = vmul.f32 0.03125, %v1561_v14 }
 0xb6e   : > { %2371 = vrsqrt.f32 %v1564_v15  ;;  %v1565_v10 = vadd.f32 1e-05, %v1563_v16 }
 0xb70   : > { %2373 = vrsqrt.f32 %v1565_v10 }
 0xb78   : > { %v2372_v23 = vpop.eup %2371 }
 0xb79   : > { %v1568_v35 = vmul.f32 %v2372_v23, %v1554_v63 }
 0xb7a   : > { %v2374_v43 = vpop.eup %2373 }
 0xb7b   : > { %v1569_v47 = vmul.f32 %v2374_v43, %v1555_v4  ;;  %v1576_v17 = vmul.f32 %v1989_v28, %v1568_v35  ;;  %v2393_v35 = vmov -1.0  }
 0xb7d   : > { %v1577_v20 = vmul.f32 %v1989_v28, %v1569_v47  ;;  %v1584_v21 = vadd.f32 %v1990_v19, %v1576_v17 }
 0xb7f   : > { %v1585_v25 = vadd.f32 %v1990_v19, %v1577_v20 }
 0xb81   : > { %v1586_v26 = vpack.c.bf16 %v1585_v25, %v1584_v21 }
 0xb83   : > { %2241 = vmatmul.mubr.bf16.vlgmr.msra.gmra.mrb[24].mxu1 %v1586_v26 }
 0xc56   : > { %v1692_v44 = vpop.f32.mrb[24].mxu1 }
 0xc57   : > { %v1693_v48 = vadd.f32 %v1991_v41, %v1692_v44  ;;  %v2242_v49 = vpop.f32.mrb[25].mxu1 }
 0xc58   : > { %v1695_v50 = vpop.f32.mrb[26].mxu1 }
 0xc59   : > { %v1701_v51 = vmul.f32 0.70710677, %v1693_v48  ;;  %v1696_v52 = vadd.f32 %v1991_v41, %v1695_v50  ;;  %v2243_v53 = vpop.f32.mrb[27].mxu1  ;;  %v1699_v26 = vmul.f32 0.5, %v1693_v48  ;;  %v2008_v41 = vld [vmem:[%s2897_s16] ss:$0 sm:$0xff] }
 0xc5b   : > { %v1707_v34 = vand.u32 2147483647, %v1701_v51  ;;  %v1702_v40 = vmul.f32 0.70710677, %v1696_v52  ;;  %vm1703_vm12 = vcmp.ge.f32.partialorder %v1701_v51, 0.0  ;;  %v1700_v29 = vmul.f32 0.5, %v1696_v52 }
 0xc5c   : > { %v1705_v43 = vsel %vm1703_vm12, 1.0, %v2393_v35 }
 0xc5d   : > { %v1709_v45 = vmul.f32 0.3275911, %v1707_v34  ;;  %v1708_v3 = vand.u32 2147483647, %v1702_v40  ;;  %v1733_v57 = vsub.f32 0.0, %v1707_v34  ;;  %vm1704_vm13 = vcmp.ge.f32.partialorder %v1702_v40, 0.0 }
 0xc5e   : > { %v1706_v20 = vsel %vm1704_vm13, 1.0, %v2393_v35 }
 0xc5f   : > { %v1711_v54 = vadd.f32 1.0, %v1709_v45  ;;  %v1710_v55 = vmul.f32 0.3275911, %v1708_v3  ;;  %v1734_v18 = vsub.f32 0.0, %v1708_v3  ;;  %v1735_v39 = vmul.f32 %v1733_v57, %v1707_v34 }
 0xc61   : > { %2375 = vrcp.f32 %v1711_v54  ;;  %v1712_v56 = vadd.f32 1.0, %v1710_v55  ;;  %v1736_v58 = vmul.f32 %v1734_v18, %v1708_v3  ;;  %v1737_v59 = vmul.f32 1.442695, %v1735_v39 }
 0xc63   : > { %2377 = vrcp.f32 %v1712_v56  ;;  %v1739_v0 = vmul.f32 1.442695, %v1736_v58 }
 0xc64   : > { %2379 = vpow2.f32 %v1737_v59 }
 0xc65   : > { %2381 = vpow2.f32 %v1739_v0 }
 0xc6b   : > { %v2376_v27 = vpop.eup %2375 }
 0xc6c   : > { %v1715_v46 = vmul.f32 1.0614054, %v2376_v27 }
 0xc6d   : > { %v2378_v1 = vpop.eup %2377 }
 0xc6e   : > { %v1717_v2 = vadd.f32 -1.4531521, %v1715_v46  ;;  %v1716_v60 = vmul.f32 1.0614054, %v2378_v1  ;;  %v2380_v14 = vpop.eup %2379 }
 0xc6f   : > { %v2382_v23 = vpop.eup %2381 }
 0xc70   : > { %v1719_v61 = vmul.f32 %v2376_v27, %v1717_v2  ;;  %v1718_v62 = vadd.f32 -1.4531521, %v1716_v60 }
 0xc72   : > { %v1721_v63 = vadd.f32 1.4214138, %v1719_v61  ;;  %v1720_v4 = vmul.f32 %v2378_v1, %v1718_v62 }
 0xc74   : > { %v1723_v5 = vmul.f32 %v2376_v27, %v1721_v63  ;;  %v1722_v6 = vadd.f32 1.4214138, %v1720_v4 }
 0xc76   : > { %v1725_v7 = vadd.f32 -0.28449672, %v1723_v5  ;;  %v1724_v11 = vmul.f32 %v2378_v1, %v1722_v6 }
 0xc78   : > { %v1727_v9 = vmul.f32 %v2376_v27, %v1725_v7  ;;  %v1726_v8 = vadd.f32 -0.28449672, %v1724_v11 }
 0xc7a   : > { %v1729_v24 = vadd.f32 0.2548296, %v1727_v9  ;;  %v1728_v12 = vmul.f32 %v2378_v1, %v1726_v8 }
 0xc7c   : > { %v1731_v13 = vmul.f32 %v2376_v27, %v1729_v24  ;;  %v1730_v15 = vadd.f32 0.2548296, %v1728_v12 }
 0xc7e   : > { %v1741_v16 = vmul.f32 %v2380_v14, %v1731_v13  ;;  %v1732_v10 = vmul.f32 %v2378_v1, %v1730_v15 }
 0xc80   : > { %v1743_v28 = vsub.f32 1.0, %v1741_v16  ;;  %v1742_v47 = vmul.f32 %v2382_v23, %v1732_v10 }
 0xc82   : > { %v1745_v17 = vmul.f32 %v1743_v28, %v1705_v43  ;;  %v1744_v19 = vsub.f32 1.0, %v1742_v47 }
 0xc84   : > { %v1747_v21 = vadd.f32 1.0, %v1745_v17  ;;  %v1746_v25 = vmul.f32 %v1744_v19, %v1706_v20 }
 0xc86   : > { %v1748_v30 = vadd.f32 1.0, %v1746_v25  ;;  %v1749_v31 = vmul.f32 %v1747_v21, %v1699_v26 }
 0xc88   : > { %v1750_v32 = vmul.f32 %v1748_v30, %v1700_v29 }
 0xc8a   : > { %v1751_v33 = vpack.c.bf16 %v1750_v32, %v1749_v31 }
 0xc8c   : > { %2261 = vmatmul.mubr.bf16.vlgmr.msra.gmra.mrb[12].mxu0 %v1751_v33 }
 0xd5f   : > { %v1850_v36 = vpop.f32.mrb[12].mxu0 }
 0xd60   : > { %v1857_v37 = vadd.f32 %v1850_v36, %v2786_v22  ;;  %v2262_v38 = vpop.f32.mrb[13].mxu0 }
 0xd61   : > { %v1853_v44 = vpop.f32.mrb[14].mxu0 }
 0xd62   : > { %v1858_v49 = vadd.f32 %v1853_v44, %v2789_v42  ;;  %v2263_v50 = vpop.f32.mrb[15].mxu0  ;;  %v1866_v48 = vadd.f32 %v2008_v41, %v1857_v37 }
 0xd64   : > { %v1867_v51 = vadd.f32 %v2008_v41, %v1858_v49 }
 0xd66   : > { %v2024_v52 = vpack.c.bf16 %v1867_v51, %v1866_v48 }
 0xd68   : > { %2025 = vst [vmem:[%s548_s0] sm:$0xff] %v2024_v52  }
 0xd69 PF: > { %s27_s24 = sadd.s32 1, %s2389_s24  }
 0xd6a   : > { %p24_p4 = scmp.ge.s32.totalorder %s27_s24, 4  }
 0xd6c   :  { %26 = sbr.rel (!%p24_p4) target bundleno = 3 (0x3), region = 118 }

</bundles_post_ra>
